<compile_context>
chip_gen: v7x
topology: tpu7x:2x2x1
jax: 0.10.0
libtpu: 0.0.40
codegen_flags: <defaults>
</compile_context>

<pallas_src>
import math

import jax
import jax.numpy as jnp
import numpy as np
from jax.experimental import pallas as pl
from jax.experimental.pallas import tpu as pltpu  # noqa: F401  (kept for TPU-specific extensions)

# ----------------------------- config (small) --------------------------------
B = 4           # batch
N = 8           # num_clicked_news_a_user
D = 32          # word_embedding_dim == num_filters
H = 4           # config.layers  (attention heads == GRU channels)
QD = 16         # query_vector_dim (only used by the reference's dead tail)
DK = D // H     # per-head dim == num_filters // layers == GRU hidden size


# ------------------------------- kernel --------------------------------------
def user_encoder_kernel(len_ref, x_ref, wqkv_ref, bqkv_ref,
                        wih_ref, whh_ref, bih_ref, bhh_ref, o_ref):
    # ---------------- fused Q/K/V projection: one (B*N,D)@(D,3D) matmul -------
    x = x_ref[...]                                                    # (B*N, D)
    qkv = jnp.dot(x, wqkv_ref[...],
                  preferred_element_type=jnp.float32) + bqkv_ref[...]  # (B*N, 3D)
    qkv3 = qkv.reshape(B, N, 3 * D)        # leading-dim split: layout no-op

    scale = 1.0 / math.sqrt(DK)

    # ---------------- multi-head self-attention (batched over B per head) -----
    ctx_heads = []
    for h in range(H):
        qh = qkv3[:, :, h * DK:(h + 1) * DK]                          # (B, N, DK)
        kh = qkv3[:, :, D + h * DK:D + (h + 1) * DK]
        vh = qkv3[:, :, 2 * D + h * DK:2 * D + (h + 1) * DK]
        s = jnp.einsum('bnd,bmd->bnm', qh, kh,
                       preferred_element_type=jnp.float32) * scale    # (B, N, N)
        s = s - jnp.max(s, axis=-1, keepdims=True)
        e = jnp.exp(s)
        # EUP reciprocal: one approximate recip of (B,N,1) + a VPU multiply
        # instead of a full (B,N,N) VALU divide.
        p = e * pl.reciprocal(jnp.sum(e, axis=-1, keepdims=True), approx=True)
        ctx_heads.append(jnp.einsum('bnm,bmd->bnd', p, vh,
                                    preferred_element_type=jnp.float32))  # (B,N,DK)

    # Lane-pack all head contexts once, then ONE matmul against the full
    # gate-major block-diagonal W_ih produces every channel's gate inputs.
    ctx = jnp.concatenate(ctx_heads, axis=-1)                         # (B, N, D)
    gi = jnp.dot(ctx.reshape(B * N, D), wih_ref[...],
                 preferred_element_type=jnp.float32) + bih_ref[...]   # (B*N, 3D)
    gi3 = gi.reshape(B, N, 3 * D)          # stays in registers; no VMEM bounce

    # ---------------- GRU over time, batched over (batch, channel) ------------
    # pack_padded_sequence + last_hidden  ==  only update h while t < length
    # (h starts at zero; padded steps leave it untouched; zero lengths -> 1).
    whh = whh_ref[...]
    bhh = bhh_ref[...]
    len_b = jnp.broadcast_to(jnp.maximum(len_ref[...], 1), (B, D))    # hoisted
    hstate = jnp.zeros((B, D), jnp.float32)   # channel h in lanes [h*DK,(h+1)*DK)
    for t in range(N):
        gi_t = gi3[:, t, :]                                           # (B, 3D) static slice
        gh = jnp.dot(hstate, whh,
                     preferred_element_type=jnp.float32) + bhh        # (B, 3D)
        r = jax.nn.sigmoid(gi_t[:, 0:D] + gh[:, 0:D])
        z = jax.nn.sigmoid(gi_t[:, D:2 * D] + gh[:, D:2 * D])
        n = jnp.tanh(gi_t[:, 2 * D:3 * D] + r * gh[:, 2 * D:3 * D])
        h_new = (1.0 - z) * n + z * hstate
        hstate = jnp.where(t < len_b, h_new, hstate)

    # ---------------- additive attention over the singleton candidate axis ----
    # softmax over a length-1 axis is identically 1.0, so the final user vector
    # is exactly the concatenated channel hiddens (already lane-packed as (B,D)).
    o_ref[...] = hstate.astype(o_ref.dtype)


# --------------------------- host-side packing (runs ONCE) --------------------
def pack_user_encoder_params(params):
    wq, bq, wk, bk, wv, bv, wih, whh, bih, bhh, watt, batt, qvec = params

    # Fused QKV projection weights.
    wqkv = jnp.concatenate([wq, wk, wv], axis=1)        # (D, 3D)
    bqkv = jnp.concatenate([bq, bk, bv], axis=1)        # (1, 3D)

    # Gate-major block-diagonal GRU weights: channel h occupies lanes
    # [h*DK,(h+1)*DK) of the packed hidden state, and gate g (r,z,n) of every
    # channel occupies lanes [g*D,(g+1)*D) of the packed gate vector.
    def pack(wmat, bvec):
        w = np.zeros((D, 3 * D), np.float32)
        bb = np.zeros((1, 3 * D), np.float32)
        wnp, bnp = np.asarray(wmat), np.asarray(bvec)
        for h in range(H):
            for g in range(3):
                w[h * DK:(h + 1) * DK,
                  g * D + h * DK:g * D + (h + 1) * DK] = wnp[:, g * DK:(g + 1) * DK]
                bb[0, g * D + h * DK:g * D + (h + 1) * DK] = bnp[0, g * DK:(g + 1) * DK]
        return jnp.asarray(w), jnp.asarray(bb)

    wih_p, bih_p = pack(wih, bih)
    whh_p, bhh_p = pack(whh, bhh)
    return (wqkv, bqkv, wih_p, whh_p, bih_p, bhh_p)


# ------------------------------- wrapper (jitted) ------------------------------
@jax.jit
def user_encoder(lengths, user_vector, packed_params):
    wqkv, bqkv, wih_p, whh_p, bih_p, bhh_p = packed_params
    Bb, Nn, Dd = user_vector.shape
    assert (Bb, Nn, Dd) == (B, N, D)

    x2 = user_vector.reshape(Bb * Nn, Dd)               # rows ordered (b, n)
    len2 = lengths.reshape(Bb, 1).astype(jnp.int32)

    # Single gridless kernel invocation: all operands (a few tens of KB) sit in
    # VMEM as full blocks; everything else happens in registers.
    return pl.pallas_call(
        user_encoder_kernel,
        out_shape=jax.ShapeDtypeStruct((Bb, Dd), jnp.float32),
    )(len2, x2, wqkv, bqkv, wih_p, whh_p, bih_p, bhh_p)


# --------------------------- pure-JAX reference -------------------------------
def reference(lengths, x, params):
    wq, bq, wk, bk, wv, bv, wih, whh, bih, bhh, watt, batt, qvec = params
    lengths = jnp.maximum(lengths, 1)
    Bb, Nn, Dd = x.shape

    q = x @ wq + bq
    k = x @ wk + bk
    v = x @ wv + bv
    qh = q.reshape(Bb, Nn, H, DK).transpose(0, 2, 1, 3)
    kh = k.reshape(Bb, Nn, H, DK).transpose(0, 2, 1, 3)
    vh = v.reshape(Bb, Nn, H, DK).transpose(0, 2, 1, 3)
    s = jnp.einsum("bhnd,bhmd->bhnm", qh, kh) / math.sqrt(DK)
    attn = jax.nn.softmax(s, axis=-1)
    ctx = jnp.einsum("bhnm,bhmd->bhnd", attn, vh).transpose(0, 2, 1, 3).reshape(Bb, Nn, Dd)

    chans = []
    for n in range(H):
        xn = ctx[:, :, n * DK:(n + 1) * DK]          # (B, N, DK)
        h = jnp.zeros((Bb, DK), jnp.float32)
        for t in range(Nn):
            gi = xn[:, t, :] @ wih + bih
            gh = h @ whh + bhh
            r = jax.nn.sigmoid(gi[:, :DK] + gh[:, :DK])
            z = jax.nn.sigmoid(gi[:, DK:2 * DK] + gh[:, DK:2 * DK])
            ncand = jnp.tanh(gi[:, 2 * DK:] + r * gh[:, 2 * DK:])
            hn = (1.0 - z) * ncand + z * h
            h = jnp.where((t < lengths)[:, None], hn, h)
        chans.append(h)
    mv = jnp.concatenate(chans, axis=1)[:, None, :]   # (B, 1, D)

    temp = jnp.tanh(mv @ watt + batt)                 # (B, 1, QD)
    score = jnp.einsum("blq,q->bl", temp, qvec[0])    # (B, 1)
    w = jax.nn.softmax(score, axis=1)                 # == 1 (singleton axis)
    return jnp.einsum("bl,bld->bd", w, mv)            # (B, D)


# ---------------------------------- main --------------------------------------
if __name__ == "__main__":
    key = jax.random.PRNGKey(0)
    ks = jax.random.split(key, 16)

    def u(k, shape):
        return jax.random.uniform(k, shape, jnp.float32, -0.1, 0.1)

    # MHSA projections (stored as (in, out) so kernels do x @ W + b)
    wq, bq = u(ks[0], (D, D)), u(ks[1], (1, D))
    wk, bk = u(ks[2], (D, D)), u(ks[3], (1, D))
    wv, bv = u(ks[4], (D, D)), u(ks[5], (1, D))
    # shared GRU (input=hidden=DK); PyTorch gate order (r, z, n), stored transposed
    wih, whh = u(ks[6], (DK, 3 * DK)), u(ks[7], (DK, 3 * DK))
    bih, bhh = u(ks[8], (1, 3 * DK)), u(ks[9], (1, 3 * DK))
    # additive attention: Linear(D -> QD) + query vector (dead tail, reference only)
    watt, batt = u(ks[10], (D, QD)), u(ks[11], (1, QD))
    qvec = u(ks[12], (1, QD))

    params = (wq, bq, wk, bk, wv, bv, wih, whh, bih, bhh, watt, batt, qvec)
    packed = pack_user_encoder_params(params)          # host-side repack: ONCE

    clicked_news_length = jnp.array([5, 8, 0, 3], dtype=jnp.int32)   # includes a zero
    user_vector = jax.random.normal(ks[13], (B, N, D), jnp.float32)

    out = user_encoder(clicked_news_length, user_vector, packed)
    jax.block_until_ready(out)

    ref = reference(clicked_news_length, user_vector, params)
    assert out.shape == (B, D)
    # Tolerance accounts for the EUP approximate reciprocal in the softmax
    # denominator (relative error ~1e-4), well below these bounds.
    np.testing.assert_allclose(np.asarray(out), np.asarray(ref), rtol=2e-3, atol=2e-3)
    print("KERNEL_OK")
</pallas_src>

<mosaic_0001>
module attributes {stable_mosaic.version = 11 : i64} {
  func.func @user_encoder_kernel(%arg0: memref<4x1xi32, #tpu.memory_space<vmem>>, %arg1: memref<32x32xf32, #tpu.memory_space<vmem>>, %arg2: memref<32x96xf32, #tpu.memory_space<vmem>>, %arg3: memref<1x96xf32, #tpu.memory_space<vmem>>, %arg4: memref<32x96xf32, #tpu.memory_space<vmem>>, %arg5: memref<32x96xf32, #tpu.memory_space<vmem>>, %arg6: memref<1x96xf32, #tpu.memory_space<vmem>>, %arg7: memref<1x96xf32, #tpu.memory_space<vmem>>, %arg8: memref<4x32xf32, #tpu.memory_space<vmem>>) attributes {dimension_semantics = [], scalar_prefetch = 0 : i64, scratch_operands = 0 : i64, tpu.core_type = #tpu.core_type<tc>} {
    %c0 = arith.constant 0 : index
    %c0_0 = arith.constant 0 : index
    %0 = vector.load %arg1[%c0, %c0_0] : memref<32x32xf32, #tpu.memory_space<vmem>>, vector<32x32xf32>
    %c0_1 = arith.constant 0 : index
    %c0_2 = arith.constant 0 : index
    %1 = vector.load %arg2[%c0_1, %c0_2] : memref<32x96xf32, #tpu.memory_space<vmem>>, vector<32x96xf32>
    %cst = arith.constant dense<0.000000e+00> : vector<32x96xf32>
    %2 = tpu.matmul %0, %1, %cst {dimension_numbers = #tpu.dot_dimension_numbers<[1], [0], [0], [1], [0, 0, 1, 1], [], []>} : vector<32x32xf32>, vector<32x96xf32>, vector<32x96xf32> -> vector<32x96xf32>
    %c0_3 = arith.constant 0 : index
    %c0_4 = arith.constant 0 : index
    %3 = vector.load %arg3[%c0_3, %c0_4] : memref<1x96xf32, #tpu.memory_space<vmem>>, vector<1x96xf32>
    %4 = vector.broadcast %3 : vector<1x96xf32> to vector<32x96xf32>
    %5 = arith.addf %2, %4 : vector<32x96xf32>
    %6 = vector.shape_cast %5 : vector<32x96xf32> to vector<4x8x96xf32>
    %7 = vector.extract_strided_slice %6 {offsets = [0, 0, 0], sizes = [4, 8, 8], strides = [1, 1, 1]} : vector<4x8x96xf32> to vector<4x8x8xf32>
    %8 = vector.extract_strided_slice %6 {offsets = [0, 0, 32], sizes = [4, 8, 8], strides = [1, 1, 1]} : vector<4x8x96xf32> to vector<4x8x8xf32>
    %9 = vector.extract_strided_slice %6 {offsets = [0, 0, 64], sizes = [4, 8, 8], strides = [1, 1, 1]} : vector<4x8x96xf32> to vector<4x8x8xf32>
    "tpu.trace_start"() <{level = 10 : i32, message = "bnd,bmd->bnm"}> : () -> ()
    %cst_5 = arith.constant dense<0.000000e+00> : vector<4x8x8xf32>
    %10 = tpu.matmul %7, %8, %cst_5 {dimension_numbers = #tpu.dot_dimension_numbers<[2], [2], [1], [1], [0, 0, 0, 1, 1, 1], [0], [0]>} : vector<4x8x8xf32>, vector<4x8x8xf32>, vector<4x8x8xf32> -> vector<4x8x8xf32>
    "tpu.trace_stop"() : () -> ()
    %cst_6 = arith.constant 0.353553385 : f32
    %11 = vector.broadcast %cst_6 : f32 to vector<4x8x8xf32>
    %12 = arith.mulf %10, %11 : vector<4x8x8xf32>
    %cst_7 = arith.constant dense<0xFF800000> : vector<4x8xf32>
    %13 = vector.multi_reduction <maximumf>, %12, %cst_7 [2] : vector<4x8x8xf32> to vector<4x8xf32>
    %14 = vector.shape_cast %13 : vector<4x8xf32> to vector<4x8x1xf32>
    %15 = vector.broadcast %14 : vector<4x8x1xf32> to vector<4x8x8xf32>
    %16 = arith.subf %12, %15 : vector<4x8x8xf32>
    %17 = math.exp %16 : vector<4x8x8xf32>
    %cst_8 = arith.constant dense<0.000000e+00> : vector<4x8xf32>
    %18 = vector.multi_reduction <add>, %17, %cst_8 [2] : vector<4x8x8xf32> to vector<4x8xf32>
    %19 = vector.shape_cast %18 : vector<4x8xf32> to vector<4x8x1xf32>
    %20 = tpu.reciprocal %19 {approx = true} : vector<4x8x1xf32> -> vector<4x8x1xf32>
    %21 = vector.broadcast %20 : vector<4x8x1xf32> to vector<4x8x8xf32>
    %22 = arith.mulf %17, %21 : vector<4x8x8xf32>
    "tpu.trace_start"() <{level = 10 : i32, message = "bnm,bmd->bnd"}> : () -> ()
    %cst_9 = arith.constant dense<0.000000e+00> : vector<4x8x8xf32>
    %23 = tpu.matmul %22, %9, %cst_9 {dimension_numbers = #tpu.dot_dimension_numbers<[2], [1], [1], [2], [0, 0, 0, 1, 1, 2], [0], [0]>} : vector<4x8x8xf32>, vector<4x8x8xf32>, vector<4x8x8xf32> -> vector<4x8x8xf32>
    "tpu.trace_stop"() : () -> ()
    %24 = vector.extract_strided_slice %6 {offsets = [0, 0, 8], sizes = [4, 8, 8], strides = [1, 1, 1]} : vector<4x8x96xf32> to vector<4x8x8xf32>
    %25 = vector.extract_strided_slice %6 {offsets = [0, 0, 40], sizes = [4, 8, 8], strides = [1, 1, 1]} : vector<4x8x96xf32> to vector<4x8x8xf32>
    %26 = vector.extract_strided_slice %6 {offsets = [0, 0, 72], sizes = [4, 8, 8], strides = [1, 1, 1]} : vector<4x8x96xf32> to vector<4x8x8xf32>
    "tpu.trace_start"() <{level = 10 : i32, message = "bnd,bmd->bnm"}> : () -> ()
    %cst_10 = arith.constant dense<0.000000e+00> : vector<4x8x8xf32>
    %27 = tpu.matmul %24, %25, %cst_10 {dimension_numbers = #tpu.dot_dimension_numbers<[2], [2], [1], [1], [0, 0, 0, 1, 1, 1], [0], [0]>} : vector<4x8x8xf32>, vector<4x8x8xf32>, vector<4x8x8xf32> -> vector<4x8x8xf32>
    "tpu.trace_stop"() : () -> ()
    %cst_11 = arith.constant 0.353553385 : f32
    %28 = vector.broadcast %cst_11 : f32 to vector<4x8x8xf32>
    %29 = arith.mulf %27, %28 : vector<4x8x8xf32>
    %cst_12 = arith.constant dense<0xFF800000> : vector<4x8xf32>
    %30 = vector.multi_reduction <maximumf>, %29, %cst_12 [2] : vector<4x8x8xf32> to vector<4x8xf32>
    %31 = vector.shape_cast %30 : vector<4x8xf32> to vector<4x8x1xf32>
    %32 = vector.broadcast %31 : vector<4x8x1xf32> to vector<4x8x8xf32>
    %33 = arith.subf %29, %32 : vector<4x8x8xf32>
    %34 = math.exp %33 : vector<4x8x8xf32>
    %cst_13 = arith.constant dense<0.000000e+00> : vector<4x8xf32>
    %35 = vector.multi_reduction <add>, %34, %cst_13 [2] : vector<4x8x8xf32> to vector<4x8xf32>
    %36 = vector.shape_cast %35 : vector<4x8xf32> to vector<4x8x1xf32>
    %37 = tpu.reciprocal %36 {approx = true} : vector<4x8x1xf32> -> vector<4x8x1xf32>
    %38 = vector.broadcast %37 : vector<4x8x1xf32> to vector<4x8x8xf32>
    %39 = arith.mulf %34, %38 : vector<4x8x8xf32>
    "tpu.trace_start"() <{level = 10 : i32, message = "bnm,bmd->bnd"}> : () -> ()
    %cst_14 = arith.constant dense<0.000000e+00> : vector<4x8x8xf32>
    %40 = tpu.matmul %39, %26, %cst_14 {dimension_numbers = #tpu.dot_dimension_numbers<[2], [1], [1], [2], [0, 0, 0, 1, 1, 2], [0], [0]>} : vector<4x8x8xf32>, vector<4x8x8xf32>, vector<4x8x8xf32> -> vector<4x8x8xf32>
    "tpu.trace_stop"() : () -> ()
    %41 = vector.extract_strided_slice %6 {offsets = [0, 0, 16], sizes = [4, 8, 8], strides = [1, 1, 1]} : vector<4x8x96xf32> to vector<4x8x8xf32>
    %42 = vector.extract_strided_slice %6 {offsets = [0, 0, 48], sizes = [4, 8, 8], strides = [1, 1, 1]} : vector<4x8x96xf32> to vector<4x8x8xf32>
    %43 = vector.extract_strided_slice %6 {offsets = [0, 0, 80], sizes = [4, 8, 8], strides = [1, 1, 1]} : vector<4x8x96xf32> to vector<4x8x8xf32>
    "tpu.trace_start"() <{level = 10 : i32, message = "bnd,bmd->bnm"}> : () -> ()
    %cst_15 = arith.constant dense<0.000000e+00> : vector<4x8x8xf32>
    %44 = tpu.matmul %41, %42, %cst_15 {dimension_numbers = #tpu.dot_dimension_numbers<[2], [2], [1], [1], [0, 0, 0, 1, 1, 1], [0], [0]>} : vector<4x8x8xf32>, vector<4x8x8xf32>, vector<4x8x8xf32> -> vector<4x8x8xf32>
    "tpu.trace_stop"() : () -> ()
    %cst_16 = arith.constant 0.353553385 : f32
    %45 = vector.broadcast %cst_16 : f32 to vector<4x8x8xf32>
    %46 = arith.mulf %44, %45 : vector<4x8x8xf32>
    %cst_17 = arith.constant dense<0xFF800000> : vector<4x8xf32>
    %47 = vector.multi_reduction <maximumf>, %46, %cst_17 [2] : vector<4x8x8xf32> to vector<4x8xf32>
    %48 = vector.shape_cast %47 : vector<4x8xf32> to vector<4x8x1xf32>
    %49 = vector.broadcast %48 : vector<4x8x1xf32> to vector<4x8x8xf32>
    %50 = arith.subf %46, %49 : vector<4x8x8xf32>
    %51 = math.exp %50 : vector<4x8x8xf32>
    %cst_18 = arith.constant dense<0.000000e+00> : vector<4x8xf32>
    %52 = vector.multi_reduction <add>, %51, %cst_18 [2] : vector<4x8x8xf32> to vector<4x8xf32>
    %53 = vector.shape_cast %52 : vector<4x8xf32> to vector<4x8x1xf32>
    %54 = tpu.reciprocal %53 {approx = true} : vector<4x8x1xf32> -> vector<4x8x1xf32>
    %55 = vector.broadcast %54 : vector<4x8x1xf32> to vector<4x8x8xf32>
    %56 = arith.mulf %51, %55 : vector<4x8x8xf32>
    "tpu.trace_start"() <{level = 10 : i32, message = "bnm,bmd->bnd"}> : () -> ()
    %cst_19 = arith.constant dense<0.000000e+00> : vector<4x8x8xf32>
    %57 = tpu.matmul %56, %43, %cst_19 {dimension_numbers = #tpu.dot_dimension_numbers<[2], [1], [1], [2], [0, 0, 0, 1, 1, 2], [0], [0]>} : vector<4x8x8xf32>, vector<4x8x8xf32>, vector<4x8x8xf32> -> vector<4x8x8xf32>
    "tpu.trace_stop"() : () -> ()
    %58 = vector.extract_strided_slice %6 {offsets = [0, 0, 24], sizes = [4, 8, 8], strides = [1, 1, 1]} : vector<4x8x96xf32> to vector<4x8x8xf32>
    %59 = vector.extract_strided_slice %6 {offsets = [0, 0, 56], sizes = [4, 8, 8], strides = [1, 1, 1]} : vector<4x8x96xf32> to vector<4x8x8xf32>
    %60 = vector.extract_strided_slice %6 {offsets = [0, 0, 88], sizes = [4, 8, 8], strides = [1, 1, 1]} : vector<4x8x96xf32> to vector<4x8x8xf32>
    "tpu.trace_start"() <{level = 10 : i32, message = "bnd,bmd->bnm"}> : () -> ()
    %cst_20 = arith.constant dense<0.000000e+00> : vector<4x8x8xf32>
    %61 = tpu.matmul %58, %59, %cst_20 {dimension_numbers = #tpu.dot_dimension_numbers<[2], [2], [1], [1], [0, 0, 0, 1, 1, 1], [0], [0]>} : vector<4x8x8xf32>, vector<4x8x8xf32>, vector<4x8x8xf32> -> vector<4x8x8xf32>
    "tpu.trace_stop"() : () -> ()
    %cst_21 = arith.constant 0.353553385 : f32
    %62 = vector.broadcast %cst_21 : f32 to vector<4x8x8xf32>
    %63 = arith.mulf %61, %62 : vector<4x8x8xf32>
    %cst_22 = arith.constant dense<0xFF800000> : vector<4x8xf32>
    %64 = vector.multi_reduction <maximumf>, %63, %cst_22 [2] : vector<4x8x8xf32> to vector<4x8xf32>
    %65 = vector.shape_cast %64 : vector<4x8xf32> to vector<4x8x1xf32>
    %66 = vector.broadcast %65 : vector<4x8x1xf32> to vector<4x8x8xf32>
    %67 = arith.subf %63, %66 : vector<4x8x8xf32>
    %68 = math.exp %67 : vector<4x8x8xf32>
    %cst_23 = arith.constant dense<0.000000e+00> : vector<4x8xf32>
    %69 = vector.multi_reduction <add>, %68, %cst_23 [2] : vector<4x8x8xf32> to vector<4x8xf32>
    %70 = vector.shape_cast %69 : vector<4x8xf32> to vector<4x8x1xf32>
    %71 = tpu.reciprocal %70 {approx = true} : vector<4x8x1xf32> -> vector<4x8x1xf32>
    %72 = vector.broadcast %71 : vector<4x8x1xf32> to vector<4x8x8xf32>
    %73 = arith.mulf %68, %72 : vector<4x8x8xf32>
    "tpu.trace_start"() <{level = 10 : i32, message = "bnm,bmd->bnd"}> : () -> ()
    %cst_24 = arith.constant dense<0.000000e+00> : vector<4x8x8xf32>
    %74 = tpu.matmul %73, %60, %cst_24 {dimension_numbers = #tpu.dot_dimension_numbers<[2], [1], [1], [2], [0, 0, 0, 1, 1, 2], [0], [0]>} : vector<4x8x8xf32>, vector<4x8x8xf32>, vector<4x8x8xf32> -> vector<4x8x8xf32>
    "tpu.trace_stop"() : () -> ()
    %75 = tpu.concatenate %23, %40, %57, %74 in 2 : vector<4x8x8xf32>, vector<4x8x8xf32>, vector<4x8x8xf32>, vector<4x8x8xf32> -> vector<4x8x32xf32>
    %76 = vector.shape_cast %75 : vector<4x8x32xf32> to vector<32x32xf32>
    %c0_25 = arith.constant 0 : index
    %c0_26 = arith.constant 0 : index
    %77 = vector.load %arg4[%c0_25, %c0_26] : memref<32x96xf32, #tpu.memory_space<vmem>>, vector<32x96xf32>
    %cst_27 = arith.constant dense<0.000000e+00> : vector<32x96xf32>
    %78 = tpu.matmul %76, %77, %cst_27 {dimension_numbers = #tpu.dot_dimension_numbers<[1], [0], [0], [1], [0, 0, 1, 1], [], []>} : vector<32x32xf32>, vector<32x96xf32>, vector<32x96xf32> -> vector<32x96xf32>
    %c0_28 = arith.constant 0 : index
    %c0_29 = arith.constant 0 : index
    %79 = vector.load %arg6[%c0_28, %c0_29] : memref<1x96xf32, #tpu.memory_space<vmem>>, vector<1x96xf32>
    %80 = vector.broadcast %79 : vector<1x96xf32> to vector<32x96xf32>
    %81 = arith.addf %78, %80 : vector<32x96xf32>
    %82 = vector.shape_cast %81 : vector<32x96xf32> to vector<4x8x96xf32>
    %c0_30 = arith.constant 0 : index
    %c0_31 = arith.constant 0 : index
    %83 = vector.load %arg5[%c0_30, %c0_31] : memref<32x96xf32, #tpu.memory_space<vmem>>, vector<32x96xf32>
    %c0_32 = arith.constant 0 : index
    %c0_33 = arith.constant 0 : index
    %84 = vector.load %arg7[%c0_32, %c0_33] : memref<1x96xf32, #tpu.memory_space<vmem>>, vector<1x96xf32>
    %c0_34 = arith.constant 0 : index
    %c0_35 = arith.constant 0 : index
    %85 = vector.load %arg0[%c0_34, %c0_35] : memref<4x1xi32, #tpu.memory_space<vmem>>, vector<4x1xi32>
    %c1_i32 = arith.constant 1 : i32
    %86 = vector.broadcast %c1_i32 : i32 to vector<4x1xi32>
    %87 = arith.maxsi %85, %86 : vector<4x1xi32>
    %88 = vector.shape_cast %87 : vector<4x1xi32> to vector<4x1xi32>
    %89 = vector.broadcast %88 : vector<4x1xi32> to vector<4x32xi32>
    %cst_36 = arith.constant 0.000000e+00 : f32
    %90 = vector.broadcast %cst_36 : f32 to vector<4x32xf32>
    %91 = vector.extract_strided_slice %82 {offsets = [0, 0, 0], sizes = [4, 1, 96], strides = [1, 1, 1]} : vector<4x8x96xf32> to vector<4x1x96xf32>
    %92 = vector.shape_cast %91 : vector<4x1x96xf32> to vector<4x96xf32>
    %cst_37 = arith.constant dense<0.000000e+00> : vector<4x96xf32>
    %93 = tpu.matmul %90, %83, %cst_37 {dimension_numbers = #tpu.dot_dimension_numbers<[1], [0], [0], [1], [0, 0, 1, 1], [], []>} : vector<4x32xf32>, vector<32x96xf32>, vector<4x96xf32> -> vector<4x96xf32>
    %94 = vector.broadcast %84 : vector<1x96xf32> to vector<4x96xf32>
    %95 = arith.addf %93, %94 : vector<4x96xf32>
    %96 = vector.extract_strided_slice %92 {offsets = [0, 0], sizes = [4, 32], strides = [1, 1]} : vector<4x96xf32> to vector<4x32xf32>
    %97 = vector.extract_strided_slice %95 {offsets = [0, 0], sizes = [4, 32], strides = [1, 1]} : vector<4x96xf32> to vector<4x32xf32>
    %98 = arith.addf %96, %97 : vector<4x32xf32>
    %99 = arith.negf %98 : vector<4x32xf32>
    %100 = math.exp %99 : vector<4x32xf32>
    %cst_38 = arith.constant 1.000000e+00 : f32
    %101 = vector.broadcast %cst_38 : f32 to vector<4x32xf32>
    %102 = arith.addf %101, %100 : vector<4x32xf32>
    %103 = arith.divf %101, %102 : vector<4x32xf32>
    %104 = vector.extract_strided_slice %92 {offsets = [0, 32], sizes = [4, 32], strides = [1, 1]} : vector<4x96xf32> to vector<4x32xf32>
    %105 = vector.extract_strided_slice %95 {offsets = [0, 32], sizes = [4, 32], strides = [1, 1]} : vector<4x96xf32> to vector<4x32xf32>
    %106 = arith.addf %104, %105 : vector<4x32xf32>
    %107 = arith.negf %106 : vector<4x32xf32>
    %108 = math.exp %107 : vector<4x32xf32>
    %cst_39 = arith.constant 1.000000e+00 : f32
    %109 = vector.broadcast %cst_39 : f32 to vector<4x32xf32>
    %110 = arith.addf %109, %108 : vector<4x32xf32>
    %111 = arith.divf %109, %110 : vector<4x32xf32>
    %112 = vector.extract_strided_slice %92 {offsets = [0, 64], sizes = [4, 32], strides = [1, 1]} : vector<4x96xf32> to vector<4x32xf32>
    %113 = vector.extract_strided_slice %95 {offsets = [0, 64], sizes = [4, 32], strides = [1, 1]} : vector<4x96xf32> to vector<4x32xf32>
    %114 = arith.mulf %103, %113 : vector<4x32xf32>
    %115 = arith.addf %112, %114 : vector<4x32xf32>
    %116 = math.tanh %115 : vector<4x32xf32>
    %cst_40 = arith.constant 1.000000e+00 : f32
    %117 = vector.broadcast %cst_40 : f32 to vector<4x32xf32>
    %118 = arith.subf %117, %111 : vector<4x32xf32>
    %119 = arith.mulf %118, %116 : vector<4x32xf32>
    %120 = arith.mulf %111, %90 : vector<4x32xf32>
    %121 = arith.addf %119, %120 : vector<4x32xf32>
    %c0_i32 = arith.constant 0 : i32
    %122 = vector.broadcast %c0_i32 : i32 to vector<4x32xi32>
    %123 = arith.cmpi sgt, %89, %122 : vector<4x32xi32>
    %124 = arith.select %123, %121, %90 : vector<4x32xi1>, vector<4x32xf32>
    %125 = vector.extract_strided_slice %82 {offsets = [0, 1, 0], sizes = [4, 1, 96], strides = [1, 1, 1]} : vector<4x8x96xf32> to vector<4x1x96xf32>
    %126 = vector.shape_cast %125 : vector<4x1x96xf32> to vector<4x96xf32>
    %cst_41 = arith.constant dense<0.000000e+00> : vector<4x96xf32>
    %127 = tpu.matmul %124, %83, %cst_41 {dimension_numbers = #tpu.dot_dimension_numbers<[1], [0], [0], [1], [0, 0, 1, 1], [], []>} : vector<4x32xf32>, vector<32x96xf32>, vector<4x96xf32> -> vector<4x96xf32>
    %128 = vector.broadcast %84 : vector<1x96xf32> to vector<4x96xf32>
    %129 = arith.addf %127, %128 : vector<4x96xf32>
    %130 = vector.extract_strided_slice %126 {offsets = [0, 0], sizes = [4, 32], strides = [1, 1]} : vector<4x96xf32> to vector<4x32xf32>
    %131 = vector.extract_strided_slice %129 {offsets = [0, 0], sizes = [4, 32], strides = [1, 1]} : vector<4x96xf32> to vector<4x32xf32>
    %132 = arith.addf %130, %131 : vector<4x32xf32>
    %133 = arith.negf %132 : vector<4x32xf32>
    %134 = math.exp %133 : vector<4x32xf32>
    %cst_42 = arith.constant 1.000000e+00 : f32
    %135 = vector.broadcast %cst_42 : f32 to vector<4x32xf32>
    %136 = arith.addf %135, %134 : vector<4x32xf32>
    %137 = arith.divf %135, %136 : vector<4x32xf32>
    %138 = vector.extract_strided_slice %126 {offsets = [0, 32], sizes = [4, 32], strides = [1, 1]} : vector<4x96xf32> to vector<4x32xf32>
    %139 = vector.extract_strided_slice %129 {offsets = [0, 32], sizes = [4, 32], strides = [1, 1]} : vector<4x96xf32> to vector<4x32xf32>
    %140 = arith.addf %138, %139 : vector<4x32xf32>
    %141 = arith.negf %140 : vector<4x32xf32>
    %142 = math.exp %141 : vector<4x32xf32>
    %cst_43 = arith.constant 1.000000e+00 : f32
    %143 = vector.broadcast %cst_43 : f32 to vector<4x32xf32>
    %144 = arith.addf %143, %142 : vector<4x32xf32>
    %145 = arith.divf %143, %144 : vector<4x32xf32>
    %146 = vector.extract_strided_slice %126 {offsets = [0, 64], sizes = [4, 32], strides = [1, 1]} : vector<4x96xf32> to vector<4x32xf32>
    %147 = vector.extract_strided_slice %129 {offsets = [0, 64], sizes = [4, 32], strides = [1, 1]} : vector<4x96xf32> to vector<4x32xf32>
    %148 = arith.mulf %137, %147 : vector<4x32xf32>
    %149 = arith.addf %146, %148 : vector<4x32xf32>
    %150 = math.tanh %149 : vector<4x32xf32>
    %cst_44 = arith.constant 1.000000e+00 : f32
    %151 = vector.broadcast %cst_44 : f32 to vector<4x32xf32>
    %152 = arith.subf %151, %145 : vector<4x32xf32>
    %153 = arith.mulf %152, %150 : vector<4x32xf32>
    %154 = arith.mulf %145, %124 : vector<4x32xf32>
    %155 = arith.addf %153, %154 : vector<4x32xf32>
    %c1_i32_45 = arith.constant 1 : i32
    %156 = vector.broadcast %c1_i32_45 : i32 to vector<4x32xi32>
    %157 = arith.cmpi sgt, %89, %156 : vector<4x32xi32>
    %158 = arith.select %157, %155, %124 : vector<4x32xi1>, vector<4x32xf32>
    %159 = vector.extract_strided_slice %82 {offsets = [0, 2, 0], sizes = [4, 1, 96], strides = [1, 1, 1]} : vector<4x8x96xf32> to vector<4x1x96xf32>
    %160 = vector.shape_cast %159 : vector<4x1x96xf32> to vector<4x96xf32>
    %cst_46 = arith.constant dense<0.000000e+00> : vector<4x96xf32>
    %161 = tpu.matmul %158, %83, %cst_46 {dimension_numbers = #tpu.dot_dimension_numbers<[1], [0], [0], [1], [0, 0, 1, 1], [], []>} : vector<4x32xf32>, vector<32x96xf32>, vector<4x96xf32> -> vector<4x96xf32>
    %162 = vector.broadcast %84 : vector<1x96xf32> to vector<4x96xf32>
    %163 = arith.addf %161, %162 : vector<4x96xf32>
    %164 = vector.extract_strided_slice %160 {offsets = [0, 0], sizes = [4, 32], strides = [1, 1]} : vector<4x96xf32> to vector<4x32xf32>
    %165 = vector.extract_strided_slice %163 {offsets = [0, 0], sizes = [4, 32], strides = [1, 1]} : vector<4x96xf32> to vector<4x32xf32>
    %166 = arith.addf %164, %165 : vector<4x32xf32>
    %167 = arith.negf %166 : vector<4x32xf32>
    %168 = math.exp %167 : vector<4x32xf32>
    %cst_47 = arith.constant 1.000000e+00 : f32
    %169 = vector.broadcast %cst_47 : f32 to vector<4x32xf32>
    %170 = arith.addf %169, %168 : vector<4x32xf32>
    %171 = arith.divf %169, %170 : vector<4x32xf32>
    %172 = vector.extract_strided_slice %160 {offsets = [0, 32], sizes = [4, 32], strides = [1, 1]} : vector<4x96xf32> to vector<4x32xf32>
    %173 = vector.extract_strided_slice %163 {offsets = [0, 32], sizes = [4, 32], strides = [1, 1]} : vector<4x96xf32> to vector<4x32xf32>
    %174 = arith.addf %172, %173 : vector<4x32xf32>
    %175 = arith.negf %174 : vector<4x32xf32>
    %176 = math.exp %175 : vector<4x32xf32>
    %cst_48 = arith.constant 1.000000e+00 : f32
    %177 = vector.broadcast %cst_48 : f32 to vector<4x32xf32>
    %178 = arith.addf %177, %176 : vector<4x32xf32>
    %179 = arith.divf %177, %178 : vector<4x32xf32>
    %180 = vector.extract_strided_slice %160 {offsets = [0, 64], sizes = [4, 32], strides = [1, 1]} : vector<4x96xf32> to vector<4x32xf32>
    %181 = vector.extract_strided_slice %163 {offsets = [0, 64], sizes = [4, 32], strides = [1, 1]} : vector<4x96xf32> to vector<4x32xf32>
    %182 = arith.mulf %171, %181 : vector<4x32xf32>
    %183 = arith.addf %180, %182 : vector<4x32xf32>
    %184 = math.tanh %183 : vector<4x32xf32>
    %cst_49 = arith.constant 1.000000e+00 : f32
    %185 = vector.broadcast %cst_49 : f32 to vector<4x32xf32>
    %186 = arith.subf %185, %179 : vector<4x32xf32>
    %187 = arith.mulf %186, %184 : vector<4x32xf32>
    %188 = arith.mulf %179, %158 : vector<4x32xf32>
    %189 = arith.addf %187, %188 : vector<4x32xf32>
    %c2_i32 = arith.constant 2 : i32
    %190 = vector.broadcast %c2_i32 : i32 to vector<4x32xi32>
    %191 = arith.cmpi sgt, %89, %190 : vector<4x32xi32>
    %192 = arith.select %191, %189, %158 : vector<4x32xi1>, vector<4x32xf32>
    %193 = vector.extract_strided_slice %82 {offsets = [0, 3, 0], sizes = [4, 1, 96], strides = [1, 1, 1]} : vector<4x8x96xf32> to vector<4x1x96xf32>
    %194 = vector.shape_cast %193 : vector<4x1x96xf32> to vector<4x96xf32>
    %cst_50 = arith.constant dense<0.000000e+00> : vector<4x96xf32>
    %195 = tpu.matmul %192, %83, %cst_50 {dimension_numbers = #tpu.dot_dimension_numbers<[1], [0], [0], [1], [0, 0, 1, 1], [], []>} : vector<4x32xf32>, vector<32x96xf32>, vector<4x96xf32> -> vector<4x96xf32>
    %196 = vector.broadcast %84 : vector<1x96xf32> to vector<4x96xf32>
    %197 = arith.addf %195, %196 : vector<4x96xf32>
    %198 = vector.extract_strided_slice %194 {offsets = [0, 0], sizes = [4, 32], strides = [1, 1]} : vector<4x96xf32> to vector<4x32xf32>
    %199 = vector.extract_strided_slice %197 {offsets = [0, 0], sizes = [4, 32], strides = [1, 1]} : vector<4x96xf32> to vector<4x32xf32>
    %200 = arith.addf %198, %199 : vector<4x32xf32>
    %201 = arith.negf %200 : vector<4x32xf32>
    %202 = math.exp %201 : vector<4x32xf32>
    %cst_51 = arith.constant 1.000000e+00 : f32
    %203 = vector.broadcast %cst_51 : f32 to vector<4x32xf32>
    %204 = arith.addf %203, %202 : vector<4x32xf32>
    %205 = arith.divf %203, %204 : vector<4x32xf32>
    %206 = vector.extract_strided_slice %194 {offsets = [0, 32], sizes = [4, 32], strides = [1, 1]} : vector<4x96xf32> to vector<4x32xf32>
    %207 = vector.extract_strided_slice %197 {offsets = [0, 32], sizes = [4, 32], strides = [1, 1]} : vector<4x96xf32> to vector<4x32xf32>
    %208 = arith.addf %206, %207 : vector<4x32xf32>
    %209 = arith.negf %208 : vector<4x32xf32>
    %210 = math.exp %209 : vector<4x32xf32>
    %cst_52 = arith.constant 1.000000e+00 : f32
    %211 = vector.broadcast %cst_52 : f32 to vector<4x32xf32>
    %212 = arith.addf %211, %210 : vector<4x32xf32>
    %213 = arith.divf %211, %212 : vector<4x32xf32>
    %214 = vector.extract_strided_slice %194 {offsets = [0, 64], sizes = [4, 32], strides = [1, 1]} : vector<4x96xf32> to vector<4x32xf32>
    %215 = vector.extract_strided_slice %197 {offsets = [0, 64], sizes = [4, 32], strides = [1, 1]} : vector<4x96xf32> to vector<4x32xf32>
    %216 = arith.mulf %205, %215 : vector<4x32xf32>
    %217 = arith.addf %214, %216 : vector<4x32xf32>
    %218 = math.tanh %217 : vector<4x32xf32>
    %cst_53 = arith.constant 1.000000e+00 : f32
    %219 = vector.broadcast %cst_53 : f32 to vector<4x32xf32>
    %220 = arith.subf %219, %213 : vector<4x32xf32>
    %221 = arith.mulf %220, %218 : vector<4x32xf32>
    %222 = arith.mulf %213, %192 : vector<4x32xf32>
    %223 = arith.addf %221, %222 : vector<4x32xf32>
    %c3_i32 = arith.constant 3 : i32
    %224 = vector.broadcast %c3_i32 : i32 to vector<4x32xi32>
    %225 = arith.cmpi sgt, %89, %224 : vector<4x32xi32>
    %226 = arith.select %225, %223, %192 : vector<4x32xi1>, vector<4x32xf32>
    %227 = vector.extract_strided_slice %82 {offsets = [0, 4, 0], sizes = [4, 1, 96], strides = [1, 1, 1]} : vector<4x8x96xf32> to vector<4x1x96xf32>
    %228 = vector.shape_cast %227 : vector<4x1x96xf32> to vector<4x96xf32>
    %cst_54 = arith.constant dense<0.000000e+00> : vector<4x96xf32>
    %229 = tpu.matmul %226, %83, %cst_54 {dimension_numbers = #tpu.dot_dimension_numbers<[1], [0], [0], [1], [0, 0, 1, 1], [], []>} : vector<4x32xf32>, vector<32x96xf32>, vector<4x96xf32> -> vector<4x96xf32>
    %230 = vector.broadcast %84 : vector<1x96xf32> to vector<4x96xf32>
    %231 = arith.addf %229, %230 : vector<4x96xf32>
    %232 = vector.extract_strided_slice %228 {offsets = [0, 0], sizes = [4, 32], strides = [1, 1]} : vector<4x96xf32> to vector<4x32xf32>
    %233 = vector.extract_strided_slice %231 {offsets = [0, 0], sizes = [4, 32], strides = [1, 1]} : vector<4x96xf32> to vector<4x32xf32>
    %234 = arith.addf %232, %233 : vector<4x32xf32>
    %235 = arith.negf %234 : vector<4x32xf32>
    %236 = math.exp %235 : vector<4x32xf32>
    %cst_55 = arith.constant 1.000000e+00 : f32
    %237 = vector.broadcast %cst_55 : f32 to vector<4x32xf32>
    %238 = arith.addf %237, %236 : vector<4x32xf32>
    %239 = arith.divf %237, %238 : vector<4x32xf32>
    %240 = vector.extract_strided_slice %228 {offsets = [0, 32], sizes = [4, 32], strides = [1, 1]} : vector<4x96xf32> to vector<4x32xf32>
    %241 = vector.extract_strided_slice %231 {offsets = [0, 32], sizes = [4, 32], strides = [1, 1]} : vector<4x96xf32> to vector<4x32xf32>
    %242 = arith.addf %240, %241 : vector<4x32xf32>
    %243 = arith.negf %242 : vector<4x32xf32>
    %244 = math.exp %243 : vector<4x32xf32>
    %cst_56 = arith.constant 1.000000e+00 : f32
    %245 = vector.broadcast %cst_56 : f32 to vector<4x32xf32>
    %246 = arith.addf %245, %244 : vector<4x32xf32>
    %247 = arith.divf %245, %246 : vector<4x32xf32>
    %248 = vector.extract_strided_slice %228 {offsets = [0, 64], sizes = [4, 32], strides = [1, 1]} : vector<4x96xf32> to vector<4x32xf32>
    %249 = vector.extract_strided_slice %231 {offsets = [0, 64], sizes = [4, 32], strides = [1, 1]} : vector<4x96xf32> to vector<4x32xf32>
    %250 = arith.mulf %239, %249 : vector<4x32xf32>
    %251 = arith.addf %248, %250 : vector<4x32xf32>
    %252 = math.tanh %251 : vector<4x32xf32>
    %cst_57 = arith.constant 1.000000e+00 : f32
    %253 = vector.broadcast %cst_57 : f32 to vector<4x32xf32>
    %254 = arith.subf %253, %247 : vector<4x32xf32>
    %255 = arith.mulf %254, %252 : vector<4x32xf32>
    %256 = arith.mulf %247, %226 : vector<4x32xf32>
    %257 = arith.addf %255, %256 : vector<4x32xf32>
    %c4_i32 = arith.constant 4 : i32
    %258 = vector.broadcast %c4_i32 : i32 to vector<4x32xi32>
    %259 = arith.cmpi sgt, %89, %258 : vector<4x32xi32>
    %260 = arith.select %259, %257, %226 : vector<4x32xi1>, vector<4x32xf32>
    %261 = vector.extract_strided_slice %82 {offsets = [0, 5, 0], sizes = [4, 1, 96], strides = [1, 1, 1]} : vector<4x8x96xf32> to vector<4x1x96xf32>
    %262 = vector.shape_cast %261 : vector<4x1x96xf32> to vector<4x96xf32>
    %cst_58 = arith.constant dense<0.000000e+00> : vector<4x96xf32>
    %263 = tpu.matmul %260, %83, %cst_58 {dimension_numbers = #tpu.dot_dimension_numbers<[1], [0], [0], [1], [0, 0, 1, 1], [], []>} : vector<4x32xf32>, vector<32x96xf32>, vector<4x96xf32> -> vector<4x96xf32>
    %264 = vector.broadcast %84 : vector<1x96xf32> to vector<4x96xf32>
    %265 = arith.addf %263, %264 : vector<4x96xf32>
    %266 = vector.extract_strided_slice %262 {offsets = [0, 0], sizes = [4, 32], strides = [1, 1]} : vector<4x96xf32> to vector<4x32xf32>
    %267 = vector.extract_strided_slice %265 {offsets = [0, 0], sizes = [4, 32], strides = [1, 1]} : vector<4x96xf32> to vector<4x32xf32>
    %268 = arith.addf %266, %267 : vector<4x32xf32>
    %269 = arith.negf %268 : vector<4x32xf32>
    %270 = math.exp %269 : vector<4x32xf32>
    %cst_59 = arith.constant 1.000000e+00 : f32
    %271 = vector.broadcast %cst_59 : f32 to vector<4x32xf32>
    %272 = arith.addf %271, %270 : vector<4x32xf32>
    %273 = arith.divf %271, %272 : vector<4x32xf32>
    %274 = vector.extract_strided_slice %262 {offsets = [0, 32], sizes = [4, 32], strides = [1, 1]} : vector<4x96xf32> to vector<4x32xf32>
    %275 = vector.extract_strided_slice %265 {offsets = [0, 32], sizes = [4, 32], strides = [1, 1]} : vector<4x96xf32> to vector<4x32xf32>
    %276 = arith.addf %274, %275 : vector<4x32xf32>
    %277 = arith.negf %276 : vector<4x32xf32>
    %278 = math.exp %277 : vector<4x32xf32>
    %cst_60 = arith.constant 1.000000e+00 : f32
    %279 = vector.broadcast %cst_60 : f32 to vector<4x32xf32>
    %280 = arith.addf %279, %278 : vector<4x32xf32>
    %281 = arith.divf %279, %280 : vector<4x32xf32>
    %282 = vector.extract_strided_slice %262 {offsets = [0, 64], sizes = [4, 32], strides = [1, 1]} : vector<4x96xf32> to vector<4x32xf32>
    %283 = vector.extract_strided_slice %265 {offsets = [0, 64], sizes = [4, 32], strides = [1, 1]} : vector<4x96xf32> to vector<4x32xf32>
    %284 = arith.mulf %273, %283 : vector<4x32xf32>
    %285 = arith.addf %282, %284 : vector<4x32xf32>
    %286 = math.tanh %285 : vector<4x32xf32>
    %cst_61 = arith.constant 1.000000e+00 : f32
    %287 = vector.broadcast %cst_61 : f32 to vector<4x32xf32>
    %288 = arith.subf %287, %281 : vector<4x32xf32>
    %289 = arith.mulf %288, %286 : vector<4x32xf32>
    %290 = arith.mulf %281, %260 : vector<4x32xf32>
    %291 = arith.addf %289, %290 : vector<4x32xf32>
    %c5_i32 = arith.constant 5 : i32
    %292 = vector.broadcast %c5_i32 : i32 to vector<4x32xi32>
    %293 = arith.cmpi sgt, %89, %292 : vector<4x32xi32>
    %294 = arith.select %293, %291, %260 : vector<4x32xi1>, vector<4x32xf32>
    %295 = vector.extract_strided_slice %82 {offsets = [0, 6, 0], sizes = [4, 1, 96], strides = [1, 1, 1]} : vector<4x8x96xf32> to vector<4x1x96xf32>
    %296 = vector.shape_cast %295 : vector<4x1x96xf32> to vector<4x96xf32>
    %cst_62 = arith.constant dense<0.000000e+00> : vector<4x96xf32>
    %297 = tpu.matmul %294, %83, %cst_62 {dimension_numbers = #tpu.dot_dimension_numbers<[1], [0], [0], [1], [0, 0, 1, 1], [], []>} : vector<4x32xf32>, vector<32x96xf32>, vector<4x96xf32> -> vector<4x96xf32>
    %298 = vector.broadcast %84 : vector<1x96xf32> to vector<4x96xf32>
    %299 = arith.addf %297, %298 : vector<4x96xf32>
    %300 = vector.extract_strided_slice %296 {offsets = [0, 0], sizes = [4, 32], strides = [1, 1]} : vector<4x96xf32> to vector<4x32xf32>
    %301 = vector.extract_strided_slice %299 {offsets = [0, 0], sizes = [4, 32], strides = [1, 1]} : vector<4x96xf32> to vector<4x32xf32>
    %302 = arith.addf %300, %301 : vector<4x32xf32>
    %303 = arith.negf %302 : vector<4x32xf32>
    %304 = math.exp %303 : vector<4x32xf32>
    %cst_63 = arith.constant 1.000000e+00 : f32
    %305 = vector.broadcast %cst_63 : f32 to vector<4x32xf32>
    %306 = arith.addf %305, %304 : vector<4x32xf32>
    %307 = arith.divf %305, %306 : vector<4x32xf32>
    %308 = vector.extract_strided_slice %296 {offsets = [0, 32], sizes = [4, 32], strides = [1, 1]} : vector<4x96xf32> to vector<4x32xf32>
    %309 = vector.extract_strided_slice %299 {offsets = [0, 32], sizes = [4, 32], strides = [1, 1]} : vector<4x96xf32> to vector<4x32xf32>
    %310 = arith.addf %308, %309 : vector<4x32xf32>
    %311 = arith.negf %310 : vector<4x32xf32>
    %312 = math.exp %311 : vector<4x32xf32>
    %cst_64 = arith.constant 1.000000e+00 : f32
    %313 = vector.broadcast %cst_64 : f32 to vector<4x32xf32>
    %314 = arith.addf %313, %312 : vector<4x32xf32>
    %315 = arith.divf %313, %314 : vector<4x32xf32>
    %316 = vector.extract_strided_slice %296 {offsets = [0, 64], sizes = [4, 32], strides = [1, 1]} : vector<4x96xf32> to vector<4x32xf32>
    %317 = vector.extract_strided_slice %299 {offsets = [0, 64], sizes = [4, 32], strides = [1, 1]} : vector<4x96xf32> to vector<4x32xf32>
    %318 = arith.mulf %307, %317 : vector<4x32xf32>
    %319 = arith.addf %316, %318 : vector<4x32xf32>
    %320 = math.tanh %319 : vector<4x32xf32>
    %cst_65 = arith.constant 1.000000e+00 : f32
    %321 = vector.broadcast %cst_65 : f32 to vector<4x32xf32>
    %322 = arith.subf %321, %315 : vector<4x32xf32>
    %323 = arith.mulf %322, %320 : vector<4x32xf32>
    %324 = arith.mulf %315, %294 : vector<4x32xf32>
    %325 = arith.addf %323, %324 : vector<4x32xf32>
    %c6_i32 = arith.constant 6 : i32
    %326 = vector.broadcast %c6_i32 : i32 to vector<4x32xi32>
    %327 = arith.cmpi sgt, %89, %326 : vector<4x32xi32>
    %328 = arith.select %327, %325, %294 : vector<4x32xi1>, vector<4x32xf32>
    %329 = vector.extract_strided_slice %82 {offsets = [0, 7, 0], sizes = [4, 1, 96], strides = [1, 1, 1]} : vector<4x8x96xf32> to vector<4x1x96xf32>
    %330 = vector.shape_cast %329 : vector<4x1x96xf32> to vector<4x96xf32>
    %cst_66 = arith.constant dense<0.000000e+00> : vector<4x96xf32>
    %331 = tpu.matmul %328, %83, %cst_66 {dimension_numbers = #tpu.dot_dimension_numbers<[1], [0], [0], [1], [0, 0, 1, 1], [], []>} : vector<4x32xf32>, vector<32x96xf32>, vector<4x96xf32> -> vector<4x96xf32>
    %332 = vector.broadcast %84 : vector<1x96xf32> to vector<4x96xf32>
    %333 = arith.addf %331, %332 : vector<4x96xf32>
    %334 = vector.extract_strided_slice %330 {offsets = [0, 0], sizes = [4, 32], strides = [1, 1]} : vector<4x96xf32> to vector<4x32xf32>
    %335 = vector.extract_strided_slice %333 {offsets = [0, 0], sizes = [4, 32], strides = [1, 1]} : vector<4x96xf32> to vector<4x32xf32>
    %336 = arith.addf %334, %335 : vector<4x32xf32>
    %337 = arith.negf %336 : vector<4x32xf32>
    %338 = math.exp %337 : vector<4x32xf32>
    %cst_67 = arith.constant 1.000000e+00 : f32
    %339 = vector.broadcast %cst_67 : f32 to vector<4x32xf32>
    %340 = arith.addf %339, %338 : vector<4x32xf32>
    %341 = arith.divf %339, %340 : vector<4x32xf32>
    %342 = vector.extract_strided_slice %330 {offsets = [0, 32], sizes = [4, 32], strides = [1, 1]} : vector<4x96xf32> to vector<4x32xf32>
    %343 = vector.extract_strided_slice %333 {offsets = [0, 32], sizes = [4, 32], strides = [1, 1]} : vector<4x96xf32> to vector<4x32xf32>
    %344 = arith.addf %342, %343 : vector<4x32xf32>
    %345 = arith.negf %344 : vector<4x32xf32>
    %346 = math.exp %345 : vector<4x32xf32>
    %cst_68 = arith.constant 1.000000e+00 : f32
    %347 = vector.broadcast %cst_68 : f32 to vector<4x32xf32>
    %348 = arith.addf %347, %346 : vector<4x32xf32>
    %349 = arith.divf %347, %348 : vector<4x32xf32>
    %350 = vector.extract_strided_slice %330 {offsets = [0, 64], sizes = [4, 32], strides = [1, 1]} : vector<4x96xf32> to vector<4x32xf32>
    %351 = vector.extract_strided_slice %333 {offsets = [0, 64], sizes = [4, 32], strides = [1, 1]} : vector<4x96xf32> to vector<4x32xf32>
    %352 = arith.mulf %341, %351 : vector<4x32xf32>
    %353 = arith.addf %350, %352 : vector<4x32xf32>
    %354 = math.tanh %353 : vector<4x32xf32>
    %cst_69 = arith.constant 1.000000e+00 : f32
    %355 = vector.broadcast %cst_69 : f32 to vector<4x32xf32>
    %356 = arith.subf %355, %349 : vector<4x32xf32>
    %357 = arith.mulf %356, %354 : vector<4x32xf32>
    %358 = arith.mulf %349, %328 : vector<4x32xf32>
    %359 = arith.addf %357, %358 : vector<4x32xf32>
    %c7_i32 = arith.constant 7 : i32
    %360 = vector.broadcast %c7_i32 : i32 to vector<4x32xi32>
    %361 = arith.cmpi sgt, %89, %360 : vector<4x32xi32>
    %362 = arith.select %361, %359, %328 : vector<4x32xi1>, vector<4x32xf32>
    %c0_70 = arith.constant 0 : index
    %c0_71 = arith.constant 0 : index
    %363 = vector.load %arg8[%c0_70, %c0_71] : memref<4x32xf32, #tpu.memory_space<vmem>>, vector<4x32xf32>
    tpu.vector_store %arg8[%c0_70, %c0_71], %362 {strides = array<i32>} : memref<4x32xf32, #tpu.memory_space<vmem>>, vector<4x32xf32>,
    return
  }
}

</mosaic_0001>

<bundles_post_ra>
// kernel: user_encoder.1
= control target key start
LH: loop header
LB: loop body
LE: loop exit
PB: predicated region body
PF: predicated region fallthrough
CT: control target
= control target key end

     0   :  { %13 = vsyncpa [#allocation3], 0  ;;  %s6578_s0 = inlined_call_operand.vmem [shape: s32[4,1], index: 0, kind: input, shape index: {}]   ;;  %s6579_s1 = inlined_call_operand.hbm [shape: f32[32,32], index: 1, kind: input, shape index: {}]   ;;  %s6580_s2 = inlined_call_operand.hbm [shape: f32[32,96], index: 2, kind: input, shape index: {}]   ;;  %s6581_s3 = inlined_call_operand.vmem [shape: f32[1,96], index: 3, kind: input, shape index: {}]   ;;  %s6582_s4 = inlined_call_operand.hbm [shape: f32[32,96], index: 4, kind: input, shape index: {}]   ;;  %s6583_s5 = inlined_call_operand.hbm [shape: f32[32,96], index: 5, kind: input, shape index: {}]   ;;  %s6584_s6 = inlined_call_operand.vmem [shape: f32[1,96], index: 6, kind: input, shape index: {}]   ;;  %s6585_s7 = inlined_call_operand.vmem [shape: f32[1,96], index: 7, kind: input, shape index: {}]   ;;  %s6586_s8 = inlined_call_operand.hbm [shape: f32[4,32], index: 8, kind: output, shape index: {}]  }
   0x1   :  { %14 = vsyncpa [#allocation6], 0 }
   0x2   :  { %15 = vsyncpa [#allocation9], 0 }
   0x3   :  { %16 = vsyncpa [#allocation4], 0  ;;  %s5704_s27 = smov [#allocation5]   ;;  %s5705_s29 = smov [#allocation2]  }
   0x4   :  { %s36_s28 = sshll.u32 %s5704_s27, 4  ;;  %s24_s30 = sshll.u32 %s5705_s29, 4  ;;  %s37_s28 = int_to_ptr.vmem [resolvable:$true] %s36_s28  ;;  %s5774_s30 = int_to_ptr.vmem [resolvable:$true] %s24_s30 }
   0x5   :  { %s5586_s11 = scalar_lea.hbm %s6580_s2, 512 }
   0x6   :  { %p5587_p0 = scmp.ne.s32.totalorder %s6580_s2, %s5586_s11  ;;  %p5590_p1 = scmp.lt.u32.totalorder %s5586_s11, %s6580_s2 }
   0x8   :  { %p5592_p2 = pnand %p5590_p1, %p5587_p0 }
   0xa   :  { %5595 = shalt.err (!%p5592_p2)
}
   0xb   :  { %s5596_s16 = scalar_lea.vmem %s37_s28, 512  ;;  %p5601_p4 = scmp.lt.s32.totalorder %s37_s28, %s37_s28 }
   0xc   :  { %p5597_p3 = scmp.ne.s32.totalorder %s37_s28, %s5596_s16  ;;  %p5602_p5 = scmp.lt.s32.totalorder %s5596_s16, %s5596_s16 }
   0xe   :  { %p5603_p6 = por %p5602_p5, %p5601_p4 }
  0x10   :  { %p5604_p7 = pnand %p5603_p6, %p5597_p3 }
  0x12   :  { %5607 = shalt.err (!%p5604_p7)
}
  0x13   :  { %s5706_s17 = smov 128   ;;  %s5707_s18 = smov 8  }
  0x14   :  { %42 = dma.hbm_to_vmem [thread:$0]  %s6580_s2, 512, %s37_s28, [#allocation6], %s5706_s17, %s5706_s17, %s5707_s18  }
  0x15   :  { %s5608_s23 = scalar_lea.hbm %s6579_s1, 512 }
  0x16   :  { %p5609_p8 = scmp.ne.s32.totalorder %s6579_s1, %s5608_s23  ;;  %p5612_p9 = scmp.lt.u32.totalorder %s5608_s23, %s6579_s1 }
  0x18   :  { %p5614_p10 = pnand %p5612_p9, %p5609_p8 }
  0x1a   :  { %5617 = shalt.err (!%p5614_p10)
}
  0x1b   :  { %s5618_s29 = scalar_lea.vmem %s5774_s30, 512  ;;  %p5623_p12 = scmp.lt.s32.totalorder %s5774_s30, %s5774_s30 }
  0x1c   :  { %p5619_p11 = scmp.ne.s32.totalorder %s5774_s30, %s5618_s29  ;;  %p5624_p13 = scmp.lt.s32.totalorder %s5618_s29, %s5618_s29 }
  0x1e   :  { %p5625_p0 = por %p5624_p13, %p5623_p12 }
  0x20   :  { %p5626_p1 = pnand %p5625_p0, %p5619_p11 }
  0x22   :  { %5629 = shalt.err (!%p5626_p1)
}
  0x23   :  { %30 = dma.hbm_to_vmem [thread:$0]  %s6579_s1, 512, %s5774_s30, [#allocation3], %s5706_s17, %s5706_s17, %s5707_s18  }
  0x24   :  { %s5708_s9 = smov [#allocation7]   ;;  %s5709_s11 = smov [#allocation8]  }
  0x25   :  { %s50_s10 = sshll.u32 %s5708_s9, 4  ;;  %s62_s12 = sshll.u32 %s5709_s11, 4  ;;  %s51_s10 = int_to_ptr.vmem [resolvable:$true] %s50_s10  ;;  %s5811_s12 = int_to_ptr.vmem [resolvable:$true] %s62_s12 }
  0x26   :  { %s5630_s15 = scalar_lea.hbm %s6582_s4, 512 }
  0x27   :  { %p5631_p2 = scmp.ne.s32.totalorder %s6582_s4, %s5630_s15  ;;  %p5634_p3 = scmp.lt.u32.totalorder %s5630_s15, %s6582_s4 }
  0x29   :  { %p5636_p4 = pnand %p5634_p3, %p5631_p2 }
  0x2b   :  { %5639 = shalt.err (!%p5636_p4)
}
  0x2c   :  { %s5640_s1 = scalar_lea.vmem %s51_s10, 512  ;;  %p5645_p6 = scmp.lt.s32.totalorder %s51_s10, %s51_s10 }
  0x2d   :  { %p5641_p5 = scmp.ne.s32.totalorder %s51_s10, %s5640_s1  ;;  %p5646_p7 = scmp.lt.s32.totalorder %s5640_s1, %s5640_s1 }
  0x2f   :  { %p5647_p8 = por %p5646_p7, %p5645_p6 }
  0x31   :  { %p5648_p9 = pnand %p5647_p8, %p5641_p5 }
  0x33   :  { %5651 = shalt.err (!%p5648_p9)
}
  0x34   :  { %56 = dma.hbm_to_vmem [thread:$0]  %s6582_s4, 512, %s51_s10, [#allocation6], %s5706_s17, %s5706_s17, %s5707_s18  }
  0x35   :  { %s5652_s25 = scalar_lea.hbm %s6583_s5, 512 }
  0x36   :  { %p5653_p10 = scmp.ne.s32.totalorder %s6583_s5, %s5652_s25  ;;  %p5656_p11 = scmp.lt.u32.totalorder %s5652_s25, %s6583_s5 }
  0x38   :  { %p5658_p12 = pnand %p5656_p11, %p5653_p10 }
  0x3a   :  { %5661 = shalt.err (!%p5658_p12)
}
  0x3b   :  { %s5662_s28 = scalar_lea.vmem %s5811_s12, 512  ;;  %p5667_p0 = scmp.lt.s32.totalorder %s5811_s12, %s5811_s12 }
  0x3c   :  { %p5663_p13 = scmp.ne.s32.totalorder %s5811_s12, %s5662_s28  ;;  %p5668_p1 = scmp.lt.s32.totalorder %s5662_s28, %s5662_s28 }
  0x3e   :  { %p5669_p2 = por %p5668_p1, %p5667_p0 }
  0x40   :  { %p5670_p3 = pnand %p5669_p2, %p5663_p13 }
  0x42   :  { %5673 = shalt.err (!%p5670_p3)
}
  0x43   :  { %68 = dma.hbm_to_vmem [thread:$0]  %s6583_s5, 512, %s5811_s12, [#allocation9], %s5706_s17, %s5706_s17, %s5707_s18  }
  0x44   :  { %5696 = dma.done.wait [#allocation3], 512  }
  0x45   :  { %5697 = vsyncadd [#allocation3], 4294966784 }
  0x46   :  { %5698 = dma.done.wait [#allocation6], 1024  }
  0x47   :  { %5699 = vsyncadd [#allocation6], 4294966272 }
  0x48   :  { %5700 = dma.done.wait [#allocation9], 512  }
  0x49   :  { %5701 = vsyncadd [#allocation9], 4294966784  ;;  %vm100_vm0 = vcmask 261120   ;;  %v89_v0 = vld [vmem:[#allocation5] sm:$0xff]  ;;  %v90_v1 = vld [vmem:[#allocation5 + $0x8] sm:$0xff]  ;;  %v5710_v10 = vmov 0.0  }
  0x4a   :  { %v91_v2 = vld [vmem:[#allocation5 + $0x10] sm:$0xff]  ;;  %v5239_v3 = vpack.c.bf16 %v90_v1, %v89_v0  ;;  %v92_v4 = vld [vmem:[#allocation5 + $0x18] sm:$0xff]  ;;  %v85_v5 = vld [vmem:[#allocation2] sm:$0xff]  ;;  %4977 = vmatprep.subr.mxu1 %v5710_v10  ;;  %vm5711_vm1 = vmmov 0   ;;  %s5712_s10 = smov 96   ;;  %vm201_vm2 = vcmask 64512  }
  0x4b   :  { %v5243_v6 = vpack.c.bf16 %v92_v4, %v91_v2  ;;  %4971 = vmatprep.mubr.msk.f32.mxu0 %vm100_vm0, %v85_v5  ;;  %v86_v7 = vld [vmem:[#allocation2 + $0x8] sm:$0xff]  ;;  %v87_v8 = vld [vmem:[#allocation2 + $0x10] sm:$0xff]  ;;  %v88_v9 = vld [vmem:[#allocation2 + $0x18] sm:$0xff]  ;;  %4979 = vmatprep.mubr.msk.f32.mxu1 %vm5711_vm1, %v5710_v10  ;;  %s5714_s11 = smov 88   ;;  %s5715_s12 = smov 120   ;;  %vm2903_vm3 = vcmask 130048  }
  0x4c   :  { %5240 = vmatprep.subr.bf16.mxu0 %v5239_v3  ;;  %v4745_v11 = vld [vmem:[%s6581_s3] ss:$0 sm:$0xff]  ;;  %s5713_s3 = smov 64   ;;  %s5716_s13 = smov 56   ;;  %vm2908_vm4 = vcmask 195584   ;;  %vm3225_vm6 = vcmask 1041409  }
  0x4d   :  { %5242 = vmatpush3.bf16.msra.mxu0 %v5239_v3  ;;  %s5717_s14 = smov 80   ;;  %s5718_s15 = smov 112   ;;  %vm3228_vm7 = vcmask 1042434   ;;  %vm3231_vm8 = vcmask 1043459  }
  0x4e   :  { %5244 = vmatprep.subr.bf16.mxu0 %v5243_v6  ;;  %s5719_s16 = smov 48   ;;  %s5720_s19 = smov 72  }
  0x4f   :  { %s5721_s20 = smov 104   ;;  %s5722_s21 = smov 40  }
  0x50   :  { %s5723_s1 = smov 16  }
  0x51   :  { %5246 = vmatpush3.bf16.msra.mxu0 %v5243_v6 }
  0x52   :  { %4992 = vmatprep.subr.mxu0 %v5710_v10 }
  0x54   :  { %4972 = vmatmul.mubr.msk.f32.vlgmr.msra.gmra.mrb[0].mxu0 %vm100_vm0, %v86_v7 }
  0x55   :  { %4974 = vmatprep.mubr.msk.f32.mxu0 %vm100_vm0, %v87_v8 }
  0x58   :  { %4975 = vmatmul.mubr.msk.f32.gmra.mrb[2].mxu0 %vm100_vm0, %v88_v9 }
  0x59   :  { %4994 = vmatprep.mubr.msk.f32.mxu0 %vm5711_vm1, %v5710_v10 }
 0x127   :  { %v4973_v12 = vpop.f32.mrb[0].mxu0 }
 0x128   :  { %v179_v13 = vpop.f32.mrb[1].mxu0  ;;  %v5865_v17 = vadd.f32 %v4973_v12, %v4745_v11 }
 0x129   :  { %v5861_v14 = vadd.f32 %v4745_v11, %v179_v13 }
 0x12b   :  { %v4976_v15 = vpop.f32.mrb[2].mxu0  ;;  %199 = vrot.lane.b32.xlu0 %v5861_v14, %s5712_s10 }
 0x12c   :  { %v189_v16 = vpop.f32.mrb[3].mxu0  ;;  %v5869_v19 = vadd.f32 %v4976_v15, %v4745_v11 }
 0x12d   :  { %v5867_v18 = vadd.f32 %v4745_v11, %v189_v16 }
 0x12f   :  { %354 = vrot.lane.b32.xlu1 %v5867_v18, %s5712_s10  ;;  %277 = vrot.lane.b32.xlu0 %v5865_v17, %s5712_s10 }
 0x133   :  { %431 = vrot.lane.b32.xlu1 %v5869_v19, %s5712_s10 }
 0x19d   :  { %v200_v20 = vpop.permute.xlu0 %199 }
 0x19e   :  { %4978 = vmatpush3.xpose.msk.msra.mxu1 %vm201_vm2, %v200_v20 }
 0x19f   :  { %4982 = vmatprep.subr.mxu1 %v5710_v10 }
 0x1a1   :  { %v355_v21 = vpop.permute.xlu1 %354  ;;  %4980 = vmatmul.mubr.msk.f32.vlgmr.msra.gmra.mrb[0].mxu1 %vm201_vm2, %v5861_v14  ;;  %v278_v22 = vpop.permute.xlu0 %277 }
 0x1a2   :  { %4983 = vmatpush3.xpose.msk.msra.mxu1 %vm201_vm2, %v278_v22  ;;  %4984 = vmatprep.mubr.msk.f32.mxu1 %vm5711_vm1, %v5710_v10 }
 0x1a3   :  { %4987 = vmatprep.subr.mxu1 %v5710_v10 }
 0x1a5   :  { %v432_v23 = vpop.permute.xlu1 %431  ;;  %4985 = vmatmul.mubr.msk.f32.vlgmr.msra.gmra.mrb[2].mxu1 %vm201_vm2, %v5865_v17 }
 0x1a6   :  { %4988 = vmatpush3.xpose.msk.msra.mxu1 %vm201_vm2, %v355_v21  ;;  %4993 = vmatpush3.xpose.msk.msra.mxu0 %vm201_vm2, %v432_v23 }
 0x1a7   :  { %4989 = vmatprep.mubr.msk.f32.mxu1 %vm5711_vm1, %v5710_v10  ;;  %4997 = vmatprep.subr.mxu1 %v5710_v10 }
 0x1a8   :  { %5002 = vmatprep.subr.mxu0 %v5710_v10 }
 0x1a9   :  { %4990 = vmatmul.mubr.msk.f32.vlgmr.msra.gmra.mrb[4].mxu1 %vm201_vm2, %v5867_v18  ;;  %4995 = vmatmul.mubr.msk.f32.vlgmr.msra.gmra.mrb[4].mxu0 %vm201_vm2, %v5869_v19 }
 0x1aa   :  { %4999 = vmatprep.mubr.msk.f32.mxu1 %vm5711_vm1, %v5710_v10  ;;  %5004 = vmatprep.mubr.msk.f32.mxu0 %vm5711_vm1, %v5710_v10 }
 0x274   :  { %v272_v24 = vpop.f32.mrb[0].mxu1 }
 0x275   :  { %v507_v25 = vmul.f32 0.35355338, %v272_v24  ;;  %v4981_v26 = vpop.f32.mrb[1].mxu1 }
 0x277   :  { %v511_v27 = vsel %vm201_vm2, %v507_v25, -inf }
 0x278   :  { %512 = vmax.xlane.f32.xlu0 %v511_v27  ;;  %v349_v28 = vpop.f32.mrb[2].mxu1 }
 0x279   :  { %v508_v29 = vmul.f32 0.35355338, %v349_v28  ;;  %v4986_v30 = vpop.f32.mrb[3].mxu1 }
 0x27b   :  { %v514_v31 = vsel %vm201_vm2, %v508_v29, -inf }
 0x27c   :  { %v503_v32 = vpop.f32.mrb[4].mxu0  ;;  %515 = vmax.xlane.f32.xlu1 %v514_v31  ;;  %v426_v33 = vpop.f32.mrb[4].mxu1 }
 0x27d   :  { %v509_v34 = vmul.f32 0.35355338, %v426_v33  ;;  %v4991_v35 = vpop.f32.mrb[5].mxu1  ;;  %v4996_v36 = vpop.f32.mrb[5].mxu0  ;;  %v510_v37 = vmul.f32 0.35355338, %v503_v32 }
 0x27f   :  { %v517_v38 = vsel %vm201_vm2, %v509_v34, -inf  ;;  %v520_v39 = vsel %vm201_vm2, %v510_v37, -inf }
 0x280   :  { %518 = vmax.xlane.f32.xlu0 %v517_v38 }
 0x284   :  { %521 = vmax.xlane.f32.xlu0 %v520_v39 }
 0x28d   :  { %555 = vrot.lane.b32.xlu1 %v5861_v14, %s5713_s3 }
 0x291   :  { %707 = vrot.lane.b32.xlu1 %v5867_v18, %s5713_s3 }
 0x295   :  { %783 = vrot.lane.b32.xlu1 %v5869_v19, %s5713_s3 }
 0x29a   :  { %631 = vrot.lane.b32.xlu0 %v5865_v17, %s5713_s3 }
 0x305   :  { %v513_v40 = vpop.xlane.xlu0 %512 }
 0x306   :  { %v523_v41 = vsub.f32 %v507_v25, %v513_v40 }
 0x308   :  { %v527_v42 = vmul.f32 1.442695, %v523_v41 }
 0x309   :  { %v516_v43 = vpop.xlane.xlu1 %515 }
 0x30a   :  { %5329 = vpow2.f32 %v527_v42  ;;  %v524_v46 = vsub.f32 %v508_v29, %v516_v43 }
 0x30c   :  { %v529_v50 = vmul.f32 1.442695, %v524_v46 }
 0x30d   :  { %v556_v44 = vpop.permute.xlu1 %555  ;;  %v519_v45 = vpop.xlane.xlu0 %518 }
 0x30e   :  { %4998 = vmatpush3.msra.mxu1 %v556_v44  ;;  %v525_v58 = vsub.f32 %v509_v34, %v519_v45 }
 0x30f   :  { %5007 = vmatprep.subr.mxu1 %v5710_v10 }
 0x310   :  { %v531_v59 = vmul.f32 1.442695, %v525_v58 }
 0x311   :  { %v522_v47 = vpop.xlane.xlu0 %521  ;;  %v708_v62 = vpop.permute.xlu1 %707 }
 0x312   :  { %v526_v48 = vsub.f32 %v510_v37, %v522_v47 }
 0x314   :  { %v5330_v49 = vpop.eup %5329  ;;  %v533_v51 = vmul.f32 1.442695, %v526_v48 }
 0x315   :  { %v632_v52 = vpop.permute.xlu0 %631  ;;  %v535_v53 = vsel %vm201_vm2, %v5330_v49, 0.0  ;;  %v784_v63 = vpop.permute.xlu1 %783 }
 0x316   :  { %5331 = vpow2.f32 %v533_v51  ;;  %536 = vadd.xlane.f32.xlu1 %v535_v53  ;;  %5003 = vmatpush3.msra.mxu0 %v632_v52 }
 0x317   :  { %5012 = vmatprep.subr.mxu0 %v5710_v10  ;;  %5333 = vpow2.f32 %v529_v50 }
 0x318   :  { %5335 = vpow2.f32 %v531_v59 }
 0x320   :  { %v5332_v54 = vpop.eup %5331 }
 0x321   :  { %v544_v55 = vsel %vm201_vm2, %v5332_v54, 0.0  ;;  %v5334_v56 = vpop.eup %5333 }
 0x322   :  { %545 = vadd.xlane.f32.xlu0 %v544_v55  ;;  %v538_v57 = vsel %vm201_vm2, %v5334_v56, 0.0  ;;  %v5336_v60 = vpop.eup %5335 }
 0x323   :  { %v541_v61 = vsel %vm201_vm2, %v5336_v60, 0.0 }
 0x326   :  { %539 = vadd.xlane.f32.xlu0 %v538_v57 }
 0x327   :  { %939 = vrot.lane.b32.xlu1 %v5865_v17, %s5714_s11 }
 0x32b   :  { %937 = vrot.lane.b32.xlu1 %v5865_v17, %s5715_s12 }
 0x33c   :  { %861 = vrot.lane.b32.xlu0 %v5861_v14, %s5714_s11 }
 0x340   :  { %859 = vrot.lane.b32.xlu0 %v5861_v14, %s5715_s12 }
 0x344   :  { %1017 = vrot.lane.b32.xlu0 %v5867_v18, %s5714_s11 }
 0x348   :  { %1015 = vrot.lane.b32.xlu0 %v5867_v18, %s5715_s12 }
 0x34f   :  { %542 = vadd.xlane.f32.xlu1 %v541_v61 }
 0x360   :  { %1095 = vrot.lane.b32.xlu1 %v5869_v19, %s5714_s11 }
 0x364   :  { %1093 = vrot.lane.b32.xlu1 %v5869_v19, %s5715_s12 }
 0x3a3   :  { %v537_v0 = vpop.xlane.xlu1 %536 }
 0x3a4   :  { %5337 = vrcp.f32 %v537_v0 }
 0x3a7   :  { %v940_v9 = vpop.permute.xlu1 %939 }
 0x3ab   :  { %v938_v11 = vpop.permute.xlu1 %937 }
 0x3ae   :  { %v5338_v1 = vpop.eup %5337 }
 0x3af   :  { %v546_v2 = vpop.xlane.xlu0 %545  ;;  %v551_v3 = vmul.f32 %v5338_v1, %v5330_v49 }
 0x3b1   :  { %5000 = vmatmul.mubr.msk.f32.vlgmr.msra.gmra.mrb[6].mxu1 %vm201_vm2, %v551_v3 }
 0x3b2   :  { %5008 = vmatpush3.msra.mxu1 %v708_v62  ;;  %5009 = vmatprep.mubr.msk.f32.mxu1 %vm5711_vm1, %v5710_v10 }
 0x3b3   :  { %v540_v4 = vpop.xlane.xlu0 %539  ;;  %5017 = vmatprep.subr.mxu1 %v5710_v10 }
 0x3b4   :  { %5339 = vrcp.f32 %v540_v4 }
 0x3b5   :  { %5341 = vrcp.f32 %v546_v2 }
 0x3b7   :  { %v862_v13 = vpop.permute.xlu0 %861 }
 0x3bb   :  { %v860_v20 = vpop.permute.xlu0 %859 }
 0x3be   :  { %v5340_v5 = vpop.eup %5339 }
 0x3bf   :  { %v552_v6 = vmul.f32 %v5340_v5, %v5334_v56  ;;  %v5342_v7 = vpop.eup %5341  ;;  %v1018_v23 = vpop.permute.xlu0 %1017 }
 0x3c0   :  { %v554_v8 = vmul.f32 %v5342_v7, %v5332_v54 }
 0x3c1   :  { %5005 = vmatmul.mubr.msk.f32.vlgmr.msra.gmra.mrb[6].mxu0 %vm201_vm2, %v552_v6 }
 0x3c2   :  { %5013 = vmatpush3.msra.mxu0 %v784_v63  ;;  %5014 = vmatprep.mubr.msk.f32.mxu0 %vm5711_vm1, %v5710_v10 }
 0x3c3   :  { %5022 = vmatprep.subr.mxu0 %v5710_v10  ;;  %v1016_v24 = vpop.permute.xlu0 %1015 }
 0x3c5   :  { %5015 = vmatmul.mubr.msk.f32.vlgmr.msra.gmra.mrb[8].mxu0 %vm201_vm2, %v554_v8 }
 0x3c6   :  { %5024 = vmatprep.mubr.msk.f32.mxu0 %vm5711_vm1, %v5710_v10 }
 0x3c9   :  { %5023 = vmatpush3.xpose.msk.msra.mxu0 %vm201_vm2, %v940_v9 }
 0x3ca   :  { %5032 = vmatprep.subr.mxu0 %v5710_v10 }
 0x3cc   :  { %5025 = vmatmul.mubr.msk.f32.vlgmr.msra.gmra.mrb[10].mxu0 %vm201_vm2, %v938_v11 }
 0x3cd   :  { %5034 = vmatprep.mubr.msk.f32.mxu0 %vm5711_vm1, %v5710_v10 }
 0x3dc   :  { %v543_v12 = vpop.xlane.xlu1 %542 }
 0x3dd   :  { %5343 = vrcp.f32 %v543_v12 }
 0x3e0   :  { %v1096_v15 = vpop.permute.xlu1 %1095 }
 0x3e1   :  { %5033 = vmatpush3.xpose.msk.msra.mxu0 %vm201_vm2, %v1096_v15 }
 0x3e2   :  { %5042 = vmatprep.subr.mxu0 %v5710_v10 }
 0x3e4   :  { %v1094_v16 = vpop.permute.xlu1 %1093 }
 0x3e5   :  { %5035 = vmatmul.mubr.msk.f32.vlgmr.msra.gmra.mrb[12].mxu0 %vm201_vm2, %v1094_v16 }
 0x3e6   :  { %5044 = vmatprep.mubr.msk.f32.mxu0 %vm5711_vm1, %v5710_v10 }
 0x3e7   :  { %v5344_v21 = vpop.eup %5343 }
 0x3e8   :  { %v553_v22 = vmul.f32 %v5344_v21, %v5336_v60 }
 0x3ea   :  { %5010 = vmatmul.mubr.msk.f32.vlgmr.msra.gmra.mrb[8].mxu1 %vm201_vm2, %v553_v22 }
 0x3eb   :  { %5018 = vmatpush3.xpose.msk.msra.mxu1 %vm201_vm2, %v862_v13  ;;  %5019 = vmatprep.mubr.msk.f32.mxu1 %vm5711_vm1, %v5710_v10 }
 0x3ec   :  { %5027 = vmatprep.subr.mxu1 %v5710_v10 }
 0x3ee   :  { %5020 = vmatmul.mubr.msk.f32.vlgmr.msra.gmra.mrb[10].mxu1 %vm201_vm2, %v860_v20 }
 0x3ef   :  { %5028 = vmatpush3.xpose.msk.msra.mxu1 %vm201_vm2, %v1018_v23  ;;  %5029 = vmatprep.mubr.msk.f32.mxu1 %vm5711_vm1, %v5710_v10 }
 0x3f0   :  { %5037 = vmatprep.subr.mxu1 %v5710_v10 }
 0x3f2   :  { %5030 = vmatmul.mubr.msk.f32.vlgmr.msra.gmra.mrb[12].mxu1 %vm201_vm2, %v1016_v24 }
 0x3f3   :  { %5039 = vmatprep.mubr.msk.f32.mxu1 %vm5711_vm1, %v5710_v10 }
 0x484   :  { %v5961_v25 = vpop.f32.mrb[6].mxu1 }
 0x485   :  { %v5001_v26 = vpop.f32.mrb[7].mxu1 }
 0x494   :  { %v5963_v27 = vpop.f32.mrb[6].mxu0 }
 0x495   :  { %v5006_v28 = vpop.f32.mrb[7].mxu0 }
 0x498   :  { %v5965_v29 = vpop.f32.mrb[8].mxu0 }
 0x499   :  { %v5016_v30 = vpop.f32.mrb[9].mxu0 }
 0x49f   :  { %v1011_v31 = vpop.f32.mrb[10].mxu0 }
 0x4a0   :  { %v1172_v32 = vmul.f32 0.35355338, %v1011_v31  ;;  %v5026_v33 = vpop.f32.mrb[11].mxu0 }
 0x4a2   :  { %v1178_v34 = vsel %vm201_vm2, %v1172_v32, -inf }
 0x4a3   :  { %1179 = vmax.xlane.f32.xlu1 %v1178_v34 }
 0x4b4   :  { %1219 = vrot.lane.b32.xlu1 %v5861_v14, %s5716_s13 }
 0x4b8   :  { %1371 = vrot.lane.b32.xlu1 %v5867_v18, %s5716_s13  ;;  %v1167_v35 = vpop.f32.mrb[12].mxu0 }
 0x4b9   :  { %v5036_v36 = vpop.f32.mrb[13].mxu0  ;;  %v1174_v46 = vmul.f32 0.35355338, %v1167_v35 }
 0x4bb   :  { %v1184_v48 = vsel %vm201_vm2, %v1174_v46, -inf }
 0x4bc   :  { %1447 = vrot.lane.b32.xlu1 %v5869_v19, %s5716_s13 }
 0x4bd   :  { %v5971_v37 = vpop.f32.mrb[8].mxu1 }
 0x4be   :  { %v5011_v38 = vpop.f32.mrb[9].mxu1 }
 0x4c0   :  { %1603 = vrot.lane.b32.xlu1 %v5865_v17, %s5717_s14 }
 0x4c1   :  { %v933_v39 = vpop.f32.mrb[10].mxu1 }
 0x4c2   :  { %v1171_v40 = vmul.f32 0.35355338, %v933_v39  ;;  %v5021_v41 = vpop.f32.mrb[11].mxu1 }
 0x4c4   :  { %v1175_v42 = vsel %vm201_vm2, %v1171_v40, -inf }
 0x4c5   :  { %1176 = vmax.xlane.f32.xlu0 %v1175_v42  ;;  %v1089_v43 = vpop.f32.mrb[12].mxu1 }
 0x4c6   :  { %v1173_v44 = vmul.f32 0.35355338, %v1089_v43  ;;  %v5031_v45 = vpop.f32.mrb[13].mxu1 }
 0x4c8   :  { %v1181_v47 = vsel %vm201_vm2, %v1173_v44, -inf }
 0x4c9   :  { %1182 = vmax.xlane.f32.xlu0 %v1181_v47 }
 0x4cd   :  { %1185 = vmax.xlane.f32.xlu0 %v1184_v48 }
 0x4e3   :  { %1295 = vrot.lane.b32.xlu0 %v5865_v17, %s5716_s13 }
 0x4e7   :  { %1525 = vrot.lane.b32.xlu0 %v5861_v14, %s5717_s14 }
 0x530   :  { %v1180_v49 = vpop.xlane.xlu1 %1179 }
 0x531   :  { %v1188_v50 = vsub.f32 %v1172_v32, %v1180_v49 }
 0x533   :  { %v1193_v51 = vmul.f32 1.442695, %v1188_v50 }
 0x534   :  { %v1220_v52 = vpop.permute.xlu1 %1219 }
 0x535   :  { %5345 = vpow2.f32 %v1193_v51  ;;  %5038 = vmatpush3.msra.mxu1 %v1220_v52 }
 0x536   :  { %5047 = vmatprep.subr.mxu1 %v5710_v10 }
 0x538   :  { %v1372_v9 = vpop.permute.xlu1 %1371 }
 0x53c   :  { %v1448_v13 = vpop.permute.xlu1 %1447 }
 0x53f   :  { %v5346_v53 = vpop.eup %5345 }
 0x540   :  { %v1202_v54 = vsel %vm201_vm2, %v5346_v53, 0.0  ;;  %v1604_v15 = vpop.permute.xlu1 %1603 }
 0x541   :  { %1203 = vadd.xlane.f32.xlu0 %v1202_v54 }
 0x552   :  { %v1177_v55 = vpop.xlane.xlu0 %1176 }
 0x553   :  { %v1187_v56 = vsub.f32 %v1171_v40, %v1177_v55 }
 0x555   :  { %v1191_v57 = vmul.f32 1.442695, %v1187_v56 }
 0x556   :  { %v1183_v58 = vpop.xlane.xlu0 %1182 }
 0x557   :  { %5347 = vpow2.f32 %v1191_v57  ;;  %v1189_v59 = vsub.f32 %v1173_v44, %v1183_v58 }
 0x559   :  { %v1195_v60 = vmul.f32 1.442695, %v1189_v59 }
 0x55a   :  { %v1186_v61 = vpop.xlane.xlu0 %1185 }
 0x55b   :  { %5349 = vpow2.f32 %v1195_v60  ;;  %v1190_v62 = vsub.f32 %v1174_v46, %v1186_v61 }
 0x55d   :  { %v1197_v63 = vmul.f32 1.442695, %v1190_v62 }
 0x55e   :  { %v1296_v0 = vpop.permute.xlu0 %1295 }
 0x55f   :  { %5351 = vpow2.f32 %v1197_v63  ;;  %5043 = vmatpush3.msra.mxu0 %v1296_v0 }
 0x560   :  { %5052 = vmatprep.subr.mxu0 %v5710_v10 }
 0x561   :  { %v5348_v1 = vpop.eup %5347 }
 0x562   :  { %v1199_v2 = vsel %vm201_vm2, %v5348_v1, 0.0  ;;  %v1526_v7 = vpop.permute.xlu0 %1525 }
 0x563   :  { %1200 = vadd.xlane.f32.xlu1 %v1199_v2 }
 0x565   :  { %v5350_v3 = vpop.eup %5349 }
 0x566   :  { %v1205_v4 = vsel %vm201_vm2, %v5350_v3, 0.0 }
 0x567   :  { %1206 = vadd.xlane.f32.xlu1 %v1205_v4 }
 0x569   :  { %v5352_v5 = vpop.eup %5351 }
 0x56a   :  { %v1208_v6 = vsel %vm201_vm2, %v5352_v5, 0.0 }
 0x56b   :  { %1209 = vadd.xlane.f32.xlu0 %v1208_v6 }
 0x578   :  { %1601 = vrot.lane.b32.xlu1 %v5865_v17, %s5718_s15 }
 0x57c   :  { %1759 = vrot.lane.b32.xlu1 %v5869_v19, %s5717_s14 }
 0x580   :  { %1757 = vrot.lane.b32.xlu1 %v5869_v19, %s5718_s15 }
 0x581   :  { %1523 = vrot.lane.b32.xlu0 %v5861_v14, %s5718_s15 }
 0x584   :  { %1883 = vrot.lane.b32.xlu1 %v5861_v14, %s5719_s16 }
 0x585   :  { %1681 = vrot.lane.b32.xlu0 %v5867_v18, %s5717_s14 }
 0x588   :  { %2035 = vrot.lane.b32.xlu1 %v5867_v18, %s5719_s16 }
 0x589   :  { %1679 = vrot.lane.b32.xlu0 %v5867_v18, %s5718_s15 }
 0x58c   :  { %2111 = vrot.lane.b32.xlu1 %v5869_v19, %s5719_s16 }
 0x58d   :  { %1959 = vrot.lane.b32.xlu0 %v5865_v17, %s5719_s16 }
 0x5ce   :  { %v1204_v8 = vpop.xlane.xlu0 %1203 }
 0x5cf   :  { %5353 = vrcp.f32 %v1204_v8 }
 0x5d9   :  { %v5354_v11 = vpop.eup %5353 }
 0x5da   :  { %v1216_v12 = vmul.f32 %v5354_v11, %v5346_v53 }
 0x5dc   :  { %5045 = vmatmul.mubr.msk.f32.vlgmr.msra.gmra.mrb[14].mxu0 %vm201_vm2, %v1216_v12 }
 0x5dd   :  { %5053 = vmatpush3.msra.mxu0 %v1448_v13  ;;  %5054 = vmatprep.mubr.msk.f32.mxu0 %vm5711_vm1, %v5710_v10 }
 0x5de   :  { %5062 = vmatprep.subr.mxu0 %v5710_v10 }
 0x5f0   :  { %v1201_v16 = vpop.xlane.xlu1 %1200 }
 0x5f1   :  { %5355 = vrcp.f32 %v1201_v16 }
 0x5f4   :  { %v1207_v20 = vpop.xlane.xlu1 %1206 }
 0x5f5   :  { %5357 = vrcp.f32 %v1207_v20 }
 0x5f8   :  { %v1210_v21 = vpop.xlane.xlu0 %1209  ;;  %v1602_v23 = vpop.permute.xlu1 %1601 }
 0x5f9   :  { %5359 = vrcp.f32 %v1210_v21 }
 0x5fb   :  { %v5356_v22 = vpop.eup %5355 }
 0x5fc   :  { %v1524_v24 = vpop.permute.xlu0 %1523  ;;  %v1215_v26 = vmul.f32 %v5356_v22, %v5348_v1  ;;  %v1760_v31 = vpop.permute.xlu1 %1759 }
 0x5fe   :  { %5040 = vmatmul.mubr.msk.f32.vlgmr.msra.gmra.mrb[14].mxu1 %vm201_vm2, %v1215_v26 }
 0x5ff   :  { %v5358_v28 = vpop.eup %5357  ;;  %5048 = vmatpush3.msra.mxu1 %v1372_v9  ;;  %5049 = vmatprep.mubr.msk.f32.mxu1 %vm5711_vm1, %v5710_v10 }
 0x600   :  { %v1217_v30 = vmul.f32 %v5358_v28, %v5350_v3  ;;  %5057 = vmatprep.subr.mxu1 %v5710_v10  ;;  %v1682_v32 = vpop.permute.xlu0 %1681  ;;  %v1758_v35 = vpop.permute.xlu1 %1757 }
 0x602   :  { %5050 = vmatmul.mubr.msk.f32.vlgmr.msra.gmra.mrb[16].mxu1 %vm201_vm2, %v1217_v30 }
 0x603   :  { %v5360_v33 = vpop.eup %5359  ;;  %5059 = vmatprep.mubr.msk.f32.mxu1 %vm5711_vm1, %v5710_v10 }
 0x604   :  { %v1218_v34 = vmul.f32 %v5360_v33, %v5352_v5  ;;  %v1680_v36 = vpop.permute.xlu0 %1679  ;;  %v1884_v38 = vpop.permute.xlu1 %1883 }
 0x606   :  { %5058 = vmatpush3.xpose.msk.msra.mxu1 %vm201_vm2, %v1526_v7  ;;  %5055 = vmatmul.mubr.msk.f32.vlgmr.msra.gmra.mrb[16].mxu0 %vm201_vm2, %v1218_v34 }
 0x607   :  { %5063 = vmatpush3.xpose.msk.msra.mxu0 %vm201_vm2, %v1604_v15  ;;  %5067 = vmatprep.subr.mxu1 %v5710_v10 }
 0x608   :  { %5064 = vmatprep.mubr.msk.f32.mxu0 %vm5711_vm1, %v5710_v10  ;;  %5072 = vmatprep.subr.mxu0 %v5710_v10  ;;  %v1960_v39 = vpop.permute.xlu0 %1959  ;;  %v2036_v0 = vpop.permute.xlu1 %2035 }
 0x609   :  { %5060 = vmatmul.mubr.msk.f32.vlgmr.msra.gmra.mrb[18].mxu1 %vm201_vm2, %v1524_v24 }
 0x60a   :  { %5068 = vmatpush3.xpose.msk.msra.mxu1 %vm201_vm2, %v1682_v32  ;;  %5065 = vmatmul.mubr.msk.f32.vlgmr.msra.gmra.mrb[18].mxu0 %vm201_vm2, %v1602_v23 }
 0x60b   :  { %5073 = vmatpush3.xpose.msk.msra.mxu0 %vm201_vm2, %v1760_v31  ;;  %5069 = vmatprep.mubr.msk.f32.mxu1 %vm5711_vm1, %v5710_v10 }
 0x60c   :  { %5077 = vmatprep.subr.mxu1 %v5710_v10  ;;  %5074 = vmatprep.mubr.msk.f32.mxu0 %vm5711_vm1, %v5710_v10  ;;  %v2112_v1 = vpop.permute.xlu1 %2111 }
 0x60d   :  { %5070 = vmatmul.mubr.msk.f32.vlgmr.msra.gmra.mrb[20].mxu1 %vm201_vm2, %v1680_v36  ;;  %5082 = vmatprep.subr.mxu0 %v5710_v10 }
 0x60e   :  { %5078 = vmatpush3.msra.mxu1 %v1884_v38  ;;  %5075 = vmatmul.mubr.msk.f32.vlgmr.msra.gmra.mrb[20].mxu0 %vm201_vm2, %v1758_v35 }
 0x60f   :  { %5083 = vmatpush3.msra.mxu0 %v1960_v39  ;;  %5079 = vmatprep.mubr.msk.f32.mxu1 %vm5711_vm1, %v5710_v10 }
 0x610   :  { %5087 = vmatprep.subr.mxu1 %v5710_v10  ;;  %5084 = vmatprep.mubr.msk.f32.mxu0 %vm5711_vm1, %v5710_v10 }
 0x611   :  { %5092 = vmatprep.subr.mxu0 %v5710_v10 }
 0x6af   :  { %v6035_v40 = vpop.f32.mrb[14].mxu0 }
 0x6b0   :  { %v5046_v41 = vpop.f32.mrb[15].mxu0 }
 0x6d1   :  { %v6037_v42 = vpop.f32.mrb[14].mxu1 }
 0x6d2   :  { %v5041_v43 = vpop.f32.mrb[15].mxu1 }
 0x6d5   :  { %v6039_v44 = vpop.f32.mrb[16].mxu1 }
 0x6d6   :  { %v5051_v45 = vpop.f32.mrb[17].mxu1 }
 0x6d9   :  { %v6041_v46 = vpop.f32.mrb[16].mxu0 }
 0x6da   :  { %v5056_v47 = vpop.f32.mrb[17].mxu0 }
 0x6dc   :  { %v1597_v48 = vpop.f32.mrb[18].mxu1 }
 0x6dd   :  { %v1835_v49 = vmul.f32 0.35355338, %v1597_v48  ;;  %v5061_v50 = vpop.f32.mrb[19].mxu1  ;;  %v1675_v51 = vpop.f32.mrb[18].mxu0 }
 0x6de   :  { %v1836_v52 = vmul.f32 0.35355338, %v1675_v51  ;;  %v5066_v53 = vpop.f32.mrb[19].mxu0 }
 0x6df   :  { %v1839_v54 = vsel %vm201_vm2, %v1835_v49, -inf }
 0x6e0   :  { %1840 = vmax.xlane.f32.xlu0 %v1839_v54  ;;  %v1753_v55 = vpop.f32.mrb[20].mxu1  ;;  %v1842_v56 = vsel %vm201_vm2, %v1836_v52, -inf }
 0x6e1   :  { %v1837_v57 = vmul.f32 0.35355338, %v1753_v55  ;;  %v5071_v58 = vpop.f32.mrb[21].mxu1  ;;  %1843 = vmax.xlane.f32.xlu1 %v1842_v56  ;;  %v1831_v59 = vpop.f32.mrb[20].mxu0 }
 0x6e2   :  { %v5076_v60 = vpop.f32.mrb[21].mxu0  ;;  %v1838_v61 = vmul.f32 0.35355338, %v1831_v59 }
 0x6e3   :  { %v1845_v62 = vsel %vm201_vm2, %v1837_v57, -inf }
 0x6e4   :  { %1846 = vmax.xlane.f32.xlu0 %v1845_v62  ;;  %v1848_v63 = vsel %vm201_vm2, %v1838_v61, -inf }
 0x6e8   :  { %1849 = vmax.xlane.f32.xlu0 %v1848_v63 }
 0x6f2   :  { %2267 = vrot.lane.b32.xlu1 %v5865_v17, %s5720_s19 }
 0x6fe   :  { %2189 = vrot.lane.b32.xlu0 %v5861_v14, %s5720_s19 }
 0x76d   :  { %v1841_v2 = vpop.xlane.xlu0 %1840 }
 0x76e   :  { %v1851_v3 = vsub.f32 %v1835_v49, %v1841_v2  ;;  %v1844_v4 = vpop.xlane.xlu1 %1843 }
 0x76f   :  { %v1852_v5 = vsub.f32 %v1836_v52, %v1844_v4 }
 0x770   :  { %v1855_v6 = vmul.f32 1.442695, %v1851_v3 }
 0x771   :  { %v1857_v7 = vmul.f32 1.442695, %v1852_v5  ;;  %v1847_v13 = vpop.xlane.xlu0 %1846 }
 0x772   :  { %5361 = vpow2.f32 %v1855_v6  ;;  %v1853_v16 = vsub.f32 %v1837_v57, %v1847_v13  ;;  %v2268_v30 = vpop.permute.xlu1 %2267 }
 0x773   :  { %5363 = vpow2.f32 %v1857_v7 }
 0x774   :  { %v1859_v21 = vmul.f32 1.442695, %v1853_v16 }
 0x775   :  { %v1850_v15 = vpop.xlane.xlu0 %1849 }
 0x776   :  { %v1854_v20 = vsub.f32 %v1838_v61, %v1850_v15  ;;  %5365 = vpow2.f32 %v1859_v21 }
 0x778   :  { %v1861_v22 = vmul.f32 1.442695, %v1854_v20 }
 0x779   :  { %v2190_v31 = vpop.permute.xlu0 %2189 }
 0x77a   :  { %5367 = vpow2.f32 %v1861_v22 }
 0x77c   :  { %v5362_v8 = vpop.eup %5361 }
 0x77d   :  { %v5364_v9 = vpop.eup %5363  ;;  %v1863_v11 = vsel %vm201_vm2, %v5362_v8, 0.0 }
 0x77e   :  { %1864 = vadd.xlane.f32.xlu1 %v1863_v11  ;;  %v1866_v12 = vsel %vm201_vm2, %v5364_v9, 0.0 }
 0x77f   :  { %1867 = vadd.xlane.f32.xlu0 %v1866_v12 }
 0x780   :  { %v5366_v23 = vpop.eup %5365 }
 0x781   :  { %v1869_v26 = vsel %vm201_vm2, %v5366_v23, 0.0 }
 0x784   :  { %v5368_v24 = vpop.eup %5367 }
 0x785   :  { %v1872_v28 = vsel %vm201_vm2, %v5368_v24, 0.0 }
 0x78f   :  { %2265 = vrot.lane.b32.xlu1 %v5865_v17, %s5721_s20 }
 0x795   :  { %2187 = vrot.lane.b32.xlu0 %v5861_v14, %s5721_s20 }
 0x7b3   :  { %1870 = vadd.xlane.f32.xlu1 %v1869_v26 }
 0x7b4   :  { %1873 = vadd.xlane.f32.xlu0 %v1872_v28 }
 0x7c4   :  { %2423 = vrot.lane.b32.xlu1 %v5869_v19, %s5720_s19 }
 0x7c8   :  { %2421 = vrot.lane.b32.xlu1 %v5869_v19, %s5721_s20 }
 0x7ca   :  { %2345 = vrot.lane.b32.xlu0 %v5867_v18, %s5720_s19 }
 0x7ce   :  { %2343 = vrot.lane.b32.xlu0 %v5867_v18, %s5721_s20 }
 0x80b   :  { %v1865_v32 = vpop.xlane.xlu1 %1864 }
 0x80c   :  { %5369 = vrcp.f32 %v1865_v32  ;;  %v1868_v33 = vpop.xlane.xlu0 %1867 }
 0x80d   :  { %5371 = vrcp.f32 %v1868_v33 }
 0x80f   :  { %v2266_v39 = vpop.permute.xlu1 %2265 }
 0x810   :  { %v2188_v41 = vpop.permute.xlu0 %2187 }
 0x816   :  { %v5370_v34 = vpop.eup %5369 }
 0x817   :  { %v5372_v35 = vpop.eup %5371  ;;  %v1879_v36 = vmul.f32 %v5370_v34, %v5362_v8 }
 0x818   :  { %v1880_v38 = vmul.f32 %v5372_v35, %v5364_v9 }
 0x819   :  { %5080 = vmatmul.mubr.msk.f32.vlgmr.msra.gmra.mrb[22].mxu1 %vm201_vm2, %v1879_v36 }
 0x81a   :  { %5088 = vmatpush3.msra.mxu1 %v2036_v0  ;;  %5085 = vmatmul.mubr.msk.f32.vlgmr.msra.gmra.mrb[22].mxu0 %vm201_vm2, %v1880_v38 }
 0x81b   :  { %5093 = vmatpush3.msra.mxu0 %v2112_v1  ;;  %5089 = vmatprep.mubr.msk.f32.mxu1 %vm5711_vm1, %v5710_v10 }
 0x81c   :  { %5097 = vmatprep.subr.mxu1 %v5710_v10  ;;  %5094 = vmatprep.mubr.msk.f32.mxu0 %vm5711_vm1, %v5710_v10 }
 0x81d   :  { %5102 = vmatprep.subr.mxu0 %v5710_v10 }
 0x840   :  { %v1871_v43 = vpop.xlane.xlu1 %1870 }
 0x841   :  { %5373 = vrcp.f32 %v1871_v43  ;;  %v1874_v45 = vpop.xlane.xlu0 %1873 }
 0x842   :  { %5375 = vrcp.f32 %v1874_v45 }
 0x844   :  { %v2424_v52 = vpop.permute.xlu1 %2423 }
 0x845   :  { %v2346_v51 = vpop.permute.xlu0 %2345 }
 0x848   :  { %v2422_v54 = vpop.permute.xlu1 %2421 }
 0x849   :  { %v2344_v53 = vpop.permute.xlu0 %2343 }
 0x84b   :  { %v5374_v47 = vpop.eup %5373 }
 0x84c   :  { %v5376_v48 = vpop.eup %5375  ;;  %v1881_v49 = vmul.f32 %v5374_v47, %v5366_v23 }
 0x84d   :  { %v1882_v50 = vmul.f32 %v5376_v48, %v5368_v24 }
 0x84e   :  { %5090 = vmatmul.mubr.msk.f32.vlgmr.msra.gmra.mrb[24].mxu1 %vm201_vm2, %v1881_v49 }
 0x84f   :  { %5098 = vmatpush3.xpose.msk.msra.mxu1 %vm201_vm2, %v2190_v31  ;;  %5095 = vmatmul.mubr.msk.f32.vlgmr.msra.gmra.mrb[24].mxu0 %vm201_vm2, %v1882_v50 }
 0x850   :  { %5103 = vmatpush3.xpose.msk.msra.mxu0 %vm201_vm2, %v2268_v30  ;;  %5099 = vmatprep.mubr.msk.f32.mxu1 %vm5711_vm1, %v5710_v10 }
 0x851   :  { %5107 = vmatprep.subr.mxu1 %v5710_v10  ;;  %5104 = vmatprep.mubr.msk.f32.mxu0 %vm5711_vm1, %v5710_v10 }
 0x852   :  { %5100 = vmatmul.mubr.msk.f32.vlgmr.msra.gmra.mrb[26].mxu1 %vm201_vm2, %v2188_v41  ;;  %5112 = vmatprep.subr.mxu0 %v5710_v10 }
 0x853   :  { %5108 = vmatpush3.xpose.msk.msra.mxu1 %vm201_vm2, %v2346_v51  ;;  %5105 = vmatmul.mubr.msk.f32.vlgmr.msra.gmra.mrb[26].mxu0 %vm201_vm2, %v2266_v39 }
 0x854   :  { %5113 = vmatpush3.xpose.msk.msra.mxu0 %vm201_vm2, %v2424_v52  ;;  %5109 = vmatprep.mubr.msk.f32.mxu1 %vm5711_vm1, %v5710_v10 }
 0x855   :  { %5114 = vmatprep.mubr.msk.f32.mxu0 %vm5711_vm1, %v5710_v10  ;;  %5117 = vmatprep.subr.mxu1 %v5710_v10 }
 0x856   :  { %5110 = vmatmul.mubr.msk.f32.vlgmr.msra.gmra.mrb[28].mxu1 %vm201_vm2, %v2344_v53  ;;  %5122 = vmatprep.subr.mxu0 %v5710_v10 }
 0x857   :  { %5115 = vmatmul.mubr.msk.f32.vlgmr.msra.gmra.mrb[28].mxu0 %vm201_vm2, %v2422_v54  ;;  %5119 = vmatprep.mubr.msk.f32.mxu1 %vm5711_vm1, %v5710_v10 }
 0x858   :  { %5124 = vmatprep.mubr.msk.f32.mxu0 %vm5711_vm1, %v5710_v10 }
 0x8ec   :  { %v6097_v55 = vpop.f32.mrb[22].mxu1 }
 0x8ed   :  { %v5081_v56 = vpop.f32.mrb[23].mxu1  ;;  %v6099_v57 = vpop.f32.mrb[22].mxu0 }
 0x8ee   :  { %v5086_v58 = vpop.f32.mrb[23].mxu0  ;;  %v3021_v56 = vld [vmem:[#allocation8] sm:$0xff] }
 0x8ef   :  { %v3023_v58 = vld [vmem:[#allocation8 + $0x10] sm:$0xff] }
 0x921   :  { %v6101_v59 = vpop.f32.mrb[24].mxu1 }
 0x922   :  { %v5091_v60 = vpop.f32.mrb[25].mxu1  ;;  %v6103_v61 = vpop.f32.mrb[24].mxu0 }
 0x923   :  { %v5096_v62 = vpop.f32.mrb[25].mxu0 }
 0x924   :  { %v2913_v62 = vld [vmem:[#allocation7] sm:$0xff] }
 0x925   :  { %v2261_v63 = vpop.f32.mrb[26].mxu1 }
 0x926   :  { %v2499_v0 = vmul.f32 0.35355338, %v2261_v63  ;;  %v5101_v1 = vpop.f32.mrb[27].mxu1  ;;  %v2339_v2 = vpop.f32.mrb[26].mxu0  ;;  %v2914_v63 = vld [vmem:[#allocation7 + $0x8] sm:$0xff] }
 0x927   :  { %v2500_v3 = vmul.f32 0.35355338, %v2339_v2  ;;  %v5106_v4 = vpop.f32.mrb[27].mxu0  ;;  %v2915_v1 = vld [vmem:[#allocation7 + $0x10] sm:$0xff]  ;;  %v2916_v2 = vld [vmem:[#allocation7 + $0x18] sm:$0xff] }
 0x928   :  { %v2503_v5 = vsel %vm201_vm2, %v2499_v0, -inf  ;;  %v5251_v4 = vpack.c.bf16 %v2916_v2, %v2915_v1 }
 0x929   :  { %2504 = vmax.xlane.f32.xlu0 %v2503_v5  ;;  %v2417_v6 = vpop.f32.mrb[28].mxu1  ;;  %v2506_v7 = vsel %vm201_vm2, %v2500_v3, -inf }
 0x92a   :  { %v2501_v8 = vmul.f32 0.35355338, %v2417_v6  ;;  %v5111_v9 = vpop.f32.mrb[29].mxu1  ;;  %2507 = vmax.xlane.f32.xlu1 %v2506_v7  ;;  %v2495_v11 = vpop.f32.mrb[28].mxu0 }
 0x92b   :  { %v5116_v12 = vpop.f32.mrb[29].mxu0  ;;  %v2502_v13 = vmul.f32 0.35355338, %v2495_v11 }
 0x92c   :  { %v2509_v15 = vsel %vm201_vm2, %v2501_v8, -inf }
 0x92d   :  { %2510 = vmax.xlane.f32.xlu0 %v2509_v15  ;;  %v2512_v16 = vsel %vm201_vm2, %v2502_v13, -inf }
 0x931   :  { %2513 = vmax.xlane.f32.xlu0 %v2512_v16 }
 0x93b   :  { %2547 = vrot.lane.b32.xlu1 %v5861_v14, %s5722_s21 }
 0x9b6   :  { %v2505_v20 = vpop.xlane.xlu0 %2504 }
 0x9b7   :  { %v2515_v21 = vsub.f32 %v2499_v0, %v2505_v20  ;;  %v2508_v22 = vpop.xlane.xlu1 %2507  ;;  %v5247_v0 = vpack.c.bf16 %v2914_v63, %v2913_v62 }
 0x9b8   :  { %v2516_v23 = vsub.f32 %v2500_v3, %v2508_v22  ;;  %v6165_v22 = vld [vmem:[%s6585_s7] ss:$0 sm:$0xff] }
 0x9b9   :  { %v2519_v24 = vmul.f32 1.442695, %v2515_v21 }
 0x9ba   :  { %v2521_v26 = vmul.f32 1.442695, %v2516_v23  ;;  %v2511_v28 = vpop.xlane.xlu0 %2510 }
 0x9bb   :  { %5377 = vpow2.f32 %v2519_v24  ;;  %v2517_v30 = vsub.f32 %v2501_v8, %v2511_v28  ;;  %v2548_v31 = vpop.permute.xlu1 %2547 }
 0x9bc   :  { %5379 = vpow2.f32 %v2521_v26  ;;  %5118 = vmatpush3.msra.mxu1 %v2548_v31 }
 0x9bd   :  { %v2523_v32 = vmul.f32 1.442695, %v2517_v30  ;;  %5127 = vmatprep.subr.mxu1 %v5710_v10 }
 0x9be   :  { %v2514_v33 = vpop.xlane.xlu0 %2513 }
 0x9bf   :  { %5381 = vpow2.f32 %v2523_v32  ;;  %v2518_v34 = vsub.f32 %v2502_v13, %v2514_v33 }
 0x9c1   :  { %v2525_v35 = vmul.f32 1.442695, %v2518_v34 }
 0x9c3   :  { %5383 = vpow2.f32 %v2525_v35 }
 0x9c5   :  { %v5378_v14 = vpop.eup %5377 }
 0x9c6   :  { %v5380_v36 = vpop.eup %5379  ;;  %v2527_v38 = vsel %vm201_vm2, %v5378_v14, 0.0 }
 0x9c7   :  { %2528 = vadd.xlane.f32.xlu1 %v2527_v38  ;;  %v2530_v39 = vsel %vm201_vm2, %v5380_v36, 0.0 }
 0x9c8   :  { %2531 = vadd.xlane.f32.xlu0 %v2530_v39 }
 0x9c9   :  { %v5382_v41 = vpop.eup %5381 }
 0x9ca   :  { %v2533_v43 = vsel %vm201_vm2, %v5382_v41, 0.0 }
 0x9cb   :  { %2534 = vadd.xlane.f32.xlu1 %v2533_v43 }
 0x9cd   :  { %v5384_v45 = vpop.eup %5383 }
 0x9ce   :  { %v2536_v47 = vsel %vm201_vm2, %v5384_v45, 0.0 }
 0x9cf   :  { %2537 = vadd.xlane.f32.xlu0 %v2536_v47 }
 0x9dc   :  { %2699 = vrot.lane.b32.xlu1 %v5867_v18, %s5722_s21 }
 0x9e0   :  { %2775 = vrot.lane.b32.xlu1 %v5869_v19, %s5722_s21 }
 0x9e4   :  { %2857 = vrot.lane.b32.xlu1 %v6035_v40, %s5707_s18 }
 0x9e5   :  { %2623 = vrot.lane.b32.xlu0 %v5865_v17, %s5722_s21 }
 0x9e8   :  { %2873 = vrot.lane.b32.xlu1 %v6099_v57, %s5723_s1  ;;  %v3022_v57 = vld [vmem:[#allocation8 + $0x8] sm:$0xff] }
 0x9e9   :  { %2855 = vrot.lane.b32.xlu0 %v6037_v42, %s5707_s18  ;;  %v6146_v60 = vpack.c.bf16 %v3022_v57, %v3021_v56 }
 0x9ec   :  { %2861 = vrot.lane.b32.xlu1 %v6041_v46, %s5707_s18 }
 0x9ed   :  { %2871 = vrot.lane.b32.xlu0 %v6097_v55, %s5723_s1 }
 0x9f0   :  { %2877 = vrot.lane.b32.xlu1 %v6103_v61, %s5723_s1  ;;  %v3024_v61 = vld [vmem:[#allocation8 + $0x18] sm:$0xff] }
 0x9f1   :  { %2859 = vrot.lane.b32.xlu0 %v6039_v44, %s5707_s18  ;;  %v6149_v3 = vpack.c.bf16 %v3024_v61, %v3023_v58  ;;  %s5725_s18 = smov 24  }
 0x9f5   :  { %2875 = vrot.lane.b32.xlu0 %v6101_v59, %s5723_s1  ;;  %v5724_v59 = vmov 0.0|0.0  }
 0xa54   :  { %v2529_v18 = vpop.xlane.xlu1 %2528 }
 0xa55   :  { %5385 = vrcp.f32 %v2529_v18  ;;  %v2532_v17 = vpop.xlane.xlu0 %2531 }
 0xa56   :  { %5387 = vrcp.f32 %v2532_v17 }
 0xa58   :  { %v2535_v19 = vpop.xlane.xlu1 %2534 }
 0xa59   :  { %5389 = vrcp.f32 %v2535_v19 }
 0xa5c   :  { %v2538_v40 = vpop.xlane.xlu0 %2537  ;;  %v2700_v42 = vpop.permute.xlu1 %2699 }
 0xa5d   :  { %5391 = vrcp.f32 %v2538_v40 }
 0xa5f   :  { %v5386_v48 = vpop.eup %5385 }
 0xa60   :  { %v5388_v46 = vpop.eup %5387  ;;  %v2624_v49 = vpop.permute.xlu0 %2623  ;;  %v2543_v50 = vmul.f32 %v5386_v48, %v5378_v14  ;;  %v4798_v48 = vld [vmem:[%s6584_s6] ss:$0 sm:$0xff] }
 0xa61   :  { %5123 = vmatpush3.msra.mxu0 %v2624_v49  ;;  %v2544_v51 = vmul.f32 %v5388_v46, %v5380_v36  ;;  %v2776_v52 = vpop.permute.xlu1 %2775 }
 0xa62   :  { %5120 = vmatmul.mubr.msk.f32.vlgmr.msra.gmra.mrb[30].mxu1 %vm201_vm2, %v2543_v50  ;;  %5132 = vmatprep.subr.mxu0 %v5710_v10 }
 0xa63   :  { %v5390_v44 = vpop.eup %5389  ;;  %5128 = vmatpush3.msra.mxu1 %v2700_v42  ;;  %5125 = vmatmul.mubr.msk.f32.vlgmr.msra.gmra.mrb[30].mxu0 %vm201_vm2, %v2544_v51 }
 0xa64   :  { %5133 = vmatpush3.msra.mxu0 %v2776_v52  ;;  %5129 = vmatprep.mubr.msk.f32.mxu1 %vm5711_vm1, %v5710_v10  ;;  %v2545_v53 = vmul.f32 %v5390_v44, %v5382_v41  ;;  %v2856_v15 = vpop.permute.xlu0 %2855 }
 0xa65   :  { %5134 = vmatprep.mubr.msk.f32.mxu0 %vm5711_vm1, %v5710_v10  ;;  %5255 = vmatprep.subr.bf16.mxu0 %v5724_v59  ;;  %v2858_v16 = vpop.permute.xlu1 %2857  ;;  %v2899_v14 = vsel %vm201_vm2, %v5961_v25, %v2856_v15 }
 0xa66   :  { %5130 = vmatmul.mubr.msk.f32.vlgmr.msra.gmra.mrb[32].mxu1 %vm201_vm2, %v2545_v53  ;;  %5248 = vmatprep.subr.bf16.mxu1 %v5247_v0  ;;  %v2900_v36 = vsel %vm201_vm2, %v5963_v27, %v2858_v16 }
 0xa67   :  { %v5392_v54 = vpop.eup %5391  ;;  %5250 = vmatpush3.bf16.msra.mxu1 %v5247_v0 }
 0xa68   :  { %v2546_v55 = vmul.f32 %v5392_v54, %v5384_v45  ;;  %5252 = vmatprep.subr.bf16.mxu1 %v5251_v4  ;;  %v2872_v20 = vpop.permute.xlu0 %2871 }
 0xa69   :  { %v2874_v21 = vpop.permute.xlu1 %2873  ;;  %v2904_v38 = vsel %vm2903_vm3, %v2899_v14, %v2872_v20 }
 0xa6a   :  { %5135 = vmatmul.mubr.msk.f32.vlgmr.msra.gmra.mrb[32].mxu0 %vm201_vm2, %v2546_v55  ;;  %v2905_v41 = vsel %vm2903_vm3, %v2900_v36, %v2874_v21 }
 0xa6b   :  { %5159 = vmatprep.mubr.msk.f32.mxu0 %vm5711_vm1, %v5710_v10  ;;  %5257 = vmatpush3.bf16.msra.mxu0 %v6146_v60 }
 0xa6c   :  { %5258 = vmatprep.subr.bf16.mxu0 %v5724_v59  ;;  %5254 = vmatpush3.bf16.msra.mxu1 %v5251_v4  ;;  %v2860_v28 = vpop.permute.xlu0 %2859 }
 0xa6d   :  { %5261 = vmatprep.subr.bf16.mxu1 %v5724_v59  ;;  %v2862_v32 = vpop.permute.xlu1 %2861  ;;  %v2901_v18 = vsel %vm201_vm2, %v5971_v37, %v2860_v28 }
 0xa6e   :  { %v2902_v19 = vsel %vm201_vm2, %v5965_v29, %v2862_v32 }
 0xa6f   :  { %5260 = vmatpush3.bf16.msra.mxu0 %v6149_v3 }
 0xa70   :  { %5267 = vmatprep.subr.bf16.mxu0 %v5724_v59  ;;  %v2876_v34 = vpop.permute.xlu0 %2875 }
 0xa71   :  { %v2878_v35 = vpop.permute.xlu1 %2877  ;;  %v2906_v25 = vsel %vm2903_vm3, %v2901_v18, %v2876_v34  ;;  %v5726_v34 = vmov 0  }
 0xa72   :  { %5160 = vmatmul.mubr.f32.vlgmr.msra.gmra.mrb[34].mxu0 %v5710_v10  ;;  %v2907_v40 = vsel %vm2903_vm3, %v2902_v19, %v2878_v35  ;;  %5328 = vset.pattern.permute.xlu0 %v5726_v34 }
 0xa73   :  { %5269 = vmatpush3.bf16.msra.mxu0 %v6146_v60  ;;  %5181 = vmatprep.mubr.msk.f32.mxu0 %vm5711_vm1, %v5710_v10 }
 0xa74   :  { %5270 = vmatprep.subr.bf16.mxu0 %v5724_v59 }
 0xa77   :  { %5272 = vmatpush3.bf16.msra.mxu0 %v6149_v3 }
 0xa78   :  { %5279 = vmatprep.subr.bf16.mxu0 %v5724_v59 }
 0xb35   :  { %v2619_v5 = vpop.f32.mrb[30].mxu1 }
 0xb36   :  { %v5121_v6 = vpop.f32.mrb[31].mxu1  ;;  %2887 = vrot.lane.b32.xlu0 %v2619_v5, %s5725_s18  ;;  %v2695_v7 = vpop.f32.mrb[30].mxu0 }
 0xb37   :  { %2889 = vrot.lane.b32.xlu1 %v2695_v7, %s5725_s18  ;;  %v5126_v8 = vpop.f32.mrb[31].mxu0 }
 0xb39   :  { %v2771_v9 = vpop.f32.mrb[32].mxu1 }
 0xb3a   :  { %v5131_v11 = vpop.f32.mrb[33].mxu1  ;;  %2891 = vrot.lane.b32.xlu0 %v2771_v9, %s5725_s18 }
 0xb3d   :  { %v2847_v12 = vpop.f32.mrb[32].mxu0 }
 0xb3e   :  { %2893 = vrot.lane.b32.xlu1 %v2847_v12, %s5725_s18  ;;  %v5136_v13 = vpop.f32.mrb[33].mxu0 }
 0xb45   :  { %v3107_v23 = vpop.f32.mrb[34].mxu0 }
 0xb46   :  { %v3108_v24 = vadd.f32 %v6165_v22, %v3107_v23  ;;  %v5161_v26 = vpop.f32.mrb[35].mxu0 }
 0xb48   :  { %v3112_v30 = vrot.slane %v3108_v24, 1  ;;  %v3113_v31 = vrot.slane %v3108_v24, 2  ;;  %v3114_v33 = vrot.slane %v3108_v24, 3 }
 0xb4a   :  { %3149 = vrot.lane.b32.xlu0 %v3112_v30, %s5713_s3  ;;  %3151 = vrot.lane.b32.xlu1 %v3113_v31, %s5713_s3 }
 0xb4e   :  { %3147 = vrot.lane.b32.xlu0 %v3108_v24, %s5713_s3  ;;  %3153 = vrot.lane.b32.xlu1 %v3114_v33, %s5713_s3 }
 0xba8   :  { %v2888_v39 = vpop.permute.xlu0 %2887 }
 0xba9   :  { %v2909_v43 = vsel %vm2908_vm4, %v2904_v38, %v2888_v39  ;;  %v2890_v45 = vpop.permute.xlu1 %2889 }
 0xbaa   :  { %v2910_v47 = vsel %vm2908_vm4, %v2905_v41, %v2890_v45  ;;  %5145 = vmatprep.mubr.msk.f32.mxu1 %vm100_vm0, %v2909_v43  ;;  %v3026_v41 = vld [vmem:[%s6578_s0] sm:$0xf]  ;;  %s5727_s0 = smov 32  }
 0xbab   :  { %5146 = vmatmul.mubr.msk.f32.vlgmr.msra.gmra.mrb[34].mxu1 %vm100_vm0, %v2910_v47  ;;  %vm3027_vm5 = vcmp.gt.s32.totalorder %v3026_v41, 1 }
 0xbac   :  { %v2892_v27 = vpop.permute.xlu0 %2891  ;;  %5263 = vmatpush3.bf16.msra.mxu1 %v6146_v60  ;;  %v3028_v45 = vsel %vm3027_vm5, %v3026_v41, 1 }
 0xbad   :  { %v2911_v17 = vsel %vm2908_vm4, %v2906_v25, %v2892_v27  ;;  %5264 = vmatprep.subr.bf16.mxu1 %v5724_v59 }
 0xbae   :  { %5148 = vmatprep.mubr.msk.f32.mxu1 %vm100_vm0, %v2911_v17 }
 0xbb0   :  { %v2894_v42 = vpop.permute.xlu1 %2893  ;;  %5266 = vmatpush3.bf16.msra.mxu1 %v6149_v3 }
 0xbb1   :  { %v2912_v37 = vsel %vm2908_vm4, %v2907_v40, %v2894_v42  ;;  %5273 = vmatprep.subr.bf16.mxu1 %v5724_v59 }
 0xbb2   :  { %5149 = vmatmul.mubr.msk.f32.gmra.mrb[36].mxu1 %vm100_vm0, %v2912_v37 }
 0xbb3   :  { %5170 = vmatprep.mubr.msk.f32.mxu1 %vm5711_vm1, %v5710_v10 }
 0xbbc   :  { %v3150_v7 = vpop.permute.xlu0 %3149  ;;  %v3152_v16 = vpop.permute.xlu1 %3151 }
 0xbc0   :  { %v3148_v15 = vpop.permute.xlu0 %3147  ;;  %v3154_v26 = vpop.permute.xlu1 %3153 }
 0xc7e   :  { %v5147_v46 = vpop.f32.mrb[34].mxu1 }
 0xc7f   :  { %v6201_v29 = vadd.f32 %v5147_v46, %v4798_v48  ;;  %v3002_v49 = vpop.f32.mrb[35].mxu1 }
 0xc80   :  { %v6203_v50 = vadd.f32 %v4798_v48, %v3002_v49 }
 0xc81   :  { %v3120_v51 = vadd.f32 %v3112_v30, %v6201_v29 }
 0xc82   :  { %v3119_v44 = vadd.f32 %v3108_v24, %v6203_v50 }
 0xc83   :  { %v4805_v52 = vmul.f32 -1.442695, %v3120_v51 }
 0xc84   :  { %v4804_v53 = vmul.f32 -1.442695, %v3119_v44 }
 0xc85   :  { %v5150_v54 = vpop.f32.mrb[36].mxu1  ;;  %5393 = vpow2.f32 %v4805_v52 }
 0xc86   :  { %v6207_v55 = vadd.f32 %v5150_v54, %v4798_v48  ;;  %v3012_v56 = vpop.f32.mrb[37].mxu1  ;;  %5395 = vpow2.f32 %v4804_v53 }
 0xc87   :  { %v6209_v57 = vadd.f32 %v4798_v48, %v3012_v56 }
 0xc88   :  { %v3122_v58 = vadd.f32 %v3114_v33, %v6207_v55 }
 0xc89   :  { %v3121_v61 = vadd.f32 %v3113_v31, %v6209_v57 }
 0xc8a   :  { %v4807_v62 = vmul.f32 -1.442695, %v3122_v58 }
 0xc8b   :  { %v4806_v63 = vmul.f32 -1.442695, %v3121_v61 }
 0xc8c   :  { %5397 = vpow2.f32 %v4807_v62 }
 0xc8d   :  { %5399 = vpow2.f32 %v4806_v63 }
 0xc8f   :  { %v5394_v0 = vpop.eup %5393 }
 0xc90   :  { %v5396_v1 = vpop.eup %5395  ;;  %v3136_v2 = vadd.f32 1.0, %v5394_v0 }
 0xc91   :  { %v3135_v4 = vadd.f32 1.0, %v5396_v1 }
 0xc92   :  { %5401 = vrcp.f32 %v3136_v2 }
 0xc93   :  { %5403 = vrcp.f32 %v3135_v4 }
 0xc96   :  { %v5398_v5 = vpop.eup %5397 }
 0xc97   :  { %v5400_v6 = vpop.eup %5399  ;;  %v3138_v9 = vadd.f32 1.0, %v5398_v5 }
 0xc98   :  { %v3137_v8 = vadd.f32 1.0, %v5400_v6 }
 0xc9a   :  { %5405 = vrcp.f32 %v3137_v8 }
 0xc9b   :  { %5407 = vrcp.f32 %v3138_v9 }
 0xc9c   :  { %v5402_v11 = vpop.eup %5401 }
 0xc9d   :  { %v3160_v12 = vmul.f32 %v5402_v11, %v3150_v7  ;;  %v5404_v13 = vpop.eup %5403  ;;  %v3188_v25 = vsub.f32 1.0, %v5402_v11  ;;  %v3212_v17 = vmul.f32 0.0, %v5402_v11 }
 0xc9e   :  { %v3159_v20 = vmul.f32 %v5404_v13, %v3148_v15  ;;  %v3187_v42 = vsub.f32 1.0, %v5404_v13  ;;  %v3211_v48 = vmul.f32 0.0, %v5404_v13 }
 0xc9f   :  { %3169 = vrot.lane.b32.xlu0 %v3160_v12, %s5713_s3 }
 0xca3   :  { %3167 = vrot.lane.b32.xlu0 %v3159_v20, %s5713_s3 }
 0xca4   :  { %v5406_v21 = vpop.eup %5405 }
 0xca5   :  { %v3161_v23 = vmul.f32 %v5406_v21, %v3152_v16  ;;  %v5408_v24 = vpop.eup %5407  ;;  %v3189_v44 = vsub.f32 1.0, %v5406_v21  ;;  %v3213_v53 = vmul.f32 0.0, %v5406_v21 }
 0xca6   :  { %v3162_v28 = vmul.f32 %v5408_v24, %v3154_v26  ;;  %v3190_v61 = vsub.f32 1.0, %v5408_v24  ;;  %v3214_v0 = vmul.f32 0.0, %v5408_v24 }
 0xca7   :  { %3171 = vrot.lane.b32.xlu1 %v3161_v23, %s5713_s3 }
 0xcab   :  { %3173 = vrot.lane.b32.xlu1 %v3162_v28, %s5713_s3 }
 0xd11   :  { %v3170_v30 = vpop.permute.xlu0 %3169 }
 0xd12   :  { %v3180_v31 = vadd.f32 %v3170_v30, %v6201_v29 }
 0xd14   :  { %5409 = vtanh.f32 %v3180_v31 }
 0xd15   :  { %v3168_v32 = vpop.permute.xlu0 %3167 }
 0xd16   :  { %v3179_v33 = vadd.f32 %v3168_v32, %v6203_v50 }
 0xd18   :  { %5411 = vtanh.f32 %v3179_v33 }
 0xd19   :  { %v3172_v35 = vpop.permute.xlu1 %3171 }
 0xd1a   :  { %v3181_v14 = vadd.f32 %v3172_v35, %v6209_v57 }
 0xd1c   :  { %5413 = vtanh.f32 %v3181_v14 }
 0xd1d   :  { %v3174_v36 = vpop.permute.xlu1 %3173 }
 0xd1e   :  { %v5410_v38 = vpop.eup %5409  ;;  %v3182_v39 = vadd.f32 %v3174_v36, %v6207_v55 }
 0xd1f   :  { %3197 = vrot.lane.b32.xlu0 %v5410_v38, %s5712_s10 }
 0xd20   :  { %5415 = vtanh.f32 %v3182_v39 }
 0xd22   :  { %v5412_v43 = vpop.eup %5411 }
 0xd23   :  { %3195 = vrot.lane.b32.xlu0 %v5412_v43, %s5712_s10 }
 0xd26   :  { %v5414_v47 = vpop.eup %5413 }
 0xd27   :  { %3199 = vrot.lane.b32.xlu1 %v5414_v47, %s5712_s10  ;;  %3030 = vperm.xlu0 %5328, %v3028_v45  }
 0xd2a   :  { %v5416_v18 = vpop.eup %5415 }
 0xd2b   :  { %3201 = vrot.lane.b32.xlu1 %v5416_v18, %s5712_s10 }
 0xd91   :  { %v3198_v27 = vpop.permute.xlu0 %3197 }
 0xd92   :  { %v3208_v19 = vmul.f32 %v3198_v27, %v3188_v25 }
 0xd94   :  { %v3216_v40 = vadd.f32 %v3212_v17, %v3208_v19 }
 0xd95   :  { %v3196_v37 = vpop.permute.xlu0 %3195 }
 0xd96   :  { %v3207_v46 = vmul.f32 %v3196_v37, %v3187_v42  ;;  %v3224_v49 = vrot.slane %v3216_v40, 7 }
 0xd98   :  { %v3215_v51 = vadd.f32 %v3211_v48, %v3207_v46 }
 0xd99   :  { %v3200_v52 = vpop.permute.xlu1 %3199 }
 0xd9a   :  { %v3209_v54 = vmul.f32 %v3200_v52, %v3189_v44  ;;  %v3226_v56 = vsel %vm3225_vm6, %v3224_v49, %v3215_v51 }
 0xd9c   :  { %v3217_v58 = vadd.f32 %v3213_v53, %v3209_v54 }
 0xd9d   :  { %v3202_v62 = vpop.permute.xlu1 %3201 }
 0xd9e   :  { %v3227_v63 = vrot.slane %v3217_v58, 6  ;;  %v3210_v1 = vmul.f32 %v3202_v62, %v3190_v61 }
 0xda0   :  { %v3218_v2 = vadd.f32 %v3214_v0, %v3210_v1  ;;  %v3229_v4 = vsel %vm3228_vm7, %v3227_v63, %v3226_v56 }
 0xda2   :  { %v3230_v5 = vrot.slane %v3218_v2, 5 }
 0xda4   :  { %v3232_v6 = vsel %vm3231_vm8, %v3230_v5, %v3229_v4 }
 0xda5   :  { %3233 = vrot.lane.b32.xlu1 %v3232_v6, %s5712_s10 }
 0xda6   :  { %v6232_v7 = vpop.permute.xlu0 %3030 }
 0xda7   :  { %vm3219_vm9 = vcmp.gt.s32.totalorder %v6232_v7, 0  ;;  %vm3433_vm10 = vcmp.gt.s32.totalorder %v6232_v7, 1  ;;  %vm3644_vm11 = vcmp.gt.s32.totalorder %v6232_v7, 2  ;;  %vm3855_vm12 = vcmp.gt.s32.totalorder %v6232_v7, 3 }
 0xda8   :  { %vm4068_vm13 = vcmp.gt.s32.totalorder %v6232_v7, 4  ;;  %vm4282_vm14 = vcmp.gt.s32.totalorder %v6232_v7, 5  ;;  %vm4496_vm15 = vcmp.gt.s32.totalorder %v6232_v7, 6 }
 0xe17   :  { %v3234_v8 = vpop.permute.xlu1 %3233 }
 0xe18   :  { %v6235_v9 = vsel %vm3219_vm9, %v3234_v8, 0.0 }
 0xe19   :  { %5171 = vmatmul.mubr.msk.f32.vlgmr.msra.gmra.mrb[38].mxu1 %vm100_vm0, %v6235_v9  ;;  %v3410_v46 = vrot.slane %v6235_v9, 7  ;;  %v3411_v49 = vrot.slane %v6235_v9, 1  ;;  %v3412_v0 = vrot.slane %v6235_v9, 2 }
 0xe1a   :  { %5275 = vmatpush3.bf16.msra.mxu1 %v6146_v60  ;;  %5192 = vmatprep.mubr.msk.f32.mxu1 %vm5711_vm1, %v5710_v10 }
 0xe1b   :  { %5276 = vmatprep.subr.bf16.mxu1 %v5724_v59 }
 0xe1e   :  { %5278 = vmatpush3.bf16.msra.mxu1 %v6149_v3 }
 0xe1f   :  { %5285 = vmatprep.subr.bf16.mxu1 %v5724_v59 }
 0xeec   :  { %v3306_v11 = vpop.f32.mrb[38].mxu1 }
 0xeed   :  { %v3307_v12 = vadd.f32 %v6165_v22, %v3306_v11  ;;  %v5172_v13 = vpop.f32.mrb[39].mxu1 }
 0xeef   :  { %v3312_v15 = vrot.slane %v3307_v12, 1  ;;  %v3311_v16 = vrot.slane %v3307_v12, 7  ;;  %v3313_v20 = vrot.slane %v3307_v12, 2  ;;  %v3319_v24 = vadd.f32 %v3307_v12, %v6201_v29 }
 0xef1   :  { %3350 = vrot.lane.b32.xlu0 %v3312_v15, %s5713_s3  ;;  %3346 = vrot.lane.b32.xlu1 %v3311_v16, %s5713_s3  ;;  %v3320_v21 = vadd.f32 %v3312_v15, %v6209_v57  ;;  %v3318_v23 = vadd.f32 %v3311_v16, %v6203_v50  ;;  %v3321_v30 = vadd.f32 %v3313_v20, %v6207_v55  ;;  %v4810_v31 = vmul.f32 -1.442695, %v3319_v24 }
 0xef3   :  { %v4811_v26 = vmul.f32 -1.442695, %v3320_v21  ;;  %v4809_v28 = vmul.f32 -1.442695, %v3318_v23  ;;  %v4812_v32 = vmul.f32 -1.442695, %v3321_v30 }
 0xef5   :  { %3352 = vrot.lane.b32.xlu0 %v3313_v20, %s5713_s3  ;;  %3348 = vrot.lane.b32.xlu1 %v3307_v12, %s5713_s3  ;;  %5417 = vpow2.f32 %v4811_v26 }
 0xef6   :  { %5419 = vpow2.f32 %v4809_v28 }
 0xef7   :  { %5421 = vpow2.f32 %v4810_v31 }
 0xef8   :  { %5423 = vpow2.f32 %v4812_v32 }
 0xeff   :  { %v5418_v33 = vpop.eup %5417 }
 0xf00   :  { %v5420_v34 = vpop.eup %5419  ;;  %v3336_v35 = vadd.f32 1.0, %v5418_v33 }
 0xf01   :  { %v5422_v14 = vpop.eup %5421  ;;  %v3334_v36 = vadd.f32 1.0, %v5420_v34 }
 0xf02   :  { %v5424_v38 = vpop.eup %5423  ;;  %v3335_v39 = vadd.f32 1.0, %v5422_v14  ;;  %5425 = vrcp.f32 %v3336_v35 }
 0xf03   :  { %5427 = vrcp.f32 %v3334_v36  ;;  %v3337_v41 = vadd.f32 1.0, %v5424_v38 }
 0xf04   :  { %5429 = vrcp.f32 %v3335_v39 }
 0xf05   :  { %5431 = vrcp.f32 %v3337_v41 }
 0xf0c   :  { %v5426_v43 = vpop.eup %5425 }
 0xf0d   :  { %v5428_v45 = vpop.eup %5427  ;;  %v3388_v16 = vsub.f32 1.0, %v5426_v43 }
 0xf0e   :  { %v5430_v17 = vpop.eup %5429  ;;  %v3386_v12 = vsub.f32 1.0, %v5428_v45 }
 0xf0f   :  { %v5432_v19 = vpop.eup %5431  ;;  %v3387_v31 = vsub.f32 1.0, %v5430_v17 }
 0xf10   :  { %v3389_v23 = vsub.f32 1.0, %v5432_v19 }
 0xf63   :  { %v3351_v47 = vpop.permute.xlu0 %3350  ;;  %v3347_v18 = vpop.permute.xlu1 %3346 }
 0xf64   :  { %v3360_v25 = vmul.f32 %v5426_v43, %v3351_v47  ;;  %v3358_v27 = vmul.f32 %v5428_v45, %v3347_v18 }
 0xf66   :  { %3370 = vrot.lane.b32.xlu0 %v3360_v25, %s5713_s3  ;;  %3366 = vrot.lane.b32.xlu1 %v3358_v27, %s5713_s3 }
 0xf67   :  { %v3353_v40 = vpop.permute.xlu0 %3352  ;;  %v3349_v42 = vpop.permute.xlu1 %3348 }
 0xf68   :  { %v3361_v37 = vmul.f32 %v5432_v19, %v3353_v40  ;;  %v3359_v48 = vmul.f32 %v5430_v17, %v3349_v42 }
 0xf6a   :  { %3372 = vrot.lane.b32.xlu0 %v3361_v37, %s5713_s3  ;;  %3368 = vrot.lane.b32.xlu1 %v3359_v48, %s5713_s3 }
 0xf6e   :  { %3413 = vrot.lane.b32.xlu0 %v3410_v46, %s5727_s0 }
 0xf72   :  { %3417 = vrot.lane.b32.xlu0 %v3411_v49, %s5727_s0 }
 0xfd8   :  { %v3371_v51 = vpop.permute.xlu0 %3370  ;;  %v3367_v44 = vpop.permute.xlu1 %3366 }
 0xfd9   :  { %v3378_v58 = vadd.f32 %v3367_v44, %v6203_v50  ;;  %v3380_v61 = vadd.f32 %v3371_v51, %v6209_v57 }
 0xfdc   :  { %v3373_v52 = vpop.permute.xlu0 %3372  ;;  %v3369_v53 = vpop.permute.xlu1 %3368 }
 0xfdd   :  { %v3381_v54 = vadd.f32 %v3373_v52, %v6207_v55  ;;  %v3379_v56 = vadd.f32 %v3369_v53, %v6201_v29 }
 0xfdf   :  { %5433 = vtanh.f32 %v3381_v54 }
 0xfe0   :  { %5435 = vtanh.f32 %v3379_v56  ;;  %v3414_v4 = vpop.permute.xlu0 %3413 }
 0xfe1   :  { %5437 = vtanh.f32 %v3378_v58  ;;  %v3425_v21 = vmul.f32 %v5428_v45, %v3414_v4 }
 0xfe2   :  { %5439 = vtanh.f32 %v3380_v61 }
 0xfe4   :  { %v3418_v5 = vpop.permute.xlu0 %3417 }
 0xfe5   :  { %v3427_v28 = vmul.f32 %v5426_v43, %v3418_v5 }
 0xfe9   :  { %v5434_v62 = vpop.eup %5433 }
 0xfea   :  { %v5436_v63 = vpop.eup %5435  ;;  %3400 = vrot.lane.b32.xlu0 %v5434_v62, %s5712_s10 }
 0xfeb   :  { %3396 = vrot.lane.b32.xlu1 %v5436_v63, %s5712_s10  ;;  %v5438_v1 = vpop.eup %5437 }
 0xfec   :  { %v5440_v2 = vpop.eup %5439 }
 0xfee   :  { %3419 = vrot.lane.b32.xlu0 %v3412_v0, %s5727_s0 }
 0xfef   :  { %3394 = vrot.lane.b32.xlu1 %v5438_v1, %s5712_s10 }
 0xff3   :  { %3398 = vrot.lane.b32.xlu1 %v5440_v2, %s5712_s10 }
 0xff7   :  { %3415 = vrot.lane.b32.xlu1 %v6235_v9, %s5727_s0 }
0x105c   :  { %v3401_v6 = vpop.permute.xlu0 %3400 }
0x105d   :  { %v3397_v8 = vpop.permute.xlu1 %3396  ;;  %v3409_v30 = vmul.f32 %v3401_v6, %v3389_v23 }
0x105e   :  { %v3407_v35 = vmul.f32 %v3397_v8, %v3387_v31 }
0x1060   :  { %v3420_v13 = vpop.permute.xlu0 %3419 }
0x1061   :  { %v3395_v11 = vpop.permute.xlu1 %3394  ;;  %v3428_v24 = vmul.f32 %v5432_v19, %v3420_v13 }
0x1062   :  { %v3406_v15 = vmul.f32 %v3395_v11, %v3386_v12 }
0x1063   :  { %v3432_v14 = vadd.f32 %v3428_v24, %v3409_v30 }
0x1064   :  { %v3429_v32 = vadd.f32 %v3425_v21, %v3406_v15 }
0x1065   :  { %v3399_v20 = vpop.permute.xlu1 %3398  ;;  %v3442_v47 = vrot.slane %v3432_v14, 6 }
0x1066   :  { %v3408_v26 = vmul.f32 %v3399_v20, %v3388_v16  ;;  %v3438_v38 = vrot.slane %v3429_v32, 1 }
0x1068   :  { %v3431_v33 = vadd.f32 %v3427_v28, %v3408_v26 }
0x1069   :  { %v3416_v34 = vpop.permute.xlu1 %3415 }
0x106a   :  { %v3426_v36 = vmul.f32 %v5430_v17, %v3416_v34  ;;  %v3440_v41 = vrot.slane %v3431_v33, 7 }
0x106c   :  { %v3430_v39 = vadd.f32 %v3426_v36, %v3407_v35 }
0x106e   :  { %v3439_v18 = vsel %vm3225_vm6, %v3430_v39, %v3438_v38 }
0x106f   :  { %v3441_v45 = vsel %vm3228_vm7, %v3440_v41, %v3439_v18 }
0x1070   :  { %v3443_v25 = vsel %vm3231_vm8, %v3442_v47, %v3441_v45 }
0x1071   :  { %3444 = vrot.lane.b32.xlu1 %v3443_v25, %s5712_s10 }
0x10e3   :  { %v3445_v43 = vpop.permute.xlu1 %3444 }
0x10e4   :  { %v6280_v27 = vsel %vm3433_vm10, %v3445_v43, %v6235_v9 }
0x10e5   :  { %5182 = vmatmul.mubr.msk.f32.vlgmr.msra.gmra.mrb[36].mxu0 %vm100_vm0, %v6280_v27  ;;  %v3622_v24 = vrot.slane %v6280_v27, 7  ;;  %v3621_v26 = vrot.slane %v6280_v27, 6  ;;  %v3623_v28 = vrot.slane %v6280_v27, 1 }
0x10e6   :  { %5281 = vmatpush3.bf16.msra.mxu0 %v6146_v60  ;;  %5203 = vmatprep.mubr.msk.f32.mxu0 %vm5711_vm1, %v5710_v10 }
0x10e7   :  { %5282 = vmatprep.subr.bf16.mxu0 %v5724_v59 }
0x10ea   :  { %5284 = vmatpush3.bf16.msra.mxu0 %v6149_v3 }
0x10eb   :  { %5291 = vmatprep.subr.bf16.mxu0 %v5724_v59 }
0x11b8   :  { %v3517_v17 = vpop.f32.mrb[36].mxu0 }
0x11b9   :  { %v3518_v19 = vadd.f32 %v6165_v22, %v3517_v17  ;;  %v5183_v40 = vpop.f32.mrb[37].mxu0 }
0x11bb   :  { %v3523_v9 = vrot.slane %v3518_v19, 7  ;;  %v3522_v42 = vrot.slane %v3518_v19, 6  ;;  %v3524_v37 = vrot.slane %v3518_v19, 1  ;;  %v3531_v49 = vadd.f32 %v3518_v19, %v6209_v57 }
0x11bd   :  { %3559 = vrot.lane.b32.xlu1 %v3523_v9, %s5713_s3  ;;  %3557 = vrot.lane.b32.xlu0 %v3522_v42, %s5713_s3  ;;  %v3530_v48 = vadd.f32 %v3523_v9, %v6201_v29  ;;  %v3529_v46 = vadd.f32 %v3522_v42, %v6203_v50  ;;  %v3532_v52 = vadd.f32 %v3524_v37, %v6207_v55  ;;  %v4816_v53 = vmul.f32 -1.442695, %v3531_v49 }
0x11bf   :  { %v4815_v51 = vmul.f32 -1.442695, %v3530_v48  ;;  %v4814_v44 = vmul.f32 -1.442695, %v3529_v46  ;;  %v4817_v54 = vmul.f32 -1.442695, %v3532_v52 }
0x11c1   :  { %3561 = vrot.lane.b32.xlu1 %v3518_v19, %s5713_s3  ;;  %3563 = vrot.lane.b32.xlu0 %v3524_v37, %s5713_s3  ;;  %5441 = vpow2.f32 %v4815_v51 }
0x11c2   :  { %5443 = vpow2.f32 %v4814_v44 }
0x11c3   :  { %5445 = vpow2.f32 %v4816_v53 }
0x11c4   :  { %5447 = vpow2.f32 %v4817_v54 }
0x11cb   :  { %v5442_v56 = vpop.eup %5441 }
0x11cc   :  { %v5444_v58 = vpop.eup %5443  ;;  %v3546_v61 = vadd.f32 1.0, %v5442_v56 }
0x11cd   :  { %v5446_v62 = vpop.eup %5445  ;;  %v3545_v63 = vadd.f32 1.0, %v5444_v58 }
0x11ce   :  { %v5448_v0 = vpop.eup %5447  ;;  %v3547_v1 = vadd.f32 1.0, %v5446_v62  ;;  %5449 = vrcp.f32 %v3546_v61 }
0x11cf   :  { %5451 = vrcp.f32 %v3545_v63  ;;  %v3548_v2 = vadd.f32 1.0, %v5448_v0 }
0x11d0   :  { %5453 = vrcp.f32 %v3547_v1 }
0x11d1   :  { %5455 = vrcp.f32 %v3548_v2 }
0x11d8   :  { %v5450_v4 = vpop.eup %5449 }
0x11d9   :  { %v5452_v5 = vpop.eup %5451  ;;  %v3598_v43 = vsub.f32 1.0, %v5450_v4 }
0x11da   :  { %v5454_v13 = vpop.eup %5453  ;;  %v3597_v19 = vsub.f32 1.0, %v5452_v5 }
0x11db   :  { %v5456_v15 = vpop.eup %5455  ;;  %v3599_v56 = vsub.f32 1.0, %v5454_v13 }
0x11dc   :  { %v3600_v46 = vsub.f32 1.0, %v5456_v15 }
0x122f   :  { %v3560_v6 = vpop.permute.xlu1 %3559  ;;  %v3558_v8 = vpop.permute.xlu0 %3557 }
0x1230   :  { %v3570_v11 = vmul.f32 %v5450_v4, %v3560_v6  ;;  %v3569_v12 = vmul.f32 %v5452_v5, %v3558_v8 }
0x1232   :  { %3579 = vrot.lane.b32.xlu1 %v3570_v11, %s5713_s3  ;;  %3577 = vrot.lane.b32.xlu0 %v3569_v12, %s5713_s3 }
0x1233   :  { %v3562_v16 = vpop.permute.xlu1 %3561  ;;  %v3564_v20 = vpop.permute.xlu0 %3563 }
0x1234   :  { %v3571_v21 = vmul.f32 %v5454_v13, %v3562_v16  ;;  %v3572_v23 = vmul.f32 %v5456_v15, %v3564_v20 }
0x1236   :  { %3581 = vrot.lane.b32.xlu1 %v3571_v21, %s5713_s3  ;;  %3583 = vrot.lane.b32.xlu0 %v3572_v23, %s5713_s3 }
0x123a   :  { %3626 = vrot.lane.b32.xlu1 %v3622_v24, %s5727_s0  ;;  %3624 = vrot.lane.b32.xlu0 %v3621_v26, %s5727_s0 }
0x123e   :  { %3630 = vrot.lane.b32.xlu1 %v3623_v28, %s5727_s0 }
0x12a4   :  { %v3580_v30 = vpop.permute.xlu1 %3579  ;;  %v3578_v31 = vpop.permute.xlu0 %3577 }
0x12a5   :  { %v3590_v32 = vadd.f32 %v3580_v30, %v6201_v29  ;;  %v3589_v33 = vadd.f32 %v3578_v31, %v6203_v50 }
0x12a7   :  { %5457 = vtanh.f32 %v3590_v32 }
0x12a8   :  { %5459 = vtanh.f32 %v3589_v33  ;;  %v3584_v34 = vpop.permute.xlu0 %3583  ;;  %v3582_v35 = vpop.permute.xlu1 %3581 }
0x12a9   :  { %v3592_v14 = vadd.f32 %v3584_v34, %v6207_v55  ;;  %v3591_v36 = vadd.f32 %v3582_v35, %v6209_v57 }
0x12ab   :  { %5461 = vtanh.f32 %v3592_v14 }
0x12ac   :  { %5463 = vtanh.f32 %v3591_v36  ;;  %v3627_v18 = vpop.permute.xlu1 %3626  ;;  %v3625_v25 = vpop.permute.xlu0 %3624 }
0x12ad   :  { %v3637_v37 = vmul.f32 %v5450_v4, %v3627_v18  ;;  %v3636_v48 = vmul.f32 %v5452_v5, %v3625_v25 }
0x12b0   :  { %v3631_v45 = vpop.permute.xlu1 %3630 }
0x12b1   :  { %v5458_v38 = vpop.eup %5457  ;;  %v3639_v53 = vmul.f32 %v5456_v15, %v3631_v45 }
0x12b2   :  { %v5460_v39 = vpop.eup %5459  ;;  %3607 = vrot.lane.b32.xlu1 %v5458_v38, %s5712_s10 }
0x12b3   :  { %3605 = vrot.lane.b32.xlu0 %v5460_v39, %s5712_s10 }
0x12b5   :  { %v5462_v41 = vpop.eup %5461 }
0x12b6   :  { %3628 = vrot.lane.b32.xlu1 %v6280_v27, %s5727_s0  ;;  %v5464_v47 = vpop.eup %5463 }
0x12b7   :  { %3611 = vrot.lane.b32.xlu0 %v5462_v41, %s5712_s10 }
0x12bb   :  { %3609 = vrot.lane.b32.xlu0 %v5464_v47, %s5712_s10 }
0x1324   :  { %v3608_v17 = vpop.permute.xlu1 %3607 }
0x1325   :  { %v3618_v40 = vmul.f32 %v3608_v17, %v3598_v43  ;;  %v3606_v9 = vpop.permute.xlu0 %3605 }
0x1326   :  { %v3617_v42 = vmul.f32 %v3606_v9, %v3597_v19 }
0x1327   :  { %v3641_v49 = vadd.f32 %v3637_v37, %v3618_v40 }
0x1328   :  { %v3640_v51 = vadd.f32 %v3636_v48, %v3617_v42  ;;  %v3629_v54 = vpop.permute.xlu1 %3628 }
0x1329   :  { %v3612_v44 = vpop.permute.xlu0 %3611  ;;  %v3650_v58 = vrot.slane %v3641_v49, 1  ;;  %v3638_v0 = vmul.f32 %v5454_v13, %v3629_v54 }
0x132a   :  { %v3620_v52 = vmul.f32 %v3612_v44, %v3600_v46  ;;  %v3649_v61 = vrot.slane %v3640_v51, 2 }
0x132c   :  { %v3643_v62 = vadd.f32 %v3639_v53, %v3620_v52  ;;  %v3651_v6 = vsel %vm3225_vm6, %v3650_v58, %v3649_v61 }
0x132d   :  { %v3610_v63 = vpop.permute.xlu0 %3609 }
0x132e   :  { %v3619_v1 = vmul.f32 %v3610_v63, %v3599_v56  ;;  %v3653_v8 = vrot.slane %v3643_v62, 7 }
0x1330   :  { %v3642_v2 = vadd.f32 %v3638_v0, %v3619_v1 }
0x1332   :  { %v3652_v4 = vsel %vm3228_vm7, %v3642_v2, %v3651_v6 }
0x1333   :  { %v3654_v5 = vsel %vm3231_vm8, %v3653_v8, %v3652_v4 }
0x1334   :  { %3655 = vrot.lane.b32.xlu0 %v3654_v5, %s5712_s10 }
0x13a6   :  { %v3656_v11 = vpop.permute.xlu0 %3655 }
0x13a7   :  { %v6325_v12 = vsel %vm3644_vm11, %v3656_v11, %v6280_v27 }
0x13a8   :  { %5193 = vmatmul.mubr.msk.f32.vlgmr.msra.gmra.mrb[40].mxu1 %vm100_vm0, %v6325_v12  ;;  %v3833_v49 = vrot.slane %v6325_v12, 6  ;;  %v3832_v51 = vrot.slane %v6325_v12, 5  ;;  %v3834_v44 = vrot.slane %v6325_v12, 7 }
0x13a9   :  { %5287 = vmatpush3.bf16.msra.mxu1 %v6146_v60  ;;  %5214 = vmatprep.mubr.msk.f32.mxu1 %vm5711_vm1, %v5710_v10 }
0x13aa   :  { %5288 = vmatprep.subr.bf16.mxu1 %v5724_v59 }
0x13ad   :  { %5290 = vmatpush3.bf16.msra.mxu1 %v6149_v3 }
0x13ae   :  { %5297 = vmatprep.subr.bf16.mxu1 %v5724_v59 }
0x147b   :  { %v3728_v13 = vpop.f32.mrb[40].mxu1 }
0x147c   :  { %v3729_v15 = vadd.f32 %v6165_v22, %v3728_v13  ;;  %v5194_v16 = vpop.f32.mrb[41].mxu1 }
0x147e   :  { %v3734_v27 = vrot.slane %v3729_v15, 6  ;;  %v3733_v20 = vrot.slane %v3729_v15, 5  ;;  %v3735_v21 = vrot.slane %v3729_v15, 7  ;;  %v3743_v26 = vadd.f32 %v3729_v15, %v6207_v55 }
0x1480   :  { %3770 = vrot.lane.b32.xlu0 %v3734_v27, %s5713_s3  ;;  %3768 = vrot.lane.b32.xlu1 %v3733_v20, %s5713_s3  ;;  %v3741_v23 = vadd.f32 %v3734_v27, %v6201_v29  ;;  %v3740_v24 = vadd.f32 %v3733_v20, %v6203_v50  ;;  %v3742_v31 = vadd.f32 %v3735_v21, %v6209_v57  ;;  %v4822_v32 = vmul.f32 -1.442695, %v3743_v26 }
0x1482   :  { %v4820_v28 = vmul.f32 -1.442695, %v3741_v23  ;;  %v4819_v30 = vmul.f32 -1.442695, %v3740_v24  ;;  %v4821_v33 = vmul.f32 -1.442695, %v3742_v31 }
0x1484   :  { %3774 = vrot.lane.b32.xlu0 %v3729_v15, %s5713_s3  ;;  %3772 = vrot.lane.b32.xlu1 %v3735_v21, %s5713_s3  ;;  %5465 = vpow2.f32 %v4820_v28 }
0x1485   :  { %5467 = vpow2.f32 %v4819_v30 }
0x1486   :  { %5469 = vpow2.f32 %v4822_v32 }
0x1487   :  { %5471 = vpow2.f32 %v4821_v33 }
0x148e   :  { %v5466_v34 = vpop.eup %5465 }
0x148f   :  { %v5468_v35 = vpop.eup %5467  ;;  %v3757_v14 = vadd.f32 1.0, %v5466_v34 }
0x1490   :  { %v5470_v36 = vpop.eup %5469  ;;  %v3756_v38 = vadd.f32 1.0, %v5468_v35 }
0x1491   :  { %v5472_v39 = vpop.eup %5471  ;;  %v3759_v41 = vadd.f32 1.0, %v5470_v36  ;;  %5473 = vrcp.f32 %v3757_v14 }
0x1492   :  { %5475 = vrcp.f32 %v3756_v38  ;;  %v3758_v47 = vadd.f32 1.0, %v5472_v39 }
0x1493   :  { %5477 = vrcp.f32 %v3759_v41 }
0x1494   :  { %5479 = vrcp.f32 %v3758_v47 }
0x149b   :  { %v5474_v18 = vpop.eup %5473 }
0x149c   :  { %v5476_v45 = vpop.eup %5475  ;;  %v3809_v11 = vsub.f32 1.0, %v5474_v18 }
0x149d   :  { %v6344_v40 = vpop.eup %5477  ;;  %v3808_v15 = vsub.f32 1.0, %v5476_v45 }
0x149e   :  { %v5480_v9 = vpop.eup %5479  ;;  %v3811_v36 = vsub.f32 1.0, %v6344_v40 }
0x149f   :  { %v3810_v28 = vsub.f32 1.0, %v5480_v9 }
0x14f2   :  { %v3771_v25 = vpop.permute.xlu0 %3770  ;;  %v3769_v43 = vpop.permute.xlu1 %3768 }
0x14f3   :  { %v3781_v17 = vmul.f32 %v5474_v18, %v3771_v25  ;;  %v3780_v19 = vmul.f32 %v5476_v45, %v3769_v43 }
0x14f5   :  { %3790 = vrot.lane.b32.xlu0 %v3781_v17, %s5713_s3  ;;  %3788 = vrot.lane.b32.xlu1 %v3780_v19, %s5713_s3 }
0x14f6   :  { %v3775_v42 = vpop.permute.xlu0 %3774  ;;  %v3773_v37 = vpop.permute.xlu1 %3772 }
0x14f7   :  { %v3783_v48 = vmul.f32 %v6344_v40, %v3775_v42  ;;  %v3782_v46 = vmul.f32 %v5480_v9, %v3773_v37 }
0x14f9   :  { %3794 = vrot.lane.b32.xlu0 %v3783_v48, %s5713_s3  ;;  %3792 = vrot.lane.b32.xlu1 %v3782_v46, %s5713_s3 }
0x14fd   :  { %3837 = vrot.lane.b32.xlu0 %v3833_v49, %s5727_s0  ;;  %3835 = vrot.lane.b32.xlu1 %v3832_v51, %s5727_s0 }
0x1501   :  { %3839 = vrot.lane.b32.xlu0 %v3834_v44, %s5727_s0 }
0x1567   :  { %v3791_v52 = vpop.permute.xlu0 %3790  ;;  %v3789_v53 = vpop.permute.xlu1 %3788 }
0x1568   :  { %v3801_v54 = vadd.f32 %v3791_v52, %v6201_v29  ;;  %v3800_v56 = vadd.f32 %v3789_v53, %v6203_v50 }
0x156a   :  { %5481 = vtanh.f32 %v3801_v54 }
0x156b   :  { %5483 = vtanh.f32 %v3800_v56  ;;  %v3793_v58 = vpop.permute.xlu1 %3792  ;;  %v3795_v61 = vpop.permute.xlu0 %3794 }
0x156c   :  { %v3802_v62 = vadd.f32 %v3793_v58, %v6209_v57  ;;  %v3803_v63 = vadd.f32 %v3795_v61, %v6207_v55 }
0x156e   :  { %5485 = vtanh.f32 %v3802_v62 }
0x156f   :  { %5487 = vtanh.f32 %v3803_v63  ;;  %v3838_v8 = vpop.permute.xlu0 %3837  ;;  %v3836_v5 = vpop.permute.xlu1 %3835 }
0x1570   :  { %v3848_v16 = vmul.f32 %v5474_v18, %v3838_v8  ;;  %v3847_v21 = vmul.f32 %v5476_v45, %v3836_v5 }
0x1573   :  { %v3840_v4 = vpop.permute.xlu0 %3839 }
0x1574   :  { %v5482_v0 = vpop.eup %5481  ;;  %v3849_v31 = vmul.f32 %v5480_v9, %v3840_v4 }
0x1575   :  { %v5484_v1 = vpop.eup %5483  ;;  %3818 = vrot.lane.b32.xlu0 %v5482_v0, %s5712_s10 }
0x1576   :  { %3816 = vrot.lane.b32.xlu1 %v5484_v1, %s5712_s10 }
0x1578   :  { %v5486_v2 = vpop.eup %5485 }
0x1579   :  { %3841 = vrot.lane.b32.xlu0 %v6325_v12, %s5727_s0  ;;  %v5488_v6 = vpop.eup %5487 }
0x157a   :  { %3820 = vrot.lane.b32.xlu1 %v5486_v2, %s5712_s10 }
0x157e   :  { %3822 = vrot.lane.b32.xlu1 %v5488_v6, %s5712_s10 }
0x15e7   :  { %v3819_v13 = vpop.permute.xlu0 %3818 }
0x15e8   :  { %v3829_v27 = vmul.f32 %v3819_v13, %v3809_v11  ;;  %v3817_v20 = vpop.permute.xlu1 %3816 }
0x15e9   :  { %v3828_v23 = vmul.f32 %v3817_v20, %v3808_v15 }
0x15ea   :  { %v3852_v24 = vadd.f32 %v3848_v16, %v3829_v27 }
0x15eb   :  { %v3851_v26 = vadd.f32 %v3847_v21, %v3828_v23  ;;  %v3842_v35 = vpop.permute.xlu0 %3841 }
0x15ec   :  { %v3821_v30 = vpop.permute.xlu1 %3820  ;;  %v3861_v33 = vrot.slane %v3852_v24, 2  ;;  %v3850_v39 = vmul.f32 %v6344_v40, %v3842_v35 }
0x15ed   :  { %v3830_v32 = vmul.f32 %v3821_v30, %v3810_v28  ;;  %v3860_v34 = vrot.slane %v3851_v26, 3 }
0x15ef   :  { %v3853_v14 = vadd.f32 %v3849_v31, %v3830_v32  ;;  %v3862_v18 = vsel %vm3225_vm6, %v3861_v33, %v3860_v34 }
0x15f0   :  { %v3823_v38 = vpop.permute.xlu1 %3822 }
0x15f1   :  { %v3863_v41 = vrot.slane %v3853_v14, 1  ;;  %v3831_v47 = vmul.f32 %v3823_v38, %v3811_v36 }
0x15f3   :  { %v3854_v45 = vadd.f32 %v3850_v39, %v3831_v47  ;;  %v3864_v25 = vsel %vm3228_vm7, %v3863_v41, %v3862_v18 }
0x15f5   :  { %v3865_v43 = vsel %vm3231_vm8, %v3854_v45, %v3864_v25 }
0x15f6   :  { %3866 = vrot.lane.b32.xlu1 %v3865_v43, %s5712_s10 }
0x1668   :  { %v3867_v17 = vpop.permute.xlu1 %3866 }
0x1669   :  { %v6375_v19 = vsel %vm3855_vm12, %v3867_v17, %v6325_v12 }
0x166a   :  { %5204 = vmatmul.mubr.msk.f32.vlgmr.msra.gmra.mrb[38].mxu0 %vm100_vm0, %v6375_v19  ;;  %v4045_v26 = vrot.slane %v6375_v19, 5  ;;  %v4044_v28 = vrot.slane %v6375_v19, 4  ;;  %v4046_v30 = vrot.slane %v6375_v19, 6  ;;  %v4047_v47 = vrot.slane %v6375_v19, 7 }
0x166b   :  { %5293 = vmatpush3.bf16.msra.mxu0 %v6146_v60  ;;  %5225 = vmatprep.mubr.msk.f32.mxu0 %vm5711_vm1, %v5710_v10 }
0x166c   :  { %5294 = vmatprep.subr.bf16.mxu0 %v5724_v59 }
0x166f   :  { %5296 = vmatpush3.bf16.msra.mxu0 %v6149_v3 }
0x173d   :  { %v3939_v40 = vpop.f32.mrb[38].mxu0 }
0x173e   :  { %v3940_v9 = vadd.f32 %v6165_v22, %v3939_v40  ;;  %v5205_v42 = vpop.f32.mrb[39].mxu0 }
0x1740   :  { %v3945_v37 = vrot.slane %v3940_v9, 5  ;;  %v3944_v48 = vrot.slane %v3940_v9, 4  ;;  %v3947_v12 = vrot.slane %v3940_v9, 7  ;;  %v3946_v46 = vrot.slane %v3940_v9, 6 }
0x1742   :  { %3982 = vrot.lane.b32.xlu1 %v3945_v37, %s5713_s3  ;;  %3980 = vrot.lane.b32.xlu0 %v3944_v48, %s5713_s3  ;;  %v3953_v49 = vadd.f32 %v3945_v37, %v6201_v29  ;;  %v3952_v51 = vadd.f32 %v3944_v48, %v6203_v50  ;;  %v3955_v22 = vadd.f32 %v3947_v12, %v6207_v55 }
0x1743   :  { %v3954_v53 = vadd.f32 %v3946_v46, %v6209_v57 }
0x1744   :  { %v4825_v44 = vmul.f32 -1.442695, %v3953_v49  ;;  %v4824_v52 = vmul.f32 -1.442695, %v3952_v51  ;;  %v4827_v54 = vmul.f32 -1.442695, %v3955_v22 }
0x1745   :  { %v4826_v56 = vmul.f32 -1.442695, %v3954_v53 }
0x1746   :  { %3986 = vrot.lane.b32.xlu1 %v3947_v12, %s5713_s3  ;;  %3984 = vrot.lane.b32.xlu0 %v3946_v46, %s5713_s3  ;;  %5489 = vpow2.f32 %v4825_v44 }
0x1747   :  { %5491 = vpow2.f32 %v4824_v52 }
0x1748   :  { %5493 = vpow2.f32 %v4827_v54 }
0x1749   :  { %5495 = vpow2.f32 %v4826_v56 }
0x1750   :  { %v5490_v58 = vpop.eup %5489 }
0x1751   :  { %v5492_v61 = vpop.eup %5491  ;;  %v3969_v62 = vadd.f32 1.0, %v5490_v58 }
0x1752   :  { %v5494_v63 = vpop.eup %5493  ;;  %v3968_v0 = vadd.f32 1.0, %v5492_v61 }
0x1753   :  { %v5496_v1 = vpop.eup %5495  ;;  %5497 = vrcp.f32 %v3969_v62  ;;  %v3971_v2 = vadd.f32 1.0, %v5494_v63 }
0x1754   :  { %5499 = vrcp.f32 %v3968_v0  ;;  %v3970_v6 = vadd.f32 1.0, %v5496_v1 }
0x1755   :  { %5501 = vrcp.f32 %v3971_v2 }
0x1756   :  { %5503 = vrcp.f32 %v3970_v6 }
0x175d   :  { %v5498_v8 = vpop.eup %5497 }
0x175e   :  { %v5500_v4 = vpop.eup %5499  ;;  %v4021_v40 = vsub.f32 1.0, %v5498_v8 }
0x175f   :  { %v6393_v16 = vpop.eup %5501  ;;  %v4020_v42 = vsub.f32 1.0, %v5500_v4 }
0x1760   :  { %v5504_v27 = vpop.eup %5503  ;;  %v4023_v61 = vsub.f32 1.0, %v6393_v16 }
0x1761   :  { %v4022_v51 = vsub.f32 1.0, %v5504_v27 }
0x17b4   :  { %v3983_v5 = vpop.permute.xlu1 %3982  ;;  %v3981_v11 = vpop.permute.xlu0 %3980 }
0x17b5   :  { %v3993_v13 = vmul.f32 %v5498_v8, %v3983_v5  ;;  %v3992_v15 = vmul.f32 %v5500_v4, %v3981_v11 }
0x17b7   :  { %4002 = vrot.lane.b32.xlu1 %v3993_v13, %s5713_s3  ;;  %4000 = vrot.lane.b32.xlu0 %v3992_v15, %s5713_s3 }
0x17b8   :  { %v3987_v20 = vpop.permute.xlu1 %3986  ;;  %v3985_v21 = vpop.permute.xlu0 %3984 }
0x17b9   :  { %v3995_v23 = vmul.f32 %v6393_v16, %v3987_v20  ;;  %v3994_v24 = vmul.f32 %v5504_v27, %v3985_v21  ;;  %v6436_v20 = vld [vmem:[%s6585_s7] ss:$0 sm:$0xff]  ;;  %s5728_s7 = smov [#allocation10]  }
0x17ba   :  { %s4734_s29 = sshll.u32 %s5728_s7, 4  ;;  %s4735_s29 = int_to_ptr.vmem [resolvable:$true] %s4734_s29 }
0x17bb   :  { %4006 = vrot.lane.b32.xlu1 %v3995_v23, %s5713_s3  ;;  %4004 = vrot.lane.b32.xlu0 %v3994_v24, %s5713_s3  ;;  %s5674_s2 = scalar_lea.vmem %s4735_s29, 64  ;;  %p5679_p5 = scmp.lt.s32.totalorder %s4735_s29, %s4735_s29 }
0x17bc   :  { %p5675_p4 = scmp.ne.s32.totalorder %s4735_s29, %s5674_s2  ;;  %p5680_p6 = scmp.lt.s32.totalorder %s5674_s2, %s5674_s2 }
0x17be   :  { %p5681_p7 = por %p5680_p6, %p5679_p5 }
0x17bf   :  { %4050 = vrot.lane.b32.xlu1 %v4045_v26, %s5727_s0  ;;  %4048 = vrot.lane.b32.xlu0 %v4044_v28, %s5727_s0 }
0x17c0   :  { %p5682_p8 = pnand %p5681_p7, %p5675_p4 }
0x17c3   :  { %4052 = vrot.lane.b32.xlu1 %v4046_v30, %s5727_s0 }
0x1829   :  { %v4003_v31 = vpop.permute.xlu1 %4002  ;;  %v4001_v32 = vpop.permute.xlu0 %4000 }
0x182a   :  { %v4013_v33 = vadd.f32 %v4003_v31, %v6201_v29  ;;  %v4012_v34 = vadd.f32 %v4001_v32, %v6203_v50 }
0x182c   :  { %5505 = vtanh.f32 %v4013_v33 }
0x182d   :  { %5507 = vtanh.f32 %v4012_v34  ;;  %v4005_v35 = vpop.permute.xlu0 %4004  ;;  %v4007_v14 = vpop.permute.xlu1 %4006 }
0x182e   :  { %v4014_v36 = vadd.f32 %v4005_v35, %v6209_v57  ;;  %v4015_v38 = vadd.f32 %v4007_v14, %v6207_v55 }
0x1830   :  { %5509 = vtanh.f32 %v4014_v36 }
0x1831   :  { %5511 = vtanh.f32 %v4015_v38  ;;  %v4051_v25 = vpop.permute.xlu1 %4050  ;;  %v4049_v17 = vpop.permute.xlu0 %4048 }
0x1832   :  { %v4061_v46 = vmul.f32 %v5498_v8, %v4051_v25  ;;  %v4060_v49 = vmul.f32 %v5500_v4, %v4049_v17 }
0x1835   :  { %v4053_v43 = vpop.permute.xlu1 %4052 }
0x1836   :  { %v5506_v39 = vpop.eup %5505  ;;  %v4062_v22 = vmul.f32 %v5504_v27, %v4053_v43 }
0x1837   :  { %v5508_v41 = vpop.eup %5507  ;;  %4030 = vrot.lane.b32.xlu1 %v5506_v39, %s5712_s10 }
0x1838   :  { %4028 = vrot.lane.b32.xlu0 %v5508_v41, %s5712_s10 }
0x183a   :  { %v5510_v18 = vpop.eup %5509 }
0x183b   :  { %4054 = vrot.lane.b32.xlu1 %v4047_v47, %s5727_s0  ;;  %v5512_v45 = vpop.eup %5511 }
0x183c   :  { %4032 = vrot.lane.b32.xlu0 %v5510_v18, %s5712_s10 }
0x1840   :  { %4034 = vrot.lane.b32.xlu0 %v5512_v45, %s5712_s10 }
0x18a9   :  { %v4031_v9 = vpop.permute.xlu1 %4030 }
0x18aa   :  { %v4029_v37 = vpop.permute.xlu0 %4028  ;;  %v4041_v48 = vmul.f32 %v4031_v9, %v4021_v40 }
0x18ab   :  { %v4040_v12 = vmul.f32 %v4029_v37, %v4020_v42 }
0x18ac   :  { %v4065_v52 = vadd.f32 %v4061_v46, %v4041_v48 }
0x18ad   :  { %v4064_v53 = vadd.f32 %v4060_v49, %v4040_v12  ;;  %v4055_v56 = vpop.permute.xlu1 %4054 }
0x18ae   :  { %v4033_v44 = vpop.permute.xlu0 %4032  ;;  %v4074_v63 = vrot.slane %v4065_v52, 3  ;;  %v4063_v1 = vmul.f32 %v6393_v16, %v4055_v56 }
0x18af   :  { %v4042_v54 = vmul.f32 %v4033_v44, %v4022_v51  ;;  %v4073_v0 = vrot.slane %v4064_v53, 4 }
0x18b1   :  { %v4066_v58 = vadd.f32 %v4062_v22, %v4042_v54  ;;  %v4075_v8 = vsel %vm3225_vm6, %v4074_v63, %v4073_v0 }
0x18b2   :  { %v4035_v62 = vpop.permute.xlu0 %4034 }
0x18b3   :  { %v4043_v2 = vmul.f32 %v4035_v62, %v4023_v61  ;;  %v4076_v6 = vrot.slane %v4066_v58, 2 }
0x18b5   :  { %v4067_v5 = vadd.f32 %v4063_v1, %v4043_v2  ;;  %v4077_v11 = vsel %vm3228_vm7, %v4076_v6, %v4075_v8 }
0x18b7   :  { %v4078_v4 = vrot.slane %v4067_v5, 1 }
0x18b9   :  { %v4079_v13 = vsel %vm3231_vm8, %v4078_v4, %v4077_v11 }
0x18ba   :  { %4080 = vrot.lane.b32.xlu0 %v4079_v13, %s5712_s10 }
0x192c   :  { %v4081_v15 = vpop.permute.xlu0 %4080 }
0x192d   :  { %v6424_v27 = vsel %vm4068_vm13, %v4081_v15, %v6375_v19 }
0x192e   :  { %5215 = vmatmul.mubr.msk.f32.vlgmr.msra.gmra.mrb[42].mxu1 %vm100_vm0, %v6424_v27  ;;  %v4259_v49 = vrot.slane %v6424_v27, 4  ;;  %v4258_v51 = vrot.slane %v6424_v27, 3  ;;  %v4260_v44 = vrot.slane %v6424_v27, 5  ;;  %v4261_v1 = vrot.slane %v6424_v27, 6 }
0x192f   :  { %5299 = vmatpush3.bf16.msra.mxu1 %v6146_v60  ;;  %5236 = vmatprep.mubr.msk.f32.mxu1 %vm5711_vm1, %v5710_v10  ;;  %vm4710_vm1 = vcmp.gt.s32.totalorder %v6232_v7, 7 }
0x1930   :  { %5300 = vmatprep.subr.bf16.mxu1 %v5724_v59 }
0x1933   :  { %5302 = vmatpush3.bf16.msra.mxu1 %v6149_v3 }
0x1a01   :  { %v4153_v16 = vpop.f32.mrb[42].mxu1 }
0x1a02   :  { %v4154_v19 = vadd.f32 %v6436_v20, %v4153_v16  ;;  %v5216_v21 = vpop.f32.mrb[43].mxu1 }
0x1a04   :  { %v4159_v23 = vrot.slane %v4154_v19, 4  ;;  %v4158_v24 = vrot.slane %v4154_v19, 3  ;;  %v4161_v10 = vrot.slane %v4154_v19, 6  ;;  %v4160_v60 = vrot.slane %v4154_v19, 5 }
0x1a06   :  { %4196 = vrot.lane.b32.xlu0 %v4159_v23, %s5713_s3  ;;  %4194 = vrot.lane.b32.xlu1 %v4158_v24, %s5713_s3  ;;  %v4167_v59 = vadd.f32 %v4159_v23, %v6201_v29  ;;  %v4166_v3 = vadd.f32 %v4158_v24, %v6203_v50  ;;  %v4169_v28 = vadd.f32 %v4161_v10, %v6207_v55 }
0x1a07   :  { %v4168_v31 = vadd.f32 %v4160_v60, %v6209_v57 }
0x1a08   :  { %v4830_v26 = vmul.f32 -1.442695, %v4167_v59  ;;  %v4829_v30 = vmul.f32 -1.442695, %v4166_v3  ;;  %v4832_v32 = vmul.f32 -1.442695, %v4169_v28 }
0x1a09   :  { %v4831_v33 = vmul.f32 -1.442695, %v4168_v31 }
0x1a0a   :  { %4200 = vrot.lane.b32.xlu0 %v4161_v10, %s5713_s3  ;;  %4198 = vrot.lane.b32.xlu1 %v4160_v60, %s5713_s3  ;;  %5513 = vpow2.f32 %v4830_v26 }
0x1a0b   :  { %5515 = vpow2.f32 %v4829_v30 }
0x1a0c   :  { %5517 = vpow2.f32 %v4832_v32 }
0x1a0d   :  { %5519 = vpow2.f32 %v4831_v33 }
0x1a14   :  { %v5514_v34 = vpop.eup %5513 }
0x1a15   :  { %v5516_v35 = vpop.eup %5515  ;;  %v4183_v14 = vadd.f32 1.0, %v5514_v34 }
0x1a16   :  { %v5518_v36 = vpop.eup %5517  ;;  %v4182_v38 = vadd.f32 1.0, %v5516_v35 }
0x1a17   :  { %v5520_v39 = vpop.eup %5519  ;;  %5521 = vrcp.f32 %v4183_v14  ;;  %v4185_v41 = vadd.f32 1.0, %v5518_v36 }
0x1a18   :  { %5523 = vrcp.f32 %v4182_v38  ;;  %v4184_v47 = vadd.f32 1.0, %v5520_v39 }
0x1a19   :  { %5525 = vrcp.f32 %v4185_v41 }
0x1a1a   :  { %5527 = vrcp.f32 %v4184_v47 }
0x1a21   :  { %v5522_v18 = vpop.eup %5521 }
0x1a22   :  { %v5524_v45 = vpop.eup %5523  ;;  %v4235_v11 = vsub.f32 1.0, %v5522_v18 }
0x1a23   :  { %v6447_v9 = vpop.eup %5525  ;;  %v4234_v15 = vsub.f32 1.0, %v5524_v45 }
0x1a24   :  { %v5528_v42 = vpop.eup %5527  ;;  %v4237_v32 = vsub.f32 1.0, %v6447_v9 }
0x1a25   :  { %v4236_v10 = vsub.f32 1.0, %v5528_v42 }
0x1a78   :  { %v4197_v25 = vpop.permute.xlu0 %4196  ;;  %v4195_v43 = vpop.permute.xlu1 %4194 }
0x1a79   :  { %v4207_v17 = vmul.f32 %v5522_v18, %v4197_v25  ;;  %v4206_v40 = vmul.f32 %v5524_v45, %v4195_v43 }
0x1a7b   :  { %4216 = vrot.lane.b32.xlu0 %v4207_v17, %s5713_s3  ;;  %4214 = vrot.lane.b32.xlu1 %v4206_v40, %s5713_s3 }
0x1a7c   :  { %v4201_v37 = vpop.permute.xlu0 %4200  ;;  %v4199_v48 = vpop.permute.xlu1 %4198 }
0x1a7d   :  { %v4209_v12 = vmul.f32 %v6447_v9, %v4201_v37  ;;  %v4208_v46 = vmul.f32 %v5528_v42, %v4199_v48 }
0x1a7f   :  { %4220 = vrot.lane.b32.xlu0 %v4209_v12, %s5713_s3  ;;  %4218 = vrot.lane.b32.xlu1 %v4208_v46, %s5713_s3 }
0x1a83   :  { %4264 = vrot.lane.b32.xlu0 %v4259_v49, %s5727_s0  ;;  %4262 = vrot.lane.b32.xlu1 %v4258_v51, %s5727_s0 }
0x1a87   :  { %4266 = vrot.lane.b32.xlu0 %v4260_v44, %s5727_s0 }
0x1aed   :  { %v4217_v22 = vpop.permute.xlu0 %4216  ;;  %v4215_v52 = vpop.permute.xlu1 %4214 }
0x1aee   :  { %v4227_v53 = vadd.f32 %v4217_v22, %v6201_v29  ;;  %v4226_v54 = vadd.f32 %v4215_v52, %v6203_v50 }
0x1af0   :  { %5529 = vtanh.f32 %v4227_v53 }
0x1af1   :  { %5531 = vtanh.f32 %v4226_v54  ;;  %v4219_v56 = vpop.permute.xlu1 %4218  ;;  %v4221_v58 = vpop.permute.xlu0 %4220 }
0x1af2   :  { %v4228_v61 = vadd.f32 %v4219_v56, %v6209_v57  ;;  %v4229_v62 = vadd.f32 %v4221_v58, %v6207_v55 }
0x1af4   :  { %5533 = vtanh.f32 %v4228_v61 }
0x1af5   :  { %5535 = vtanh.f32 %v4229_v62  ;;  %v4265_v5 = vpop.permute.xlu0 %4264  ;;  %v4263_v4 = vpop.permute.xlu1 %4262 }
0x1af6   :  { %v4275_v23 = vmul.f32 %v5522_v18, %v4265_v5  ;;  %v4274_v24 = vmul.f32 %v5524_v45, %v4263_v4 }
0x1af9   :  { %v4267_v8 = vpop.permute.xlu0 %4266 }
0x1afa   :  { %v5530_v63 = vpop.eup %5529  ;;  %v4276_v59 = vmul.f32 %v5528_v42, %v4267_v8 }
0x1afb   :  { %v5532_v0 = vpop.eup %5531  ;;  %4244 = vrot.lane.b32.xlu0 %v5530_v63, %s5712_s10 }
0x1afc   :  { %4242 = vrot.lane.b32.xlu1 %v5532_v0, %s5712_s10 }
0x1afe   :  { %v5534_v2 = vpop.eup %5533 }
0x1aff   :  { %4268 = vrot.lane.b32.xlu0 %v4261_v1, %s5727_s0  ;;  %v5536_v6 = vpop.eup %5535 }
0x1b00   :  { %4246 = vrot.lane.b32.xlu1 %v5534_v2, %s5712_s10 }
0x1b04   :  { %4248 = vrot.lane.b32.xlu1 %v5536_v6, %s5712_s10 }
0x1b6d   :  { %v4245_v13 = vpop.permute.xlu0 %4244 }
0x1b6e   :  { %v4243_v16 = vpop.permute.xlu1 %4242  ;;  %v4255_v19 = vmul.f32 %v4245_v13, %v4235_v11 }
0x1b6f   :  { %v4254_v21 = vmul.f32 %v4243_v16, %v4234_v15 }
0x1b70   :  { %v4279_v3 = vadd.f32 %v4275_v23, %v4255_v19 }
0x1b71   :  { %v4278_v26 = vadd.f32 %v4274_v24, %v4254_v21  ;;  %v4269_v30 = vpop.permute.xlu0 %4268 }
0x1b72   :  { %v4247_v60 = vpop.permute.xlu1 %4246  ;;  %v4288_v34 = vrot.slane %v4279_v3, 4  ;;  %v4277_v14 = vmul.f32 %v6447_v9, %v4269_v30 }
0x1b73   :  { %v4256_v28 = vmul.f32 %v4247_v60, %v4236_v10  ;;  %v4287_v35 = vrot.slane %v4278_v26, 5 }
0x1b75   :  { %v4280_v31 = vadd.f32 %v4276_v59, %v4256_v28  ;;  %v4289_v41 = vsel %vm3225_vm6, %v4288_v34, %v4287_v35 }
0x1b76   :  { %v4249_v33 = vpop.permute.xlu1 %4248 }
0x1b77   :  { %v4257_v36 = vmul.f32 %v4249_v33, %v4237_v32  ;;  %v4290_v38 = vrot.slane %v4280_v31, 3 }
0x1b79   :  { %v4281_v39 = vadd.f32 %v4277_v14, %v4257_v36  ;;  %v4291_v18 = vsel %vm3228_vm7, %v4290_v38, %v4289_v41 }
0x1b7b   :  { %v4292_v47 = vrot.slane %v4281_v39, 2 }
0x1b7d   :  { %v4293_v45 = vsel %vm3231_vm8, %v4292_v47, %v4291_v18 }
0x1b7e   :  { %4294 = vrot.lane.b32.xlu1 %v4293_v45, %s5712_s10 }
0x1bf0   :  { %v4295_v25 = vpop.permute.xlu1 %4294 }
0x1bf1   :  { %v6478_v43 = vsel %vm4282_vm14, %v4295_v25, %v6424_v27 }
0x1bf2   :  { %5226 = vmatmul.mubr.msk.f32.vlgmr.msra.gmra.mrb[40].mxu0 %vm100_vm0, %v6478_v43  ;;  %v4473_v24 = vrot.slane %v6478_v43, 3  ;;  %v4472_v10 = vrot.slane %v6478_v43, 2  ;;  %v4474_v60 = vrot.slane %v6478_v43, 4  ;;  %v4475_v14 = vrot.slane %v6478_v43, 5 }
0x1cc5   :  { %v4367_v17 = vpop.f32.mrb[40].mxu0 }
0x1cc6   :  { %v4368_v40 = vadd.f32 %v6436_v20, %v4367_v17  ;;  %v5227_v9 = vpop.f32.mrb[41].mxu0 }
0x1cc8   :  { %v4373_v42 = vrot.slane %v4368_v40, 3  ;;  %v4372_v37 = vrot.slane %v4368_v40, 2  ;;  %v4375_v48 = vrot.slane %v4368_v40, 5  ;;  %v4374_v12 = vrot.slane %v4368_v40, 4 }
0x1cca   :  { %4410 = vrot.lane.b32.xlu1 %v4373_v42, %s5713_s3  ;;  %4408 = vrot.lane.b32.xlu0 %v4372_v37, %s5713_s3  ;;  %v4381_v27 = vadd.f32 %v4373_v42, %v6201_v29  ;;  %v4380_v46 = vadd.f32 %v4372_v37, %v6203_v50  ;;  %v4383_v51 = vadd.f32 %v4375_v48, %v6207_v55 }
0x1ccb   :  { %v4382_v22 = vadd.f32 %v4374_v12, %v6209_v57 }
0x1ccc   :  { %v4835_v49 = vmul.f32 -1.442695, %v4381_v27  ;;  %v4834_v44 = vmul.f32 -1.442695, %v4380_v46  ;;  %v4837_v52 = vmul.f32 -1.442695, %v4383_v51 }
0x1ccd   :  { %v4836_v53 = vmul.f32 -1.442695, %v4382_v22 }
0x1cce   :  { %4414 = vrot.lane.b32.xlu1 %v4375_v48, %s5713_s3  ;;  %4412 = vrot.lane.b32.xlu0 %v4374_v12, %s5713_s3  ;;  %5537 = vpow2.f32 %v4835_v49 }
0x1ccf   :  { %5539 = vpow2.f32 %v4834_v44 }
0x1cd0   :  { %5541 = vpow2.f32 %v4837_v52 }
0x1cd1   :  { %5543 = vpow2.f32 %v4836_v53 }
0x1cd8   :  { %v5538_v54 = vpop.eup %5537 }
0x1cd9   :  { %v5540_v56 = vpop.eup %5539  ;;  %v4397_v58 = vadd.f32 1.0, %v5538_v54 }
0x1cda   :  { %v5542_v61 = vpop.eup %5541  ;;  %v4396_v62 = vadd.f32 1.0, %v5540_v56 }
0x1cdb   :  { %v5544_v63 = vpop.eup %5543  ;;  %5545 = vrcp.f32 %v4397_v58  ;;  %v4399_v0 = vadd.f32 1.0, %v5542_v61 }
0x1cdc   :  { %5547 = vrcp.f32 %v4396_v62  ;;  %v4398_v1 = vadd.f32 1.0, %v5544_v63 }
0x1cdd   :  { %5549 = vrcp.f32 %v4399_v0 }
0x1cde   :  { %5551 = vrcp.f32 %v4398_v1 }
0x1ce5   :  { %v5546_v2 = vpop.eup %5545 }
0x1ce6   :  { %v5548_v6 = vpop.eup %5547  ;;  %v4449_v18 = vsub.f32 1.0, %v5546_v2 }
0x1ce7   :  { %v6491_v13 = vpop.eup %5549  ;;  %v4448_v25 = vsub.f32 1.0, %v5548_v6 }
0x1ce8   :  { %v5552_v15 = vpop.eup %5551  ;;  %v4451_v52 = vsub.f32 1.0, %v6491_v13 }
0x1ce9   :  { %v4450_v48 = vsub.f32 1.0, %v5552_v15 }
0x1d3c   :  { %v4411_v5 = vpop.permute.xlu1 %4410  ;;  %v4409_v8 = vpop.permute.xlu0 %4408 }
0x1d3d   :  { %v4421_v4 = vmul.f32 %v5546_v2, %v4411_v5  ;;  %v4420_v11 = vmul.f32 %v5548_v6, %v4409_v8 }
0x1d3f   :  { %4430 = vrot.lane.b32.xlu1 %v4421_v4, %s5713_s3  ;;  %4428 = vrot.lane.b32.xlu0 %v4420_v11, %s5713_s3 }
0x1d40   :  { %v4415_v16 = vpop.permute.xlu1 %4414  ;;  %v4413_v19 = vpop.permute.xlu0 %4412 }
0x1d41   :  { %v4423_v21 = vmul.f32 %v6491_v13, %v4415_v16  ;;  %v4422_v23 = vmul.f32 %v5552_v15, %v4413_v19 }
0x1d43   :  { %4434 = vrot.lane.b32.xlu1 %v4423_v21, %s5713_s3  ;;  %4432 = vrot.lane.b32.xlu0 %v4422_v23, %s5713_s3 }
0x1d47   :  { %4478 = vrot.lane.b32.xlu1 %v4473_v24, %s5727_s0  ;;  %4476 = vrot.lane.b32.xlu0 %v4472_v10, %s5727_s0 }
0x1d4b   :  { %4480 = vrot.lane.b32.xlu1 %v4474_v60, %s5727_s0 }
0x1db1   :  { %v4431_v59 = vpop.permute.xlu1 %4430  ;;  %v4429_v3 = vpop.permute.xlu0 %4428 }
0x1db2   :  { %v4441_v26 = vadd.f32 %v4431_v59, %v6201_v29  ;;  %v4440_v28 = vadd.f32 %v4429_v3, %v6203_v50 }
0x1db4   :  { %5553 = vtanh.f32 %v4441_v26 }
0x1db5   :  { %5555 = vtanh.f32 %v4440_v28  ;;  %v4433_v30 = vpop.permute.xlu0 %4432  ;;  %v4435_v31 = vpop.permute.xlu1 %4434 }
0x1db6   :  { %v4442_v32 = vadd.f32 %v4433_v30, %v6209_v57  ;;  %v4443_v33 = vadd.f32 %v4435_v31, %v6207_v55 }
0x1db8   :  { %5557 = vtanh.f32 %v4442_v32 }
0x1db9   :  { %5559 = vtanh.f32 %v4443_v33  ;;  %v4479_v39 = vpop.permute.xlu1 %4478  ;;  %v4477_v47 = vpop.permute.xlu0 %4476 }
0x1dba   :  { %v4489_v42 = vmul.f32 %v5546_v2, %v4479_v39  ;;  %v4488_v37 = vmul.f32 %v5548_v6, %v4477_v47 }
0x1dbd   :  { %v4481_v41 = vpop.permute.xlu1 %4480 }
0x1dbe   :  { %v5554_v34 = vpop.eup %5553  ;;  %v4490_v27 = vmul.f32 %v5552_v15, %v4481_v41 }
0x1dbf   :  { %v5556_v35 = vpop.eup %5555  ;;  %4458 = vrot.lane.b32.xlu1 %v5554_v34, %s5712_s10 }
0x1dc0   :  { %4456 = vrot.lane.b32.xlu0 %v5556_v35, %s5712_s10 }
0x1dc2   :  { %v5558_v36 = vpop.eup %5557 }
0x1dc3   :  { %4482 = vrot.lane.b32.xlu1 %v4475_v14, %s5727_s0  ;;  %v5560_v38 = vpop.eup %5559 }
0x1dc4   :  { %4460 = vrot.lane.b32.xlu0 %v5558_v36, %s5712_s10 }
0x1dc8   :  { %4462 = vrot.lane.b32.xlu0 %v5560_v38, %s5712_s10 }
0x1e31   :  { %v4459_v45 = vpop.permute.xlu1 %4458 }
0x1e32   :  { %v4457_v17 = vpop.permute.xlu0 %4456  ;;  %v4469_v40 = vmul.f32 %v4459_v45, %v4449_v18 }
0x1e33   :  { %v4468_v9 = vmul.f32 %v4457_v17, %v4448_v25 }
0x1e34   :  { %v4493_v46 = vadd.f32 %v4489_v42, %v4469_v40 }
0x1e35   :  { %v4492_v49 = vadd.f32 %v4488_v37, %v4468_v9  ;;  %v4483_v44 = vpop.permute.xlu1 %4482 }
0x1e36   :  { %v4461_v12 = vpop.permute.xlu0 %4460  ;;  %v4502_v54 = vrot.slane %v4493_v46, 5  ;;  %v4491_v58 = vmul.f32 %v6491_v13, %v4483_v44 }
0x1e37   :  { %v4470_v51 = vmul.f32 %v4461_v12, %v4450_v48  ;;  %v4501_v56 = vrot.slane %v4492_v49, 6 }
0x1e39   :  { %v4494_v22 = vadd.f32 %v4490_v27, %v4470_v51  ;;  %v4503_v0 = vsel %vm3225_vm6, %v4502_v54, %v4501_v56 }
0x1e3a   :  { %v4463_v53 = vpop.permute.xlu0 %4462 }
0x1e3b   :  { %v4471_v61 = vmul.f32 %v4463_v53, %v4451_v52  ;;  %v4504_v62 = vrot.slane %v4494_v22, 4 }
0x1e3d   :  { %v4495_v63 = vadd.f32 %v4491_v58, %v4471_v61  ;;  %v4505_v2 = vsel %vm3228_vm7, %v4504_v62, %v4503_v0 }
0x1e3f   :  { %v4506_v1 = vrot.slane %v4495_v63, 3 }
0x1e41   :  { %v4507_v6 = vsel %vm3231_vm8, %v4506_v1, %v4505_v2 }
0x1e42   :  { %4508 = vrot.lane.b32.xlu0 %v4507_v6, %s5712_s10 }
0x1eb4   :  { %v4509_v5 = vpop.permute.xlu0 %4508 }
0x1eb5   :  { %v6522_v8 = vsel %vm4496_vm15, %v4509_v5, %v6478_v43 }
0x1eb6   :  { %5237 = vmatmul.mubr.msk.f32.vlgmr.msra.gmra.mrb[44].mxu1 %vm100_vm0, %v6522_v8  ;;  %v4687_v42 = vrot.slane %v6522_v8, 2  ;;  %v4686_v37 = vrot.slane %v6522_v8, 1  ;;  %v4688_v48 = vrot.slane %v6522_v8, 3  ;;  %vm4726_vm0 = vcmask 257024  }
0x1f89   :  { %v4581_v4 = vpop.f32.mrb[44].mxu1 }
0x1f8a   :  { %v4582_v11 = vadd.f32 %v6436_v20, %v4581_v4  ;;  %v5238_v13 = vpop.f32.mrb[45].mxu1 }
0x1f8c   :  { %v4587_v15 = vrot.slane %v4582_v11, 2  ;;  %v4586_v16 = vrot.slane %v4582_v11, 1  ;;  %v4589_v19 = vrot.slane %v4582_v11, 4  ;;  %v4588_v21 = vrot.slane %v4582_v11, 3 }
0x1f8e   :  { %4624 = vrot.lane.b32.xlu0 %v4587_v15, %s5713_s3  ;;  %4622 = vrot.lane.b32.xlu1 %v4586_v16, %s5713_s3  ;;  %v4595_v43 = vadd.f32 %v4587_v15, %v6201_v29  ;;  %v4594_v23 = vadd.f32 %v4586_v16, %v6203_v50  ;;  %v4597_v20 = vadd.f32 %v4589_v19, %v6207_v55 }
0x1f8f   :  { %v4596_v60 = vadd.f32 %v4588_v21, %v6209_v57 }
0x1f90   :  { %v4840_v24 = vmul.f32 -1.442695, %v4595_v43  ;;  %v4839_v10 = vmul.f32 -1.442695, %v4594_v23  ;;  %v4842_v59 = vmul.f32 -1.442695, %v4597_v20 }
0x1f91   :  { %v4841_v3 = vmul.f32 -1.442695, %v4596_v60 }
0x1f92   :  { %4628 = vrot.lane.b32.xlu0 %v4589_v19, %s5713_s3  ;;  %4626 = vrot.lane.b32.xlu1 %v4588_v21, %s5713_s3  ;;  %5561 = vpow2.f32 %v4840_v24 }
0x1f93   :  { %5563 = vpow2.f32 %v4839_v10 }
0x1f94   :  { %5565 = vpow2.f32 %v4842_v59 }
0x1f95   :  { %5567 = vpow2.f32 %v4841_v3 }
0x1f9c   :  { %v5562_v26 = vpop.eup %5561 }
0x1f9d   :  { %v5564_v28 = vpop.eup %5563  ;;  %v4611_v30 = vadd.f32 1.0, %v5562_v26 }
0x1f9e   :  { %v5566_v31 = vpop.eup %5565  ;;  %v4610_v32 = vadd.f32 1.0, %v5564_v28 }
0x1f9f   :  { %v5568_v33 = vpop.eup %5567  ;;  %5569 = vrcp.f32 %v4611_v30  ;;  %v4613_v34 = vadd.f32 1.0, %v5566_v31 }
0x1fa0   :  { %5571 = vrcp.f32 %v4610_v32  ;;  %v4612_v35 = vadd.f32 1.0, %v5568_v33 }
0x1fa1   :  { %5573 = vrcp.f32 %v4613_v34 }
0x1fa2   :  { %5575 = vrcp.f32 %v4612_v35 }
0x1fa9   :  { %v5570_v14 = vpop.eup %5569 }
0x1faa   :  { %v5572_v36 = vpop.eup %5571  ;;  %v4663_v61 = vsub.f32 1.0, %v5570_v14 }
0x1fab   :  { %v6535_v18 = vpop.eup %5573  ;;  %v4662_v63 = vsub.f32 1.0, %v5572_v36 }
0x1fac   :  { %v5576_v45 = vpop.eup %5575  ;;  %v4665_v23 = vsub.f32 1.0, %v6535_v18 }
0x1fad   :  { %v4664_v4 = vsub.f32 1.0, %v5576_v45 }
0x2000   :  { %v4625_v38 = vpop.permute.xlu0 %4624  ;;  %v4623_v39 = vpop.permute.xlu1 %4622 }
0x2001   :  { %v4635_v41 = vmul.f32 %v5570_v14, %v4625_v38  ;;  %v4634_v47 = vmul.f32 %v5572_v36, %v4623_v39 }
0x2003   :  { %4644 = vrot.lane.b32.xlu0 %v4635_v41, %s5713_s3  ;;  %4642 = vrot.lane.b32.xlu1 %v4634_v47, %s5713_s3 }
0x2004   :  { %v4629_v25 = vpop.permute.xlu0 %4628  ;;  %v4627_v17 = vpop.permute.xlu1 %4626 }
0x2005   :  { %v4637_v40 = vmul.f32 %v6535_v18, %v4629_v25  ;;  %v4636_v9 = vmul.f32 %v5576_v45, %v4627_v17 }
0x2007   :  { %4648 = vrot.lane.b32.xlu0 %v4637_v40, %s5713_s3  ;;  %4646 = vrot.lane.b32.xlu1 %v4636_v9, %s5713_s3 }
0x200b   :  { %4692 = vrot.lane.b32.xlu0 %v4687_v42, %s5727_s0  ;;  %4690 = vrot.lane.b32.xlu1 %v4686_v37, %s5727_s0 }
0x200f   :  { %4694 = vrot.lane.b32.xlu0 %v4688_v48, %s5727_s0 }
0x2075   :  { %v4645_v12 = vpop.permute.xlu0 %4644  ;;  %v4643_v27 = vpop.permute.xlu1 %4642 }
0x2076   :  { %v4655_v46 = vadd.f32 %v4645_v12, %v6201_v29  ;;  %v4654_v49 = vadd.f32 %v4643_v27, %v6203_v50  ;;  %v4689_v29 = vrot.slane %v6522_v8, 4 }
0x2078   :  { %5577 = vtanh.f32 %v4655_v46 }
0x2079   :  { %5579 = vtanh.f32 %v4654_v49  ;;  %v4647_v51 = vpop.permute.xlu1 %4646  ;;  %v4649_v44 = vpop.permute.xlu0 %4648 }
0x207a   :  { %v4656_v22 = vadd.f32 %v4647_v51, %v6209_v57  ;;  %v4657_v52 = vadd.f32 %v4649_v44, %v6207_v55 }
0x207c   :  { %5581 = vtanh.f32 %v4656_v22 }
0x207d   :  { %5583 = vtanh.f32 %v4657_v52  ;;  %v4693_v57 = vpop.permute.xlu0 %4692  ;;  %v4691_v58 = vpop.permute.xlu1 %4690 }
0x207e   :  { %v4703_v6 = vmul.f32 %v5570_v14, %v4693_v57  ;;  %v4702_v5 = vmul.f32 %v5572_v36, %v4691_v58 }
0x2081   :  { %v4695_v55 = vpop.permute.xlu0 %4694 }
0x2082   :  { %v5578_v53 = vpop.eup %5577  ;;  %v4704_v13 = vmul.f32 %v5576_v45, %v4695_v55 }
0x2083   :  { %v5580_v54 = vpop.eup %5579  ;;  %4672 = vrot.lane.b32.xlu0 %v5578_v53, %s5712_s10 }
0x2084   :  { %4670 = vrot.lane.b32.xlu1 %v5580_v54, %s5712_s10 }
0x2086   :  { %v5582_v56 = vpop.eup %5581 }
0x2087   :  { %4696 = vrot.lane.b32.xlu0 %v4689_v29, %s5727_s0  ;;  %v5584_v50 = vpop.eup %5583 }
0x2088   :  { %4674 = vrot.lane.b32.xlu1 %v5582_v56, %s5712_s10 }
0x208c   :  { %4676 = vrot.lane.b32.xlu1 %v5584_v50, %s5712_s10 }
0x20f5   :  { %v4673_v62 = vpop.permute.xlu0 %4672 }
0x20f6   :  { %v4671_v0 = vpop.permute.xlu1 %4670  ;;  %v4683_v1 = vmul.f32 %v4673_v62, %v4663_v61 }
0x20f7   :  { %v4682_v2 = vmul.f32 %v4671_v0, %v4662_v63 }
0x20f8   :  { %v4707_v15 = vadd.f32 %v4703_v6, %v4683_v1 }
0x20f9   :  { %v4706_v16 = vadd.f32 %v4702_v5, %v4682_v2  ;;  %v4697_v21 = vpop.permute.xlu0 %4696 }
0x20fa   :  { %v4675_v11 = vpop.permute.xlu1 %4674  ;;  %v4716_v20 = vrot.slane %v4707_v15, 6  ;;  %v4705_v60 = vmul.f32 %v6535_v18, %v4697_v21 }
0x20fb   :  { %v4684_v19 = vmul.f32 %v4675_v11, %v4664_v4  ;;  %v4715_v10 = vrot.slane %v4706_v16, 7 }
0x20fd   :  { %v4708_v43 = vadd.f32 %v4704_v13, %v4684_v19  ;;  %v4717_v28 = vsel %vm3225_vm6, %v4716_v20, %v4715_v10 }
0x20fe   :  { %v4677_v24 = vpop.permute.xlu1 %4676 }
0x20ff   :  { %v4685_v59 = vmul.f32 %v4677_v24, %v4665_v23  ;;  %v4718_v3 = vrot.slane %v4708_v43, 5 }
0x2101   :  { %v4709_v26 = vadd.f32 %v4705_v60, %v4685_v59  ;;  %v4719_v31 = vsel %vm3228_vm7, %v4718_v3, %v4717_v28 }
0x2103   :  { %v4720_v30 = vrot.slane %v4709_v26, 4 }
0x2105   :  { %v4721_v32 = vsel %vm3231_vm8, %v4720_v30, %v4719_v31 }
0x2106   :  { %4722 = vrot.lane.b32.xlu1 %v4721_v32, %s5712_s10 }
0x2178   :  { %v4723_v33 = vpop.permute.xlu1 %4722 }
0x2179   :  { %v4725_v34 = vsel %vm4710_vm1, %v4723_v33, %v6522_v8 }
0x217a   :  { %4727 = vst.msk [vmem:[#allocation10] sm:$0xf] %vm4726_vm0, %v4725_v34 }
0x217b   :  { %5685 = shalt.err (!%p5682_p8)
}
0x217c   :  { %s5686_s9 = scalar_lea.hbm %s6586_s8, 64 }
0x217d   :  { %p5687_p9 = scmp.ne.s32.totalorder %s6586_s8, %s5686_s9  ;;  %p5690_p10 = scmp.lt.u32.totalorder %s5686_s9, %s6586_s8 }
0x217f   :  { %p5692_p11 = pnand %p5690_p10, %p5687_p9 }
0x2181   :  { %5695 = shalt.err (!%p5692_p11)
}
0x2182   :  { %4737 = dma.vmem_to_hbm [thread:$0]  %s4735_s29, 64, %s6586_s8, [#allocation4]  }
0x2183   :  { %5702 = dma.done.wait [#allocation4], 64  }
0x2184   :  { %5703 = vsyncadd [#allocation4], 4294967232 }
0x2185   :  { %4741 = vsyncpa [#allocation3], 1 }
0x2186   :  { %4742 = vsyncpa [#allocation6], 1 }
0x2187   :  { %4743 = vsyncpa [#allocation9], 1 }
0x2188   :  { %4744 = vsyncpa [#allocation4], 1 }

</bundles_post_ra>
